<compile_context>
chip_gen: v6e
topology: v6e:2x2x1
jax: 0.10.0
libtpu: 0.0.40
codegen_flags: <defaults>
</compile_context>

<pallas_src>
import functools

import jax
import jax.numpy as jnp
from jax.experimental import pallas as pl
from jax.experimental.pallas import tpu as pltpu


_SENTINEL = -1.0e6  # padded pixels: their bin is hugely negative -> never matches


def _round_up(x, m):
    return ((x + m - 1) // m) * m


def _vmem_capacity_bytes():
    try:
        cap = getattr(pltpu.get_tpu_info(), "vmem_capacity_bytes", None)
        if cap:
            return int(cap)
    except Exception:
        pass
    return 64 << 20  # conservative default (v7x per-TC size)


def _dimension_semantics():
    try:
        kind = jax.devices()[0].device_kind.lower()
    except Exception:
        kind = ""
    if "v7" in kind or "tpu7" in kind:
        return (pltpu.CORE_PARALLEL,)  # 2 TCs/chip: shard the row-tile grid
    return ("parallel",)


def _pick_row_tile(Ho, Wp, k2, vmem_cap, row_tile=None):
    """Output-row tile: multiple of 16, sized so double-buffered blocks + the
    idx scratch + in-kernel temporaries stay well under the scoped-VMEM limit,
    with bounded row-padding waste."""
    if row_tile is not None:
        return max(16, _round_up(int(row_tile), 16))
    # f32-equivalent (th, Wp) planes resident per block:
    #   2x taps in-block (budgeted as f32 for headroom even though bf16),
    #   2x out-block, k2 idx-scratch planes, ~16 planes of temporaries.
    planes = 7 * k2 + 22
    budget = int(vmem_cap * 0.45)
    th = budget // (planes * Wp * 4)
    th = max(16, min(512, (th // 16) * 16))
    th = min(th, _round_up(Ho, 16))
    # keep the padded-row waste modest
    while th > 16 and (_round_up(Ho, th) - Ho) > max(16, Ho // 4):
        th -= 16
    return th


def _pixel_effect_kernel(taps_ref, out_ref, idx_scr, *, num_bins, ksize):
    """taps_ref: [k, k, 3, th, Wp] (bf16/f32) sentinel-padded RGB window taps
       out_ref:  [3, th, Wp] f32              mode-bin average per output pixel
       idx_scr:  [k*k, th, Wp] i32 scratch    per-tap intensity bin (VMEM only)
    """
    f32 = jnp.float32
    nb = num_bins
    k = ksize
    k2 = k * k
    scale = f32(nb / 768.0)
    shape = out_ref.shape[1:]

    def tap(di, dj, c):
        return taps_ref[di, dj, c].astype(f32)

    # ---- pass 0: per-tap intensity bin floor((r+g+b)*nb/768), cached in VMEM.
    # Sentinel-padded pixels map to a hugely negative bin -> excluded everywhere.
    t = 0
    for di in range(k):
        for dj in range(k):
            ssum = (tap(di, dj, 0) + tap(di, dj, 1)) + tap(di, dj, 2)
            idx_scr[t] = (ssum * scale).astype(jnp.int32)
            t += 1

    # ---- pass 1: per-bin window counts + running (max count, argmax bin) ----
    best_cnt = jnp.full(shape, -1.0, f32)
    best_bin = jnp.zeros(shape, jnp.int32)
    for z in range(nb):
        cnt = jnp.zeros(shape, f32)
        for t in range(k2):
            cnt = cnt + jnp.where(idx_scr[t] == z, f32(1.0), f32(0.0))
        take = cnt > best_cnt                  # '>' keeps the first bin on ties
        best_cnt = jnp.where(take, cnt, best_cnt)
        best_bin = jnp.where(take, jnp.int32(z), best_bin)

    # ---- pass 2: accumulate r/g/b only where the tap falls in the argmax bin
    sum_r = jnp.zeros(shape, f32)
    sum_g = jnp.zeros(shape, f32)
    sum_b = jnp.zeros(shape, f32)
    t = 0
    for di in range(k):
        for dj in range(k):
            m = idx_scr[t] == best_bin
            sum_r = sum_r + jnp.where(m, tap(di, dj, 0), f32(0.0))
            sum_g = sum_g + jnp.where(m, tap(di, dj, 1), f32(0.0))
            sum_b = sum_b + jnp.where(m, tap(di, dj, 2), f32(0.0))
            t += 1

    # Valid output pixels always count their own (in-image) centre, so the
    # denominator is >= 1 there; the max() only guards sentinel-only padded
    # rows/cols that the wrapper crops away.
    inv = pl.reciprocal(jnp.maximum(best_cnt, f32(1.0)), approx=True)
    out_ref[0] = sum_r * inv
    out_ref[1] = sum_g * inv
    out_ref[2] = sum_b * inv


def _build_taps(x, k, s, pad, Ho_pad, Wo_pad, tap_dtype):
    """Window taps with taps[di, dj, c, i, j] == padded_image[c, i*s+di, j*s+dj]."""
    xq = x.astype(tap_dtype)
    _, H, W = x.shape
    if s >= k:
        # Phase decomposition: pad once, one reshape+transpose.  The kernel's
        # BlockSpec picks the k*k needed phases out of the s*s phase tensor.
        HX, WX = Ho_pad * s, Wo_pad * s
        xp = jnp.pad(
            xq,
            ((0, 0), (pad, max(0, HX - H - pad)), (pad, max(0, WX - W - pad))),
            constant_values=_SENTINEL,
        )[:, :HX, :WX]
        return xp.reshape(3, Ho_pad, s, Wo_pad, s).transpose(2, 4, 0, 1, 3)
    # TODO(synk): s < k fallback duplicates input bytes by k^2/s^2; replace with
    # an in-kernel halo'd phase block when this configuration matters.
    HX = (Ho_pad - 1) * s + k
    WX = (Wo_pad - 1) * s + k
    xp = jnp.pad(
        xq,
        ((0, 0), (pad, max(0, HX - H - pad)), (pad, max(0, WX - W - pad))),
        constant_values=_SENTINEL,
    )
    taps = [xp[:, di::s, dj::s][:, :Ho_pad, :Wo_pad]
            for di in range(k) for dj in range(k)]
    return jnp.stack(taps).reshape(k, k, 3, Ho_pad, Wo_pad)


@functools.partial(
    jax.jit,
    static_argnames=("param_num_bins", "param_kernel_size", "param_pixel_size",
                     "param_with_padding", "row_tile", "tap_dtype"))
def pixel_effect(rgb, *, param_num_bins, param_kernel_size, param_pixel_size,
                 param_with_padding, row_tile=None, tap_dtype=jnp.bfloat16):
    """rgb: [1, 3, H, W] float32 in [0, 256).  Mirrors PixelEffectModule.forward.

    tap_dtype=bfloat16 (default) is exact for integer 0..255 pixel data; pass
    jnp.float32 for bit-matched binning of arbitrary float inputs."""
    assert rgb.shape[0] == 1 and rgb.shape[1] == 3
    assert param_kernel_size % 2 == 1, "odd conv kernel expected"
    _, _, H, W = rgb.shape
    k = param_kernel_size
    k2 = k * k
    s = param_pixel_size
    nb = param_num_bins
    pad = (k - 1) // 2
    Ho = (H - 1) // s + 1                # strided 'same' conv output extent
    Wo = (W - 1) // s + 1

    vmem_cap = _vmem_capacity_bytes()
    Wo_pad = _round_up(Wo, 128)          # lane-dense last dim
    th = _pick_row_tile(Ho, Wo_pad, k2, vmem_cap, row_tile)
    Ho_pad = _round_up(Ho, th)
    grid = (Ho_pad // th,)

    x = rgb[0].astype(jnp.float32)       # [3, H, W]
    taps = _build_taps(x, k, s, pad, Ho_pad, Wo_pad, tap_dtype)

    kern = functools.partial(_pixel_effect_kernel, num_bins=nb, ksize=k)
    vals = pl.pallas_call(
        kern,
        out_shape=jax.ShapeDtypeStruct((3, Ho_pad, Wo_pad), jnp.float32),
        grid=grid,
        in_specs=[pl.BlockSpec((k, k, 3, th, Wo_pad), lambda i: (0, 0, 0, i, 0))],
        out_specs=pl.BlockSpec((3, th, Wo_pad), lambda i: (0, i, 0)),
        scratch_shapes=[pltpu.VMEM((k2, th, Wo_pad), jnp.int32)],
        compiler_params=pltpu.CompilerParams(
            dimension_semantics=_dimension_semantics(),
            vmem_limit_bytes=min(int(vmem_cap) * 3 // 4, 100 << 20),
        ),
    )(taps)                              # [3, Ho_pad, Wo_pad]

    vals = vals[:, :Ho, :Wo]             # crop the small per-pixel tensor

    # F.interpolate(scale_factor=s, mode='nearest') (+ optional 1-px block grid)
    # as a single fused broadcast/select/reshape: exactly one pass writes the
    # large output tensor.
    so = s + 1 if param_with_padding == 1 else s
    up = jnp.broadcast_to(vals[:, :, None, :, None], (3, Ho, so, Wo, so))
    if param_with_padding == 1:
        keep = jnp.arange(so) < s
        up = jnp.where(
            keep[None, None, :, None, None] & keep[None, None, None, None, :],
            up, jnp.float32(0.0))
    return up.reshape(1, 3, Ho * so, Wo * so)


def _pixel_effect_ref(rgb, nb, k, s, with_padding):
    """Pure-JAX reference mirroring the torch forward (exact divides)."""
    _, _, H, W = rgb.shape
    pad = (k - 1) // 2
    Ho = (H - 1) // s + 1
    Wo = (W - 1) // s + 1
    x = rgb[0].astype(jnp.float32)
    idx = jnp.clip(((x[0] + x[1] + x[2]) * (nb / 768.0)).astype(jnp.int32), 0, nb - 1)
    onehot = (idx[None] == jnp.arange(nb)[:, None, None]).astype(jnp.float32)

    def box(p):  # [C, H, W] -> strided box sum [C, Ho, Wo]
        pp = jnp.pad(p, ((0, 0), (pad, pad), (pad, pad)))
        acc = jnp.zeros((p.shape[0], Ho, Wo), jnp.float32)
        for di in range(k):
            for dj in range(k):
                acc = acc + pp[:, di::s, dj::s][:, :Ho, :Wo]
        return acc

    rI, gI, bI, cI = box(x[0:1] * onehot), box(x[1:2] * onehot), box(x[2:3] * onehot), box(onehot)
    amax = jnp.argmax(cI, axis=0)
    cmax = jnp.max(cI, axis=0)
    take = lambda v: jnp.take_along_axis(v, amax[None], axis=0)[0]
    out = jnp.stack([take(rI) / cmax, take(gI) / cmax, take(bI) / cmax], axis=0)
    up = jnp.repeat(jnp.repeat(out, s, axis=1), s, axis=2)[None]
    if with_padding == 1:
        blocks = up.reshape(1, 3, Ho, s, Wo, s)
        blocks = jnp.pad(blocks, ((0, 0), (0, 0), (0, 0), (0, 1), (0, 0), (0, 1)))
        up = blocks.reshape(1, 3, Ho * (s + 1), Wo * (s + 1))
    return up


if __name__ == "__main__":
    key = jax.random.PRNGKey(0)
    k_a, k_b, k_c = jax.random.split(key, 3)

    # Small case, integer-valued pixels (bf16 taps are exact), no-pad and pad.
    H = W = 16
    rgb = jnp.floor(jax.random.uniform(k_a, (1, 3, H, W), jnp.float32,
                                       minval=0.0, maxval=256.0))
    out_nopad = pixel_effect(rgb, param_num_bins=8, param_kernel_size=3,
                             param_pixel_size=4, param_with_padding=0)
    out_pad = pixel_effect(rgb, param_num_bins=8, param_kernel_size=3,
                           param_pixel_size=4, param_with_padding=1)
    jax.block_until_ready(out_nopad)
    jax.block_until_ready(out_pad)
    assert out_nopad.shape == (1, 3, 16, 16), out_nopad.shape
    assert out_pad.shape == (1, 3, 20, 20), out_pad.shape
    assert bool(jnp.all(jnp.isfinite(out_nopad)))
    assert bool(jnp.all(jnp.isfinite(out_pad)))
    ref_nopad = _pixel_effect_ref(rgb, 8, 3, 4, 0)
    ref_pad = _pixel_effect_ref(rgb, 8, 3, 4, 1)
    assert bool(jnp.allclose(out_nopad, ref_nopad, rtol=1e-2, atol=0.5))
    assert bool(jnp.allclose(out_pad, ref_pad, rtol=1e-2, atol=0.5))

    # Larger case forcing the multi-block row-tiled grid (Ho=32, th=16 -> grid 2).
    H2 = W2 = 128
    rgb2 = jnp.floor(jax.random.uniform(k_b, (1, 3, H2, W2), jnp.float32,
                                        minval=0.0, maxval=256.0))
    out2 = pixel_effect(rgb2, param_num_bins=8, param_kernel_size=3,
                        param_pixel_size=4, param_with_padding=1, row_tile=16)
    jax.block_until_ready(out2)
    assert out2.shape == (1, 3, 160, 160), out2.shape
    ref2 = _pixel_effect_ref(rgb2, 8, 3, 4, 1)
    assert bool(jnp.allclose(out2, ref2, rtol=1e-2, atol=0.5))

    # pixel_size < kernel_size path (duplicated-tap fallback) with exact f32
    # taps on non-integer pixel values.
    rgb3 = jax.random.uniform(k_c, (1, 3, 16, 16), jnp.float32,
                              minval=0.0, maxval=255.0)
    out3 = pixel_effect(rgb3, param_num_bins=8, param_kernel_size=3,
                        param_pixel_size=2, param_with_padding=0,
                        tap_dtype=jnp.float32)
    jax.block_until_ready(out3)
    assert out3.shape == (1, 3, 16, 16), out3.shape
    ref3 = _pixel_effect_ref(rgb3, 8, 3, 2, 0)
    assert bool(jnp.allclose(out3, ref3, rtol=1e-2, atol=0.5))

    print("KERNEL_OK")
</pallas_src>

<mosaic_0001>
module attributes {stable_mosaic.version = 11 : i64} {
  func.func @_pixel_effect_kernel(%arg0: i32, %arg1: memref<3x3x3x16x128xbf16, #tpu.memory_space<vmem>>, %arg2: memref<3x16x128xf32, #tpu.memory_space<vmem>>, %arg3: memref<9x16x128xi32, #tpu.memory_space<vmem>>) attributes {dimension_semantics = [#tpu.dimension_semantics<parallel>], iteration_bounds = array<i64: 1>, scalar_prefetch = 0 : i64, scratch_operands = 1 : i64, tpu.core_type = #tpu.core_type<tc>, window_params = [{transform_indices = @transform_0, window_bounds = array<i64: 3, 3, 3, 16, 128>}, {transform_indices = @transform_1, window_bounds = array<i64: 3, 16, 128>}]} {
    %c0 = arith.constant 0 : index
    %c0_0 = arith.constant 0 : index
    %c0_1 = arith.constant 0 : index
    %c0_2 = arith.constant 0 : index
    %c0_3 = arith.constant 0 : index
    %0 = vector.load %arg1[%c0, %c0_0, %c0_1, %c0_2, %c0_3] : memref<3x3x3x16x128xbf16, #tpu.memory_space<vmem>>, vector<1x1x1x16x128xbf16>
    %1 = vector.shape_cast %0 : vector<1x1x1x16x128xbf16> to vector<16x128xbf16>
    %2 = arith.extf %1 : vector<16x128xbf16> to vector<16x128xf32>
    %c0_4 = arith.constant 0 : index
    %c0_5 = arith.constant 0 : index
    %c1 = arith.constant 1 : index
    %c0_6 = arith.constant 0 : index
    %c0_7 = arith.constant 0 : index
    %3 = vector.load %arg1[%c0_4, %c0_5, %c1, %c0_6, %c0_7] : memref<3x3x3x16x128xbf16, #tpu.memory_space<vmem>>, vector<1x1x1x16x128xbf16>
    %4 = vector.shape_cast %3 : vector<1x1x1x16x128xbf16> to vector<16x128xbf16>
    %5 = arith.extf %4 : vector<16x128xbf16> to vector<16x128xf32>
    %6 = arith.addf %2, %5 : vector<16x128xf32>
    %c0_8 = arith.constant 0 : index
    %c0_9 = arith.constant 0 : index
    %c2 = arith.constant 2 : index
    %c0_10 = arith.constant 0 : index
    %c0_11 = arith.constant 0 : index
    %7 = vector.load %arg1[%c0_8, %c0_9, %c2, %c0_10, %c0_11] : memref<3x3x3x16x128xbf16, #tpu.memory_space<vmem>>, vector<1x1x1x16x128xbf16>
    %8 = vector.shape_cast %7 : vector<1x1x1x16x128xbf16> to vector<16x128xbf16>
    %9 = arith.extf %8 : vector<16x128xbf16> to vector<16x128xf32>
    %10 = arith.addf %6, %9 : vector<16x128xf32>
    %cst = arith.constant 0.010416667 : f32
    %11 = vector.broadcast %cst : f32 to vector<16x128xf32>
    %12 = arith.mulf %10, %11 : vector<16x128xf32>
    %13 = arith.fptosi %12 : vector<16x128xf32> to vector<16x128xi32>
    %c0_12 = arith.constant 0 : index
    %c0_13 = arith.constant 0 : index
    %c0_14 = arith.constant 0 : index
    %14 = vector.load %arg3[%c0_12, %c0_13, %c0_14] : memref<9x16x128xi32, #tpu.memory_space<vmem>>, vector<1x16x128xi32>
    %15 = vector.shape_cast %14 : vector<1x16x128xi32> to vector<16x128xi32>
    %16 = vector.shape_cast %13 : vector<16x128xi32> to vector<1x16x128xi32>
    tpu.vector_store %arg3[%c0_12, %c0_13, %c0_14], %16 {strides = array<i32>} : memref<9x16x128xi32, #tpu.memory_space<vmem>>, vector<1x16x128xi32>,
    %c0_15 = arith.constant 0 : index
    %c1_16 = arith.constant 1 : index
    %c0_17 = arith.constant 0 : index
    %c0_18 = arith.constant 0 : index
    %c0_19 = arith.constant 0 : index
    %17 = vector.load %arg1[%c0_15, %c1_16, %c0_17, %c0_18, %c0_19] : memref<3x3x3x16x128xbf16, #tpu.memory_space<vmem>>, vector<1x1x1x16x128xbf16>
    %18 = vector.shape_cast %17 : vector<1x1x1x16x128xbf16> to vector<16x128xbf16>
    %19 = arith.extf %18 : vector<16x128xbf16> to vector<16x128xf32>
    %c0_20 = arith.constant 0 : index
    %c1_21 = arith.constant 1 : index
    %c1_22 = arith.constant 1 : index
    %c0_23 = arith.constant 0 : index
    %c0_24 = arith.constant 0 : index
    %20 = vector.load %arg1[%c0_20, %c1_21, %c1_22, %c0_23, %c0_24] : memref<3x3x3x16x128xbf16, #tpu.memory_space<vmem>>, vector<1x1x1x16x128xbf16>
    %21 = vector.shape_cast %20 : vector<1x1x1x16x128xbf16> to vector<16x128xbf16>
    %22 = arith.extf %21 : vector<16x128xbf16> to vector<16x128xf32>
    %23 = arith.addf %19, %22 : vector<16x128xf32>
    %c0_25 = arith.constant 0 : index
    %c1_26 = arith.constant 1 : index
    %c2_27 = arith.constant 2 : index
    %c0_28 = arith.constant 0 : index
    %c0_29 = arith.constant 0 : index
    %24 = vector.load %arg1[%c0_25, %c1_26, %c2_27, %c0_28, %c0_29] : memref<3x3x3x16x128xbf16, #tpu.memory_space<vmem>>, vector<1x1x1x16x128xbf16>
    %25 = vector.shape_cast %24 : vector<1x1x1x16x128xbf16> to vector<16x128xbf16>
    %26 = arith.extf %25 : vector<16x128xbf16> to vector<16x128xf32>
    %27 = arith.addf %23, %26 : vector<16x128xf32>
    %cst_30 = arith.constant 0.010416667 : f32
    %28 = vector.broadcast %cst_30 : f32 to vector<16x128xf32>
    %29 = arith.mulf %27, %28 : vector<16x128xf32>
    %30 = arith.fptosi %29 : vector<16x128xf32> to vector<16x128xi32>
    %c1_31 = arith.constant 1 : index
    %c0_32 = arith.constant 0 : index
    %c0_33 = arith.constant 0 : index
    %31 = vector.load %arg3[%c1_31, %c0_32, %c0_33] : memref<9x16x128xi32, #tpu.memory_space<vmem>>, vector<1x16x128xi32>
    %32 = vector.shape_cast %31 : vector<1x16x128xi32> to vector<16x128xi32>
    %33 = vector.shape_cast %30 : vector<16x128xi32> to vector<1x16x128xi32>
    tpu.vector_store %arg3[%c1_31, %c0_32, %c0_33], %33 {strides = array<i32>} : memref<9x16x128xi32, #tpu.memory_space<vmem>>, vector<1x16x128xi32>,
    %c0_34 = arith.constant 0 : index
    %c2_35 = arith.constant 2 : index
    %c0_36 = arith.constant 0 : index
    %c0_37 = arith.constant 0 : index
    %c0_38 = arith.constant 0 : index
    %34 = vector.load %arg1[%c0_34, %c2_35, %c0_36, %c0_37, %c0_38] : memref<3x3x3x16x128xbf16, #tpu.memory_space<vmem>>, vector<1x1x1x16x128xbf16>
    %35 = vector.shape_cast %34 : vector<1x1x1x16x128xbf16> to vector<16x128xbf16>
    %36 = arith.extf %35 : vector<16x128xbf16> to vector<16x128xf32>
    %c0_39 = arith.constant 0 : index
    %c2_40 = arith.constant 2 : index
    %c1_41 = arith.constant 1 : index
    %c0_42 = arith.constant 0 : index
    %c0_43 = arith.constant 0 : index
    %37 = vector.load %arg1[%c0_39, %c2_40, %c1_41, %c0_42, %c0_43] : memref<3x3x3x16x128xbf16, #tpu.memory_space<vmem>>, vector<1x1x1x16x128xbf16>
    %38 = vector.shape_cast %37 : vector<1x1x1x16x128xbf16> to vector<16x128xbf16>
    %39 = arith.extf %38 : vector<16x128xbf16> to vector<16x128xf32>
    %40 = arith.addf %36, %39 : vector<16x128xf32>
    %c0_44 = arith.constant 0 : index
    %c2_45 = arith.constant 2 : index
    %c2_46 = arith.constant 2 : index
    %c0_47 = arith.constant 0 : index
    %c0_48 = arith.constant 0 : index
    %41 = vector.load %arg1[%c0_44, %c2_45, %c2_46, %c0_47, %c0_48] : memref<3x3x3x16x128xbf16, #tpu.memory_space<vmem>>, vector<1x1x1x16x128xbf16>
    %42 = vector.shape_cast %41 : vector<1x1x1x16x128xbf16> to vector<16x128xbf16>
    %43 = arith.extf %42 : vector<16x128xbf16> to vector<16x128xf32>
    %44 = arith.addf %40, %43 : vector<16x128xf32>
    %cst_49 = arith.constant 0.010416667 : f32
    %45 = vector.broadcast %cst_49 : f32 to vector<16x128xf32>
    %46 = arith.mulf %44, %45 : vector<16x128xf32>
    %47 = arith.fptosi %46 : vector<16x128xf32> to vector<16x128xi32>
    %c2_50 = arith.constant 2 : index
    %c0_51 = arith.constant 0 : index
    %c0_52 = arith.constant 0 : index
    %48 = vector.load %arg3[%c2_50, %c0_51, %c0_52] : memref<9x16x128xi32, #tpu.memory_space<vmem>>, vector<1x16x128xi32>
    %49 = vector.shape_cast %48 : vector<1x16x128xi32> to vector<16x128xi32>
    %50 = vector.shape_cast %47 : vector<16x128xi32> to vector<1x16x128xi32>
    tpu.vector_store %arg3[%c2_50, %c0_51, %c0_52], %50 {strides = array<i32>} : memref<9x16x128xi32, #tpu.memory_space<vmem>>, vector<1x16x128xi32>,
    %c1_53 = arith.constant 1 : index
    %c0_54 = arith.constant 0 : index
    %c0_55 = arith.constant 0 : index
    %c0_56 = arith.constant 0 : index
    %c0_57 = arith.constant 0 : index
    %51 = vector.load %arg1[%c1_53, %c0_54, %c0_55, %c0_56, %c0_57] : memref<3x3x3x16x128xbf16, #tpu.memory_space<vmem>>, vector<1x1x1x16x128xbf16>
    %52 = vector.shape_cast %51 : vector<1x1x1x16x128xbf16> to vector<16x128xbf16>
    %53 = arith.extf %52 : vector<16x128xbf16> to vector<16x128xf32>
    %c1_58 = arith.constant 1 : index
    %c0_59 = arith.constant 0 : index
    %c1_60 = arith.constant 1 : index
    %c0_61 = arith.constant 0 : index
    %c0_62 = arith.constant 0 : index
    %54 = vector.load %arg1[%c1_58, %c0_59, %c1_60, %c0_61, %c0_62] : memref<3x3x3x16x128xbf16, #tpu.memory_space<vmem>>, vector<1x1x1x16x128xbf16>
    %55 = vector.shape_cast %54 : vector<1x1x1x16x128xbf16> to vector<16x128xbf16>
    %56 = arith.extf %55 : vector<16x128xbf16> to vector<16x128xf32>
    %57 = arith.addf %53, %56 : vector<16x128xf32>
    %c1_63 = arith.constant 1 : index
    %c0_64 = arith.constant 0 : index
    %c2_65 = arith.constant 2 : index
    %c0_66 = arith.constant 0 : index
    %c0_67 = arith.constant 0 : index
    %58 = vector.load %arg1[%c1_63, %c0_64, %c2_65, %c0_66, %c0_67] : memref<3x3x3x16x128xbf16, #tpu.memory_space<vmem>>, vector<1x1x1x16x128xbf16>
    %59 = vector.shape_cast %58 : vector<1x1x1x16x128xbf16> to vector<16x128xbf16>
    %60 = arith.extf %59 : vector<16x128xbf16> to vector<16x128xf32>
    %61 = arith.addf %57, %60 : vector<16x128xf32>
    %cst_68 = arith.constant 0.010416667 : f32
    %62 = vector.broadcast %cst_68 : f32 to vector<16x128xf32>
    %63 = arith.mulf %61, %62 : vector<16x128xf32>
    %64 = arith.fptosi %63 : vector<16x128xf32> to vector<16x128xi32>
    %c3 = arith.constant 3 : index
    %c0_69 = arith.constant 0 : index
    %c0_70 = arith.constant 0 : index
    %65 = vector.load %arg3[%c3, %c0_69, %c0_70] : memref<9x16x128xi32, #tpu.memory_space<vmem>>, vector<1x16x128xi32>
    %66 = vector.shape_cast %65 : vector<1x16x128xi32> to vector<16x128xi32>
    %67 = vector.shape_cast %64 : vector<16x128xi32> to vector<1x16x128xi32>
    tpu.vector_store %arg3[%c3, %c0_69, %c0_70], %67 {strides = array<i32>} : memref<9x16x128xi32, #tpu.memory_space<vmem>>, vector<1x16x128xi32>,
    %c1_71 = arith.constant 1 : index
    %c1_72 = arith.constant 1 : index
    %c0_73 = arith.constant 0 : index
    %c0_74 = arith.constant 0 : index
    %c0_75 = arith.constant 0 : index
    %68 = vector.load %arg1[%c1_71, %c1_72, %c0_73, %c0_74, %c0_75] : memref<3x3x3x16x128xbf16, #tpu.memory_space<vmem>>, vector<1x1x1x16x128xbf16>
    %69 = vector.shape_cast %68 : vector<1x1x1x16x128xbf16> to vector<16x128xbf16>
    %70 = arith.extf %69 : vector<16x128xbf16> to vector<16x128xf32>
    %c1_76 = arith.constant 1 : index
    %c1_77 = arith.constant 1 : index
    %c1_78 = arith.constant 1 : index
    %c0_79 = arith.constant 0 : index
    %c0_80 = arith.constant 0 : index
    %71 = vector.load %arg1[%c1_76, %c1_77, %c1_78, %c0_79, %c0_80] : memref<3x3x3x16x128xbf16, #tpu.memory_space<vmem>>, vector<1x1x1x16x128xbf16>
    %72 = vector.shape_cast %71 : vector<1x1x1x16x128xbf16> to vector<16x128xbf16>
    %73 = arith.extf %72 : vector<16x128xbf16> to vector<16x128xf32>
    %74 = arith.addf %70, %73 : vector<16x128xf32>
    %c1_81 = arith.constant 1 : index
    %c1_82 = arith.constant 1 : index
    %c2_83 = arith.constant 2 : index
    %c0_84 = arith.constant 0 : index
    %c0_85 = arith.constant 0 : index
    %75 = vector.load %arg1[%c1_81, %c1_82, %c2_83, %c0_84, %c0_85] : memref<3x3x3x16x128xbf16, #tpu.memory_space<vmem>>, vector<1x1x1x16x128xbf16>
    %76 = vector.shape_cast %75 : vector<1x1x1x16x128xbf16> to vector<16x128xbf16>
    %77 = arith.extf %76 : vector<16x128xbf16> to vector<16x128xf32>
    %78 = arith.addf %74, %77 : vector<16x128xf32>
    %cst_86 = arith.constant 0.010416667 : f32
    %79 = vector.broadcast %cst_86 : f32 to vector<16x128xf32>
    %80 = arith.mulf %78, %79 : vector<16x128xf32>
    %81 = arith.fptosi %80 : vector<16x128xf32> to vector<16x128xi32>
    %c4 = arith.constant 4 : index
    %c0_87 = arith.constant 0 : index
    %c0_88 = arith.constant 0 : index
    %82 = vector.load %arg3[%c4, %c0_87, %c0_88] : memref<9x16x128xi32, #tpu.memory_space<vmem>>, vector<1x16x128xi32>
    %83 = vector.shape_cast %82 : vector<1x16x128xi32> to vector<16x128xi32>
    %84 = vector.shape_cast %81 : vector<16x128xi32> to vector<1x16x128xi32>
    tpu.vector_store %arg3[%c4, %c0_87, %c0_88], %84 {strides = array<i32>} : memref<9x16x128xi32, #tpu.memory_space<vmem>>, vector<1x16x128xi32>,
    %c1_89 = arith.constant 1 : index
    %c2_90 = arith.constant 2 : index
    %c0_91 = arith.constant 0 : index
    %c0_92 = arith.constant 0 : index
    %c0_93 = arith.constant 0 : index
    %85 = vector.load %arg1[%c1_89, %c2_90, %c0_91, %c0_92, %c0_93] : memref<3x3x3x16x128xbf16, #tpu.memory_space<vmem>>, vector<1x1x1x16x128xbf16>
    %86 = vector.shape_cast %85 : vector<1x1x1x16x128xbf16> to vector<16x128xbf16>
    %87 = arith.extf %86 : vector<16x128xbf16> to vector<16x128xf32>
    %c1_94 = arith.constant 1 : index
    %c2_95 = arith.constant 2 : index
    %c1_96 = arith.constant 1 : index
    %c0_97 = arith.constant 0 : index
    %c0_98 = arith.constant 0 : index
    %88 = vector.load %arg1[%c1_94, %c2_95, %c1_96, %c0_97, %c0_98] : memref<3x3x3x16x128xbf16, #tpu.memory_space<vmem>>, vector<1x1x1x16x128xbf16>
    %89 = vector.shape_cast %88 : vector<1x1x1x16x128xbf16> to vector<16x128xbf16>
    %90 = arith.extf %89 : vector<16x128xbf16> to vector<16x128xf32>
    %91 = arith.addf %87, %90 : vector<16x128xf32>
    %c1_99 = arith.constant 1 : index
    %c2_100 = arith.constant 2 : index
    %c2_101 = arith.constant 2 : index
    %c0_102 = arith.constant 0 : index
    %c0_103 = arith.constant 0 : index
    %92 = vector.load %arg1[%c1_99, %c2_100, %c2_101, %c0_102, %c0_103] : memref<3x3x3x16x128xbf16, #tpu.memory_space<vmem>>, vector<1x1x1x16x128xbf16>
    %93 = vector.shape_cast %92 : vector<1x1x1x16x128xbf16> to vector<16x128xbf16>
    %94 = arith.extf %93 : vector<16x128xbf16> to vector<16x128xf32>
    %95 = arith.addf %91, %94 : vector<16x128xf32>
    %cst_104 = arith.constant 0.010416667 : f32
    %96 = vector.broadcast %cst_104 : f32 to vector<16x128xf32>
    %97 = arith.mulf %95, %96 : vector<16x128xf32>
    %98 = arith.fptosi %97 : vector<16x128xf32> to vector<16x128xi32>
    %c5 = arith.constant 5 : index
    %c0_105 = arith.constant 0 : index
    %c0_106 = arith.constant 0 : index
    %99 = vector.load %arg3[%c5, %c0_105, %c0_106] : memref<9x16x128xi32, #tpu.memory_space<vmem>>, vector<1x16x128xi32>
    %100 = vector.shape_cast %99 : vector<1x16x128xi32> to vector<16x128xi32>
    %101 = vector.shape_cast %98 : vector<16x128xi32> to vector<1x16x128xi32>
    tpu.vector_store %arg3[%c5, %c0_105, %c0_106], %101 {strides = array<i32>} : memref<9x16x128xi32, #tpu.memory_space<vmem>>, vector<1x16x128xi32>,
    %c2_107 = arith.constant 2 : index
    %c0_108 = arith.constant 0 : index
    %c0_109 = arith.constant 0 : index
    %c0_110 = arith.constant 0 : index
    %c0_111 = arith.constant 0 : index
    %102 = vector.load %arg1[%c2_107, %c0_108, %c0_109, %c0_110, %c0_111] : memref<3x3x3x16x128xbf16, #tpu.memory_space<vmem>>, vector<1x1x1x16x128xbf16>
    %103 = vector.shape_cast %102 : vector<1x1x1x16x128xbf16> to vector<16x128xbf16>
    %104 = arith.extf %103 : vector<16x128xbf16> to vector<16x128xf32>
    %c2_112 = arith.constant 2 : index
    %c0_113 = arith.constant 0 : index
    %c1_114 = arith.constant 1 : index
    %c0_115 = arith.constant 0 : index
    %c0_116 = arith.constant 0 : index
    %105 = vector.load %arg1[%c2_112, %c0_113, %c1_114, %c0_115, %c0_116] : memref<3x3x3x16x128xbf16, #tpu.memory_space<vmem>>, vector<1x1x1x16x128xbf16>
    %106 = vector.shape_cast %105 : vector<1x1x1x16x128xbf16> to vector<16x128xbf16>
    %107 = arith.extf %106 : vector<16x128xbf16> to vector<16x128xf32>
    %108 = arith.addf %104, %107 : vector<16x128xf32>
    %c2_117 = arith.constant 2 : index
    %c0_118 = arith.constant 0 : index
    %c2_119 = arith.constant 2 : index
    %c0_120 = arith.constant 0 : index
    %c0_121 = arith.constant 0 : index
    %109 = vector.load %arg1[%c2_117, %c0_118, %c2_119, %c0_120, %c0_121] : memref<3x3x3x16x128xbf16, #tpu.memory_space<vmem>>, vector<1x1x1x16x128xbf16>
    %110 = vector.shape_cast %109 : vector<1x1x1x16x128xbf16> to vector<16x128xbf16>
    %111 = arith.extf %110 : vector<16x128xbf16> to vector<16x128xf32>
    %112 = arith.addf %108, %111 : vector<16x128xf32>
    %cst_122 = arith.constant 0.010416667 : f32
    %113 = vector.broadcast %cst_122 : f32 to vector<16x128xf32>
    %114 = arith.mulf %112, %113 : vector<16x128xf32>
    %115 = arith.fptosi %114 : vector<16x128xf32> to vector<16x128xi32>
    %c6 = arith.constant 6 : index
    %c0_123 = arith.constant 0 : index
    %c0_124 = arith.constant 0 : index
    %116 = vector.load %arg3[%c6, %c0_123, %c0_124] : memref<9x16x128xi32, #tpu.memory_space<vmem>>, vector<1x16x128xi32>
    %117 = vector.shape_cast %116 : vector<1x16x128xi32> to vector<16x128xi32>
    %118 = vector.shape_cast %115 : vector<16x128xi32> to vector<1x16x128xi32>
    tpu.vector_store %arg3[%c6, %c0_123, %c0_124], %118 {strides = array<i32>} : memref<9x16x128xi32, #tpu.memory_space<vmem>>, vector<1x16x128xi32>,
    %c2_125 = arith.constant 2 : index
    %c1_126 = arith.constant 1 : index
    %c0_127 = arith.constant 0 : index
    %c0_128 = arith.constant 0 : index
    %c0_129 = arith.constant 0 : index
    %119 = vector.load %arg1[%c2_125, %c1_126, %c0_127, %c0_128, %c0_129] : memref<3x3x3x16x128xbf16, #tpu.memory_space<vmem>>, vector<1x1x1x16x128xbf16>
    %120 = vector.shape_cast %119 : vector<1x1x1x16x128xbf16> to vector<16x128xbf16>
    %121 = arith.extf %120 : vector<16x128xbf16> to vector<16x128xf32>
    %c2_130 = arith.constant 2 : index
    %c1_131 = arith.constant 1 : index
    %c1_132 = arith.constant 1 : index
    %c0_133 = arith.constant 0 : index
    %c0_134 = arith.constant 0 : index
    %122 = vector.load %arg1[%c2_130, %c1_131, %c1_132, %c0_133, %c0_134] : memref<3x3x3x16x128xbf16, #tpu.memory_space<vmem>>, vector<1x1x1x16x128xbf16>
    %123 = vector.shape_cast %122 : vector<1x1x1x16x128xbf16> to vector<16x128xbf16>
    %124 = arith.extf %123 : vector<16x128xbf16> to vector<16x128xf32>
    %125 = arith.addf %121, %124 : vector<16x128xf32>
    %c2_135 = arith.constant 2 : index
    %c1_136 = arith.constant 1 : index
    %c2_137 = arith.constant 2 : index
    %c0_138 = arith.constant 0 : index
    %c0_139 = arith.constant 0 : index
    %126 = vector.load %arg1[%c2_135, %c1_136, %c2_137, %c0_138, %c0_139] : memref<3x3x3x16x128xbf16, #tpu.memory_space<vmem>>, vector<1x1x1x16x128xbf16>
    %127 = vector.shape_cast %126 : vector<1x1x1x16x128xbf16> to vector<16x128xbf16>
    %128 = arith.extf %127 : vector<16x128xbf16> to vector<16x128xf32>
    %129 = arith.addf %125, %128 : vector<16x128xf32>
    %cst_140 = arith.constant 0.010416667 : f32
    %130 = vector.broadcast %cst_140 : f32 to vector<16x128xf32>
    %131 = arith.mulf %129, %130 : vector<16x128xf32>
    %132 = arith.fptosi %131 : vector<16x128xf32> to vector<16x128xi32>
    %c7 = arith.constant 7 : index
    %c0_141 = arith.constant 0 : index
    %c0_142 = arith.constant 0 : index
    %133 = vector.load %arg3[%c7, %c0_141, %c0_142] : memref<9x16x128xi32, #tpu.memory_space<vmem>>, vector<1x16x128xi32>
    %134 = vector.shape_cast %133 : vector<1x16x128xi32> to vector<16x128xi32>
    %135 = vector.shape_cast %132 : vector<16x128xi32> to vector<1x16x128xi32>
    tpu.vector_store %arg3[%c7, %c0_141, %c0_142], %135 {strides = array<i32>} : memref<9x16x128xi32, #tpu.memory_space<vmem>>, vector<1x16x128xi32>,
    %c2_143 = arith.constant 2 : index
    %c2_144 = arith.constant 2 : index
    %c0_145 = arith.constant 0 : index
    %c0_146 = arith.constant 0 : index
    %c0_147 = arith.constant 0 : index
    %136 = vector.load %arg1[%c2_143, %c2_144, %c0_145, %c0_146, %c0_147] : memref<3x3x3x16x128xbf16, #tpu.memory_space<vmem>>, vector<1x1x1x16x128xbf16>
    %137 = vector.shape_cast %136 : vector<1x1x1x16x128xbf16> to vector<16x128xbf16>
    %138 = arith.extf %137 : vector<16x128xbf16> to vector<16x128xf32>
    %c2_148 = arith.constant 2 : index
    %c2_149 = arith.constant 2 : index
    %c1_150 = arith.constant 1 : index
    %c0_151 = arith.constant 0 : index
    %c0_152 = arith.constant 0 : index
    %139 = vector.load %arg1[%c2_148, %c2_149, %c1_150, %c0_151, %c0_152] : memref<3x3x3x16x128xbf16, #tpu.memory_space<vmem>>, vector<1x1x1x16x128xbf16>
    %140 = vector.shape_cast %139 : vector<1x1x1x16x128xbf16> to vector<16x128xbf16>
    %141 = arith.extf %140 : vector<16x128xbf16> to vector<16x128xf32>
    %142 = arith.addf %138, %141 : vector<16x128xf32>
    %c2_153 = arith.constant 2 : index
    %c2_154 = arith.constant 2 : index
    %c2_155 = arith.constant 2 : index
    %c0_156 = arith.constant 0 : index
    %c0_157 = arith.constant 0 : index
    %143 = vector.load %arg1[%c2_153, %c2_154, %c2_155, %c0_156, %c0_157] : memref<3x3x3x16x128xbf16, #tpu.memory_space<vmem>>, vector<1x1x1x16x128xbf16>
    %144 = vector.shape_cast %143 : vector<1x1x1x16x128xbf16> to vector<16x128xbf16>
    %145 = arith.extf %144 : vector<16x128xbf16> to vector<16x128xf32>
    %146 = arith.addf %142, %145 : vector<16x128xf32>
    %cst_158 = arith.constant 0.010416667 : f32
    %147 = vector.broadcast %cst_158 : f32 to vector<16x128xf32>
    %148 = arith.mulf %146, %147 : vector<16x128xf32>
    %149 = arith.fptosi %148 : vector<16x128xf32> to vector<16x128xi32>
    %c8 = arith.constant 8 : index
    %c0_159 = arith.constant 0 : index
    %c0_160 = arith.constant 0 : index
    %150 = vector.load %arg3[%c8, %c0_159, %c0_160] : memref<9x16x128xi32, #tpu.memory_space<vmem>>, vector<1x16x128xi32>
    %151 = vector.shape_cast %150 : vector<1x16x128xi32> to vector<16x128xi32>
    %152 = vector.shape_cast %149 : vector<16x128xi32> to vector<1x16x128xi32>
    tpu.vector_store %arg3[%c8, %c0_159, %c0_160], %152 {strides = array<i32>} : memref<9x16x128xi32, #tpu.memory_space<vmem>>, vector<1x16x128xi32>,
    %cst_161 = arith.constant -1.000000e+00 : f32
    %153 = vector.broadcast %cst_161 : f32 to vector<16x128xf32>
    %c0_i32 = arith.constant 0 : i32
    %154 = vector.broadcast %c0_i32 : i32 to vector<16x128xi32>
    %cst_162 = arith.constant 0.000000e+00 : f32
    %155 = vector.broadcast %cst_162 : f32 to vector<16x128xf32>
    %c0_163 = arith.constant 0 : index
    %c0_164 = arith.constant 0 : index
    %c0_165 = arith.constant 0 : index
    %156 = vector.load %arg3[%c0_163, %c0_164, %c0_165] : memref<9x16x128xi32, #tpu.memory_space<vmem>>, vector<1x16x128xi32>
    %157 = vector.shape_cast %156 : vector<1x16x128xi32> to vector<16x128xi32>
    %c0_i32_166 = arith.constant 0 : i32
    %158 = vector.broadcast %c0_i32_166 : i32 to vector<16x128xi32>
    %159 = arith.cmpi eq, %157, %158 : vector<16x128xi32>
    %cst_167 = arith.constant 1.000000e+00 : f32
    %cst_168 = arith.constant 0.000000e+00 : f32
    %160 = vector.broadcast %cst_167 : f32 to vector<16x128xf32>
    %161 = vector.broadcast %cst_168 : f32 to vector<16x128xf32>
    %162 = arith.select %159, %160, %161 : vector<16x128xi1>, vector<16x128xf32>
    %163 = arith.addf %155, %162 : vector<16x128xf32>
    %c1_169 = arith.constant 1 : index
    %c0_170 = arith.constant 0 : index
    %c0_171 = arith.constant 0 : index
    %164 = vector.load %arg3[%c1_169, %c0_170, %c0_171] : memref<9x16x128xi32, #tpu.memory_space<vmem>>, vector<1x16x128xi32>
    %165 = vector.shape_cast %164 : vector<1x16x128xi32> to vector<16x128xi32>
    %c0_i32_172 = arith.constant 0 : i32
    %166 = vector.broadcast %c0_i32_172 : i32 to vector<16x128xi32>
    %167 = arith.cmpi eq, %165, %166 : vector<16x128xi32>
    %cst_173 = arith.constant 1.000000e+00 : f32
    %cst_174 = arith.constant 0.000000e+00 : f32
    %168 = vector.broadcast %cst_173 : f32 to vector<16x128xf32>
    %169 = vector.broadcast %cst_174 : f32 to vector<16x128xf32>
    %170 = arith.select %167, %168, %169 : vector<16x128xi1>, vector<16x128xf32>
    %171 = arith.addf %163, %170 : vector<16x128xf32>
    %c2_175 = arith.constant 2 : index
    %c0_176 = arith.constant 0 : index
    %c0_177 = arith.constant 0 : index
    %172 = vector.load %arg3[%c2_175, %c0_176, %c0_177] : memref<9x16x128xi32, #tpu.memory_space<vmem>>, vector<1x16x128xi32>
    %173 = vector.shape_cast %172 : vector<1x16x128xi32> to vector<16x128xi32>
    %c0_i32_178 = arith.constant 0 : i32
    %174 = vector.broadcast %c0_i32_178 : i32 to vector<16x128xi32>
    %175 = arith.cmpi eq, %173, %174 : vector<16x128xi32>
    %cst_179 = arith.constant 1.000000e+00 : f32
    %cst_180 = arith.constant 0.000000e+00 : f32
    %176 = vector.broadcast %cst_179 : f32 to vector<16x128xf32>
    %177 = vector.broadcast %cst_180 : f32 to vector<16x128xf32>
    %178 = arith.select %175, %176, %177 : vector<16x128xi1>, vector<16x128xf32>
    %179 = arith.addf %171, %178 : vector<16x128xf32>
    %c3_181 = arith.constant 3 : index
    %c0_182 = arith.constant 0 : index
    %c0_183 = arith.constant 0 : index
    %180 = vector.load %arg3[%c3_181, %c0_182, %c0_183] : memref<9x16x128xi32, #tpu.memory_space<vmem>>, vector<1x16x128xi32>
    %181 = vector.shape_cast %180 : vector<1x16x128xi32> to vector<16x128xi32>
    %c0_i32_184 = arith.constant 0 : i32
    %182 = vector.broadcast %c0_i32_184 : i32 to vector<16x128xi32>
    %183 = arith.cmpi eq, %181, %182 : vector<16x128xi32>
    %cst_185 = arith.constant 1.000000e+00 : f32
    %cst_186 = arith.constant 0.000000e+00 : f32
    %184 = vector.broadcast %cst_185 : f32 to vector<16x128xf32>
    %185 = vector.broadcast %cst_186 : f32 to vector<16x128xf32>
    %186 = arith.select %183, %184, %185 : vector<16x128xi1>, vector<16x128xf32>
    %187 = arith.addf %179, %186 : vector<16x128xf32>
    %c4_187 = arith.constant 4 : index
    %c0_188 = arith.constant 0 : index
    %c0_189 = arith.constant 0 : index
    %188 = vector.load %arg3[%c4_187, %c0_188, %c0_189] : memref<9x16x128xi32, #tpu.memory_space<vmem>>, vector<1x16x128xi32>
    %189 = vector.shape_cast %188 : vector<1x16x128xi32> to vector<16x128xi32>
    %c0_i32_190 = arith.constant 0 : i32
    %190 = vector.broadcast %c0_i32_190 : i32 to vector<16x128xi32>
    %191 = arith.cmpi eq, %189, %190 : vector<16x128xi32>
    %cst_191 = arith.constant 1.000000e+00 : f32
    %cst_192 = arith.constant 0.000000e+00 : f32
    %192 = vector.broadcast %cst_191 : f32 to vector<16x128xf32>
    %193 = vector.broadcast %cst_192 : f32 to vector<16x128xf32>
    %194 = arith.select %191, %192, %193 : vector<16x128xi1>, vector<16x128xf32>
    %195 = arith.addf %187, %194 : vector<16x128xf32>
    %c5_193 = arith.constant 5 : index
    %c0_194 = arith.constant 0 : index
    %c0_195 = arith.constant 0 : index
    %196 = vector.load %arg3[%c5_193, %c0_194, %c0_195] : memref<9x16x128xi32, #tpu.memory_space<vmem>>, vector<1x16x128xi32>
    %197 = vector.shape_cast %196 : vector<1x16x128xi32> to vector<16x128xi32>
    %c0_i32_196 = arith.constant 0 : i32
    %198 = vector.broadcast %c0_i32_196 : i32 to vector<16x128xi32>
    %199 = arith.cmpi eq, %197, %198 : vector<16x128xi32>
    %cst_197 = arith.constant 1.000000e+00 : f32
    %cst_198 = arith.constant 0.000000e+00 : f32
    %200 = vector.broadcast %cst_197 : f32 to vector<16x128xf32>
    %201 = vector.broadcast %cst_198 : f32 to vector<16x128xf32>
    %202 = arith.select %199, %200, %201 : vector<16x128xi1>, vector<16x128xf32>
    %203 = arith.addf %195, %202 : vector<16x128xf32>
    %c6_199 = arith.constant 6 : index
    %c0_200 = arith.constant 0 : index
    %c0_201 = arith.constant 0 : index
    %204 = vector.load %arg3[%c6_199, %c0_200, %c0_201] : memref<9x16x128xi32, #tpu.memory_space<vmem>>, vector<1x16x128xi32>
    %205 = vector.shape_cast %204 : vector<1x16x128xi32> to vector<16x128xi32>
    %c0_i32_202 = arith.constant 0 : i32
    %206 = vector.broadcast %c0_i32_202 : i32 to vector<16x128xi32>
    %207 = arith.cmpi eq, %205, %206 : vector<16x128xi32>
    %cst_203 = arith.constant 1.000000e+00 : f32
    %cst_204 = arith.constant 0.000000e+00 : f32
    %208 = vector.broadcast %cst_203 : f32 to vector<16x128xf32>
    %209 = vector.broadcast %cst_204 : f32 to vector<16x128xf32>
    %210 = arith.select %207, %208, %209 : vector<16x128xi1>, vector<16x128xf32>
    %211 = arith.addf %203, %210 : vector<16x128xf32>
    %c7_205 = arith.constant 7 : index
    %c0_206 = arith.constant 0 : index
    %c0_207 = arith.constant 0 : index
    %212 = vector.load %arg3[%c7_205, %c0_206, %c0_207] : memref<9x16x128xi32, #tpu.memory_space<vmem>>, vector<1x16x128xi32>
    %213 = vector.shape_cast %212 : vector<1x16x128xi32> to vector<16x128xi32>
    %c0_i32_208 = arith.constant 0 : i32
    %214 = vector.broadcast %c0_i32_208 : i32 to vector<16x128xi32>
    %215 = arith.cmpi eq, %213, %214 : vector<16x128xi32>
    %cst_209 = arith.constant 1.000000e+00 : f32
    %cst_210 = arith.constant 0.000000e+00 : f32
    %216 = vector.broadcast %cst_209 : f32 to vector<16x128xf32>
    %217 = vector.broadcast %cst_210 : f32 to vector<16x128xf32>
    %218 = arith.select %215, %216, %217 : vector<16x128xi1>, vector<16x128xf32>
    %219 = arith.addf %211, %218 : vector<16x128xf32>
    %c8_211 = arith.constant 8 : index
    %c0_212 = arith.constant 0 : index
    %c0_213 = arith.constant 0 : index
    %220 = vector.load %arg3[%c8_211, %c0_212, %c0_213] : memref<9x16x128xi32, #tpu.memory_space<vmem>>, vector<1x16x128xi32>
    %221 = vector.shape_cast %220 : vector<1x16x128xi32> to vector<16x128xi32>
    %c0_i32_214 = arith.constant 0 : i32
    %222 = vector.broadcast %c0_i32_214 : i32 to vector<16x128xi32>
    %223 = arith.cmpi eq, %221, %222 : vector<16x128xi32>
    %cst_215 = arith.constant 1.000000e+00 : f32
    %cst_216 = arith.constant 0.000000e+00 : f32
    %224 = vector.broadcast %cst_215 : f32 to vector<16x128xf32>
    %225 = vector.broadcast %cst_216 : f32 to vector<16x128xf32>
    %226 = arith.select %223, %224, %225 : vector<16x128xi1>, vector<16x128xf32>
    %227 = arith.addf %219, %226 : vector<16x128xf32>
    %228 = arith.cmpf ogt, %227, %153 : vector<16x128xf32>
    %229 = arith.select %228, %227, %153 : vector<16x128xi1>, vector<16x128xf32>
    %c0_i32_217 = arith.constant 0 : i32
    %230 = vector.broadcast %c0_i32_217 : i32 to vector<16x128xi32>
    %231 = arith.select %228, %230, %154 : vector<16x128xi1>, vector<16x128xi32>
    %cst_218 = arith.constant 0.000000e+00 : f32
    %232 = vector.broadcast %cst_218 : f32 to vector<16x128xf32>
    %c0_219 = arith.constant 0 : index
    %c0_220 = arith.constant 0 : index
    %c0_221 = arith.constant 0 : index
    %233 = vector.load %arg3[%c0_219, %c0_220, %c0_221] : memref<9x16x128xi32, #tpu.memory_space<vmem>>, vector<1x16x128xi32>
    %234 = vector.shape_cast %233 : vector<1x16x128xi32> to vector<16x128xi32>
    %c1_i32 = arith.constant 1 : i32
    %235 = vector.broadcast %c1_i32 : i32 to vector<16x128xi32>
    %236 = arith.cmpi eq, %234, %235 : vector<16x128xi32>
    %cst_222 = arith.constant 1.000000e+00 : f32
    %cst_223 = arith.constant 0.000000e+00 : f32
    %237 = vector.broadcast %cst_222 : f32 to vector<16x128xf32>
    %238 = vector.broadcast %cst_223 : f32 to vector<16x128xf32>
    %239 = arith.select %236, %237, %238 : vector<16x128xi1>, vector<16x128xf32>
    %240 = arith.addf %232, %239 : vector<16x128xf32>
    %c1_224 = arith.constant 1 : index
    %c0_225 = arith.constant 0 : index
    %c0_226 = arith.constant 0 : index
    %241 = vector.load %arg3[%c1_224, %c0_225, %c0_226] : memref<9x16x128xi32, #tpu.memory_space<vmem>>, vector<1x16x128xi32>
    %242 = vector.shape_cast %241 : vector<1x16x128xi32> to vector<16x128xi32>
    %c1_i32_227 = arith.constant 1 : i32
    %243 = vector.broadcast %c1_i32_227 : i32 to vector<16x128xi32>
    %244 = arith.cmpi eq, %242, %243 : vector<16x128xi32>
    %cst_228 = arith.constant 1.000000e+00 : f32
    %cst_229 = arith.constant 0.000000e+00 : f32
    %245 = vector.broadcast %cst_228 : f32 to vector<16x128xf32>
    %246 = vector.broadcast %cst_229 : f32 to vector<16x128xf32>
    %247 = arith.select %244, %245, %246 : vector<16x128xi1>, vector<16x128xf32>
    %248 = arith.addf %240, %247 : vector<16x128xf32>
    %c2_230 = arith.constant 2 : index
    %c0_231 = arith.constant 0 : index
    %c0_232 = arith.constant 0 : index
    %249 = vector.load %arg3[%c2_230, %c0_231, %c0_232] : memref<9x16x128xi32, #tpu.memory_space<vmem>>, vector<1x16x128xi32>
    %250 = vector.shape_cast %249 : vector<1x16x128xi32> to vector<16x128xi32>
    %c1_i32_233 = arith.constant 1 : i32
    %251 = vector.broadcast %c1_i32_233 : i32 to vector<16x128xi32>
    %252 = arith.cmpi eq, %250, %251 : vector<16x128xi32>
    %cst_234 = arith.constant 1.000000e+00 : f32
    %cst_235 = arith.constant 0.000000e+00 : f32
    %253 = vector.broadcast %cst_234 : f32 to vector<16x128xf32>
    %254 = vector.broadcast %cst_235 : f32 to vector<16x128xf32>
    %255 = arith.select %252, %253, %254 : vector<16x128xi1>, vector<16x128xf32>
    %256 = arith.addf %248, %255 : vector<16x128xf32>
    %c3_236 = arith.constant 3 : index
    %c0_237 = arith.constant 0 : index
    %c0_238 = arith.constant 0 : index
    %257 = vector.load %arg3[%c3_236, %c0_237, %c0_238] : memref<9x16x128xi32, #tpu.memory_space<vmem>>, vector<1x16x128xi32>
    %258 = vector.shape_cast %257 : vector<1x16x128xi32> to vector<16x128xi32>
    %c1_i32_239 = arith.constant 1 : i32
    %259 = vector.broadcast %c1_i32_239 : i32 to vector<16x128xi32>
    %260 = arith.cmpi eq, %258, %259 : vector<16x128xi32>
    %cst_240 = arith.constant 1.000000e+00 : f32
    %cst_241 = arith.constant 0.000000e+00 : f32
    %261 = vector.broadcast %cst_240 : f32 to vector<16x128xf32>
    %262 = vector.broadcast %cst_241 : f32 to vector<16x128xf32>
    %263 = arith.select %260, %261, %262 : vector<16x128xi1>, vector<16x128xf32>
    %264 = arith.addf %256, %263 : vector<16x128xf32>
    %c4_242 = arith.constant 4 : index
    %c0_243 = arith.constant 0 : index
    %c0_244 = arith.constant 0 : index
    %265 = vector.load %arg3[%c4_242, %c0_243, %c0_244] : memref<9x16x128xi32, #tpu.memory_space<vmem>>, vector<1x16x128xi32>
    %266 = vector.shape_cast %265 : vector<1x16x128xi32> to vector<16x128xi32>
    %c1_i32_245 = arith.constant 1 : i32
    %267 = vector.broadcast %c1_i32_245 : i32 to vector<16x128xi32>
    %268 = arith.cmpi eq, %266, %267 : vector<16x128xi32>
    %cst_246 = arith.constant 1.000000e+00 : f32
    %cst_247 = arith.constant 0.000000e+00 : f32
    %269 = vector.broadcast %cst_246 : f32 to vector<16x128xf32>
    %270 = vector.broadcast %cst_247 : f32 to vector<16x128xf32>
    %271 = arith.select %268, %269, %270 : vector<16x128xi1>, vector<16x128xf32>
    %272 = arith.addf %264, %271 : vector<16x128xf32>
    %c5_248 = arith.constant 5 : index
    %c0_249 = arith.constant 0 : index
    %c0_250 = arith.constant 0 : index
    %273 = vector.load %arg3[%c5_248, %c0_249, %c0_250] : memref<9x16x128xi32, #tpu.memory_space<vmem>>, vector<1x16x128xi32>
    %274 = vector.shape_cast %273 : vector<1x16x128xi32> to vector<16x128xi32>
    %c1_i32_251 = arith.constant 1 : i32
    %275 = vector.broadcast %c1_i32_251 : i32 to vector<16x128xi32>
    %276 = arith.cmpi eq, %274, %275 : vector<16x128xi32>
    %cst_252 = arith.constant 1.000000e+00 : f32
    %cst_253 = arith.constant 0.000000e+00 : f32
    %277 = vector.broadcast %cst_252 : f32 to vector<16x128xf32>
    %278 = vector.broadcast %cst_253 : f32 to vector<16x128xf32>
    %279 = arith.select %276, %277, %278 : vector<16x128xi1>, vector<16x128xf32>
    %280 = arith.addf %272, %279 : vector<16x128xf32>
    %c6_254 = arith.constant 6 : index
    %c0_255 = arith.constant 0 : index
    %c0_256 = arith.constant 0 : index
    %281 = vector.load %arg3[%c6_254, %c0_255, %c0_256] : memref<9x16x128xi32, #tpu.memory_space<vmem>>, vector<1x16x128xi32>
    %282 = vector.shape_cast %281 : vector<1x16x128xi32> to vector<16x128xi32>
    %c1_i32_257 = arith.constant 1 : i32
    %283 = vector.broadcast %c1_i32_257 : i32 to vector<16x128xi32>
    %284 = arith.cmpi eq, %282, %283 : vector<16x128xi32>
    %cst_258 = arith.constant 1.000000e+00 : f32
    %cst_259 = arith.constant 0.000000e+00 : f32
    %285 = vector.broadcast %cst_258 : f32 to vector<16x128xf32>
    %286 = vector.broadcast %cst_259 : f32 to vector<16x128xf32>
    %287 = arith.select %284, %285, %286 : vector<16x128xi1>, vector<16x128xf32>
    %288 = arith.addf %280, %287 : vector<16x128xf32>
    %c7_260 = arith.constant 7 : index
    %c0_261 = arith.constant 0 : index
    %c0_262 = arith.constant 0 : index
    %289 = vector.load %arg3[%c7_260, %c0_261, %c0_262] : memref<9x16x128xi32, #tpu.memory_space<vmem>>, vector<1x16x128xi32>
    %290 = vector.shape_cast %289 : vector<1x16x128xi32> to vector<16x128xi32>
    %c1_i32_263 = arith.constant 1 : i32
    %291 = vector.broadcast %c1_i32_263 : i32 to vector<16x128xi32>
    %292 = arith.cmpi eq, %290, %291 : vector<16x128xi32>
    %cst_264 = arith.constant 1.000000e+00 : f32
    %cst_265 = arith.constant 0.000000e+00 : f32
    %293 = vector.broadcast %cst_264 : f32 to vector<16x128xf32>
    %294 = vector.broadcast %cst_265 : f32 to vector<16x128xf32>
    %295 = arith.select %292, %293, %294 : vector<16x128xi1>, vector<16x128xf32>
    %296 = arith.addf %288, %295 : vector<16x128xf32>
    %c8_266 = arith.constant 8 : index
    %c0_267 = arith.constant 0 : index
    %c0_268 = arith.constant 0 : index
    %297 = vector.load %arg3[%c8_266, %c0_267, %c0_268] : memref<9x16x128xi32, #tpu.memory_space<vmem>>, vector<1x16x128xi32>
    %298 = vector.shape_cast %297 : vector<1x16x128xi32> to vector<16x128xi32>
    %c1_i32_269 = arith.constant 1 : i32
    %299 = vector.broadcast %c1_i32_269 : i32 to vector<16x128xi32>
    %300 = arith.cmpi eq, %298, %299 : vector<16x128xi32>
    %cst_270 = arith.constant 1.000000e+00 : f32
    %cst_271 = arith.constant 0.000000e+00 : f32
    %301 = vector.broadcast %cst_270 : f32 to vector<16x128xf32>
    %302 = vector.broadcast %cst_271 : f32 to vector<16x128xf32>
    %303 = arith.select %300, %301, %302 : vector<16x128xi1>, vector<16x128xf32>
    %304 = arith.addf %296, %303 : vector<16x128xf32>
    %305 = arith.cmpf ogt, %304, %229 : vector<16x128xf32>
    %306 = arith.select %305, %304, %229 : vector<16x128xi1>, vector<16x128xf32>
    %c1_i32_272 = arith.constant 1 : i32
    %307 = vector.broadcast %c1_i32_272 : i32 to vector<16x128xi32>
    %308 = arith.select %305, %307, %231 : vector<16x128xi1>, vector<16x128xi32>
    %cst_273 = arith.constant 0.000000e+00 : f32
    %309 = vector.broadcast %cst_273 : f32 to vector<16x128xf32>
    %c0_274 = arith.constant 0 : index
    %c0_275 = arith.constant 0 : index
    %c0_276 = arith.constant 0 : index
    %310 = vector.load %arg3[%c0_274, %c0_275, %c0_276] : memref<9x16x128xi32, #tpu.memory_space<vmem>>, vector<1x16x128xi32>
    %311 = vector.shape_cast %310 : vector<1x16x128xi32> to vector<16x128xi32>
    %c2_i32 = arith.constant 2 : i32
    %312 = vector.broadcast %c2_i32 : i32 to vector<16x128xi32>
    %313 = arith.cmpi eq, %311, %312 : vector<16x128xi32>
    %cst_277 = arith.constant 1.000000e+00 : f32
    %cst_278 = arith.constant 0.000000e+00 : f32
    %314 = vector.broadcast %cst_277 : f32 to vector<16x128xf32>
    %315 = vector.broadcast %cst_278 : f32 to vector<16x128xf32>
    %316 = arith.select %313, %314, %315 : vector<16x128xi1>, vector<16x128xf32>
    %317 = arith.addf %309, %316 : vector<16x128xf32>
    %c1_279 = arith.constant 1 : index
    %c0_280 = arith.constant 0 : index
    %c0_281 = arith.constant 0 : index
    %318 = vector.load %arg3[%c1_279, %c0_280, %c0_281] : memref<9x16x128xi32, #tpu.memory_space<vmem>>, vector<1x16x128xi32>
    %319 = vector.shape_cast %318 : vector<1x16x128xi32> to vector<16x128xi32>
    %c2_i32_282 = arith.constant 2 : i32
    %320 = vector.broadcast %c2_i32_282 : i32 to vector<16x128xi32>
    %321 = arith.cmpi eq, %319, %320 : vector<16x128xi32>
    %cst_283 = arith.constant 1.000000e+00 : f32
    %cst_284 = arith.constant 0.000000e+00 : f32
    %322 = vector.broadcast %cst_283 : f32 to vector<16x128xf32>
    %323 = vector.broadcast %cst_284 : f32 to vector<16x128xf32>
    %324 = arith.select %321, %322, %323 : vector<16x128xi1>, vector<16x128xf32>
    %325 = arith.addf %317, %324 : vector<16x128xf32>
    %c2_285 = arith.constant 2 : index
    %c0_286 = arith.constant 0 : index
    %c0_287 = arith.constant 0 : index
    %326 = vector.load %arg3[%c2_285, %c0_286, %c0_287] : memref<9x16x128xi32, #tpu.memory_space<vmem>>, vector<1x16x128xi32>
    %327 = vector.shape_cast %326 : vector<1x16x128xi32> to vector<16x128xi32>
    %c2_i32_288 = arith.constant 2 : i32
    %328 = vector.broadcast %c2_i32_288 : i32 to vector<16x128xi32>
    %329 = arith.cmpi eq, %327, %328 : vector<16x128xi32>
    %cst_289 = arith.constant 1.000000e+00 : f32
    %cst_290 = arith.constant 0.000000e+00 : f32
    %330 = vector.broadcast %cst_289 : f32 to vector<16x128xf32>
    %331 = vector.broadcast %cst_290 : f32 to vector<16x128xf32>
    %332 = arith.select %329, %330, %331 : vector<16x128xi1>, vector<16x128xf32>
    %333 = arith.addf %325, %332 : vector<16x128xf32>
    %c3_291 = arith.constant 3 : index
    %c0_292 = arith.constant 0 : index
    %c0_293 = arith.constant 0 : index
    %334 = vector.load %arg3[%c3_291, %c0_292, %c0_293] : memref<9x16x128xi32, #tpu.memory_space<vmem>>, vector<1x16x128xi32>
    %335 = vector.shape_cast %334 : vector<1x16x128xi32> to vector<16x128xi32>
    %c2_i32_294 = arith.constant 2 : i32
    %336 = vector.broadcast %c2_i32_294 : i32 to vector<16x128xi32>
    %337 = arith.cmpi eq, %335, %336 : vector<16x128xi32>
    %cst_295 = arith.constant 1.000000e+00 : f32
    %cst_296 = arith.constant 0.000000e+00 : f32
    %338 = vector.broadcast %cst_295 : f32 to vector<16x128xf32>
    %339 = vector.broadcast %cst_296 : f32 to vector<16x128xf32>
    %340 = arith.select %337, %338, %339 : vector<16x128xi1>, vector<16x128xf32>
    %341 = arith.addf %333, %340 : vector<16x128xf32>
    %c4_297 = arith.constant 4 : index
    %c0_298 = arith.constant 0 : index
    %c0_299 = arith.constant 0 : index
    %342 = vector.load %arg3[%c4_297, %c0_298, %c0_299] : memref<9x16x128xi32, #tpu.memory_space<vmem>>, vector<1x16x128xi32>
    %343 = vector.shape_cast %342 : vector<1x16x128xi32> to vector<16x128xi32>
    %c2_i32_300 = arith.constant 2 : i32
    %344 = vector.broadcast %c2_i32_300 : i32 to vector<16x128xi32>
    %345 = arith.cmpi eq, %343, %344 : vector<16x128xi32>
    %cst_301 = arith.constant 1.000000e+00 : f32
    %cst_302 = arith.constant 0.000000e+00 : f32
    %346 = vector.broadcast %cst_301 : f32 to vector<16x128xf32>
    %347 = vector.broadcast %cst_302 : f32 to vector<16x128xf32>
    %348 = arith.select %345, %346, %347 : vector<16x128xi1>, vector<16x128xf32>
    %349 = arith.addf %341, %348 : vector<16x128xf32>
    %c5_303 = arith.constant 5 : index
    %c0_304 = arith.constant 0 : index
    %c0_305 = arith.constant 0 : index
    %350 = vector.load %arg3[%c5_303, %c0_304, %c0_305] : memref<9x16x128xi32, #tpu.memory_space<vmem>>, vector<1x16x128xi32>
    %351 = vector.shape_cast %350 : vector<1x16x128xi32> to vector<16x128xi32>
    %c2_i32_306 = arith.constant 2 : i32
    %352 = vector.broadcast %c2_i32_306 : i32 to vector<16x128xi32>
    %353 = arith.cmpi eq, %351, %352 : vector<16x128xi32>
    %cst_307 = arith.constant 1.000000e+00 : f32
    %cst_308 = arith.constant 0.000000e+00 : f32
    %354 = vector.broadcast %cst_307 : f32 to vector<16x128xf32>
    %355 = vector.broadcast %cst_308 : f32 to vector<16x128xf32>
    %356 = arith.select %353, %354, %355 : vector<16x128xi1>, vector<16x128xf32>
    %357 = arith.addf %349, %356 : vector<16x128xf32>
    %c6_309 = arith.constant 6 : index
    %c0_310 = arith.constant 0 : index
    %c0_311 = arith.constant 0 : index
    %358 = vector.load %arg3[%c6_309, %c0_310, %c0_311] : memref<9x16x128xi32, #tpu.memory_space<vmem>>, vector<1x16x128xi32>
    %359 = vector.shape_cast %358 : vector<1x16x128xi32> to vector<16x128xi32>
    %c2_i32_312 = arith.constant 2 : i32
    %360 = vector.broadcast %c2_i32_312 : i32 to vector<16x128xi32>
    %361 = arith.cmpi eq, %359, %360 : vector<16x128xi32>
    %cst_313 = arith.constant 1.000000e+00 : f32
    %cst_314 = arith.constant 0.000000e+00 : f32
    %362 = vector.broadcast %cst_313 : f32 to vector<16x128xf32>
    %363 = vector.broadcast %cst_314 : f32 to vector<16x128xf32>
    %364 = arith.select %361, %362, %363 : vector<16x128xi1>, vector<16x128xf32>
    %365 = arith.addf %357, %364 : vector<16x128xf32>
    %c7_315 = arith.constant 7 : index
    %c0_316 = arith.constant 0 : index
    %c0_317 = arith.constant 0 : index
    %366 = vector.load %arg3[%c7_315, %c0_316, %c0_317] : memref<9x16x128xi32, #tpu.memory_space<vmem>>, vector<1x16x128xi32>
    %367 = vector.shape_cast %366 : vector<1x16x128xi32> to vector<16x128xi32>
    %c2_i32_318 = arith.constant 2 : i32
    %368 = vector.broadcast %c2_i32_318 : i32 to vector<16x128xi32>
    %369 = arith.cmpi eq, %367, %368 : vector<16x128xi32>
    %cst_319 = arith.constant 1.000000e+00 : f32
    %cst_320 = arith.constant 0.000000e+00 : f32
    %370 = vector.broadcast %cst_319 : f32 to vector<16x128xf32>
    %371 = vector.broadcast %cst_320 : f32 to vector<16x128xf32>
    %372 = arith.select %369, %370, %371 : vector<16x128xi1>, vector<16x128xf32>
    %373 = arith.addf %365, %372 : vector<16x128xf32>
    %c8_321 = arith.constant 8 : index
    %c0_322 = arith.constant 0 : index
    %c0_323 = arith.constant 0 : index
    %374 = vector.load %arg3[%c8_321, %c0_322, %c0_323] : memref<9x16x128xi32, #tpu.memory_space<vmem>>, vector<1x16x128xi32>
    %375 = vector.shape_cast %374 : vector<1x16x128xi32> to vector<16x128xi32>
    %c2_i32_324 = arith.constant 2 : i32
    %376 = vector.broadcast %c2_i32_324 : i32 to vector<16x128xi32>
    %377 = arith.cmpi eq, %375, %376 : vector<16x128xi32>
    %cst_325 = arith.constant 1.000000e+00 : f32
    %cst_326 = arith.constant 0.000000e+00 : f32
    %378 = vector.broadcast %cst_325 : f32 to vector<16x128xf32>
    %379 = vector.broadcast %cst_326 : f32 to vector<16x128xf32>
    %380 = arith.select %377, %378, %379 : vector<16x128xi1>, vector<16x128xf32>
    %381 = arith.addf %373, %380 : vector<16x128xf32>
    %382 = arith.cmpf ogt, %381, %306 : vector<16x128xf32>
    %383 = arith.select %382, %381, %306 : vector<16x128xi1>, vector<16x128xf32>
    %c2_i32_327 = arith.constant 2 : i32
    %384 = vector.broadcast %c2_i32_327 : i32 to vector<16x128xi32>
    %385 = arith.select %382, %384, %308 : vector<16x128xi1>, vector<16x128xi32>
    %cst_328 = arith.constant 0.000000e+00 : f32
    %386 = vector.broadcast %cst_328 : f32 to vector<16x128xf32>
    %c0_329 = arith.constant 0 : index
    %c0_330 = arith.constant 0 : index
    %c0_331 = arith.constant 0 : index
    %387 = vector.load %arg3[%c0_329, %c0_330, %c0_331] : memref<9x16x128xi32, #tpu.memory_space<vmem>>, vector<1x16x128xi32>
    %388 = vector.shape_cast %387 : vector<1x16x128xi32> to vector<16x128xi32>
    %c3_i32 = arith.constant 3 : i32
    %389 = vector.broadcast %c3_i32 : i32 to vector<16x128xi32>
    %390 = arith.cmpi eq, %388, %389 : vector<16x128xi32>
    %cst_332 = arith.constant 1.000000e+00 : f32
    %cst_333 = arith.constant 0.000000e+00 : f32
    %391 = vector.broadcast %cst_332 : f32 to vector<16x128xf32>
    %392 = vector.broadcast %cst_333 : f32 to vector<16x128xf32>
    %393 = arith.select %390, %391, %392 : vector<16x128xi1>, vector<16x128xf32>
    %394 = arith.addf %386, %393 : vector<16x128xf32>
    %c1_334 = arith.constant 1 : index
    %c0_335 = arith.constant 0 : index
    %c0_336 = arith.constant 0 : index
    %395 = vector.load %arg3[%c1_334, %c0_335, %c0_336] : memref<9x16x128xi32, #tpu.memory_space<vmem>>, vector<1x16x128xi32>
    %396 = vector.shape_cast %395 : vector<1x16x128xi32> to vector<16x128xi32>
    %c3_i32_337 = arith.constant 3 : i32
    %397 = vector.broadcast %c3_i32_337 : i32 to vector<16x128xi32>
    %398 = arith.cmpi eq, %396, %397 : vector<16x128xi32>
    %cst_338 = arith.constant 1.000000e+00 : f32
    %cst_339 = arith.constant 0.000000e+00 : f32
    %399 = vector.broadcast %cst_338 : f32 to vector<16x128xf32>
    %400 = vector.broadcast %cst_339 : f32 to vector<16x128xf32>
    %401 = arith.select %398, %399, %400 : vector<16x128xi1>, vector<16x128xf32>
    %402 = arith.addf %394, %401 : vector<16x128xf32>
    %c2_340 = arith.constant 2 : index
    %c0_341 = arith.constant 0 : index
    %c0_342 = arith.constant 0 : index
    %403 = vector.load %arg3[%c2_340, %c0_341, %c0_342] : memref<9x16x128xi32, #tpu.memory_space<vmem>>, vector<1x16x128xi32>
    %404 = vector.shape_cast %403 : vector<1x16x128xi32> to vector<16x128xi32>
    %c3_i32_343 = arith.constant 3 : i32
    %405 = vector.broadcast %c3_i32_343 : i32 to vector<16x128xi32>
    %406 = arith.cmpi eq, %404, %405 : vector<16x128xi32>
    %cst_344 = arith.constant 1.000000e+00 : f32
    %cst_345 = arith.constant 0.000000e+00 : f32
    %407 = vector.broadcast %cst_344 : f32 to vector<16x128xf32>
    %408 = vector.broadcast %cst_345 : f32 to vector<16x128xf32>
    %409 = arith.select %406, %407, %408 : vector<16x128xi1>, vector<16x128xf32>
    %410 = arith.addf %402, %409 : vector<16x128xf32>
    %c3_346 = arith.constant 3 : index
    %c0_347 = arith.constant 0 : index
    %c0_348 = arith.constant 0 : index
    %411 = vector.load %arg3[%c3_346, %c0_347, %c0_348] : memref<9x16x128xi32, #tpu.memory_space<vmem>>, vector<1x16x128xi32>
    %412 = vector.shape_cast %411 : vector<1x16x128xi32> to vector<16x128xi32>
    %c3_i32_349 = arith.constant 3 : i32
    %413 = vector.broadcast %c3_i32_349 : i32 to vector<16x128xi32>
    %414 = arith.cmpi eq, %412, %413 : vector<16x128xi32>
    %cst_350 = arith.constant 1.000000e+00 : f32
    %cst_351 = arith.constant 0.000000e+00 : f32
    %415 = vector.broadcast %cst_350 : f32 to vector<16x128xf32>
    %416 = vector.broadcast %cst_351 : f32 to vector<16x128xf32>
    %417 = arith.select %414, %415, %416 : vector<16x128xi1>, vector<16x128xf32>
    %418 = arith.addf %410, %417 : vector<16x128xf32>
    %c4_352 = arith.constant 4 : index
    %c0_353 = arith.constant 0 : index
    %c0_354 = arith.constant 0 : index
    %419 = vector.load %arg3[%c4_352, %c0_353, %c0_354] : memref<9x16x128xi32, #tpu.memory_space<vmem>>, vector<1x16x128xi32>
    %420 = vector.shape_cast %419 : vector<1x16x128xi32> to vector<16x128xi32>
    %c3_i32_355 = arith.constant 3 : i32
    %421 = vector.broadcast %c3_i32_355 : i32 to vector<16x128xi32>
    %422 = arith.cmpi eq, %420, %421 : vector<16x128xi32>
    %cst_356 = arith.constant 1.000000e+00 : f32
    %cst_357 = arith.constant 0.000000e+00 : f32
    %423 = vector.broadcast %cst_356 : f32 to vector<16x128xf32>
    %424 = vector.broadcast %cst_357 : f32 to vector<16x128xf32>
    %425 = arith.select %422, %423, %424 : vector<16x128xi1>, vector<16x128xf32>
    %426 = arith.addf %418, %425 : vector<16x128xf32>
    %c5_358 = arith.constant 5 : index
    %c0_359 = arith.constant 0 : index
    %c0_360 = arith.constant 0 : index
    %427 = vector.load %arg3[%c5_358, %c0_359, %c0_360] : memref<9x16x128xi32, #tpu.memory_space<vmem>>, vector<1x16x128xi32>
    %428 = vector.shape_cast %427 : vector<1x16x128xi32> to vector<16x128xi32>
    %c3_i32_361 = arith.constant 3 : i32
    %429 = vector.broadcast %c3_i32_361 : i32 to vector<16x128xi32>
    %430 = arith.cmpi eq, %428, %429 : vector<16x128xi32>
    %cst_362 = arith.constant 1.000000e+00 : f32
    %cst_363 = arith.constant 0.000000e+00 : f32
    %431 = vector.broadcast %cst_362 : f32 to vector<16x128xf32>
    %432 = vector.broadcast %cst_363 : f32 to vector<16x128xf32>
    %433 = arith.select %430, %431, %432 : vector<16x128xi1>, vector<16x128xf32>
    %434 = arith.addf %426, %433 : vector<16x128xf32>
    %c6_364 = arith.constant 6 : index
    %c0_365 = arith.constant 0 : index
    %c0_366 = arith.constant 0 : index
    %435 = vector.load %arg3[%c6_364, %c0_365, %c0_366] : memref<9x16x128xi32, #tpu.memory_space<vmem>>, vector<1x16x128xi32>
    %436 = vector.shape_cast %435 : vector<1x16x128xi32> to vector<16x128xi32>
    %c3_i32_367 = arith.constant 3 : i32
    %437 = vector.broadcast %c3_i32_367 : i32 to vector<16x128xi32>
    %438 = arith.cmpi eq, %436, %437 : vector<16x128xi32>
    %cst_368 = arith.constant 1.000000e+00 : f32
    %cst_369 = arith.constant 0.000000e+00 : f32
    %439 = vector.broadcast %cst_368 : f32 to vector<16x128xf32>
    %440 = vector.broadcast %cst_369 : f32 to vector<16x128xf32>
    %441 = arith.select %438, %439, %440 : vector<16x128xi1>, vector<16x128xf32>
    %442 = arith.addf %434, %441 : vector<16x128xf32>
    %c7_370 = arith.constant 7 : index
    %c0_371 = arith.constant 0 : index
    %c0_372 = arith.constant 0 : index
    %443 = vector.load %arg3[%c7_370, %c0_371, %c0_372] : memref<9x16x128xi32, #tpu.memory_space<vmem>>, vector<1x16x128xi32>
    %444 = vector.shape_cast %443 : vector<1x16x128xi32> to vector<16x128xi32>
    %c3_i32_373 = arith.constant 3 : i32
    %445 = vector.broadcast %c3_i32_373 : i32 to vector<16x128xi32>
    %446 = arith.cmpi eq, %444, %445 : vector<16x128xi32>
    %cst_374 = arith.constant 1.000000e+00 : f32
    %cst_375 = arith.constant 0.000000e+00 : f32
    %447 = vector.broadcast %cst_374 : f32 to vector<16x128xf32>
    %448 = vector.broadcast %cst_375 : f32 to vector<16x128xf32>
    %449 = arith.select %446, %447, %448 : vector<16x128xi1>, vector<16x128xf32>
    %450 = arith.addf %442, %449 : vector<16x128xf32>
    %c8_376 = arith.constant 8 : index
    %c0_377 = arith.constant 0 : index
    %c0_378 = arith.constant 0 : index
    %451 = vector.load %arg3[%c8_376, %c0_377, %c0_378] : memref<9x16x128xi32, #tpu.memory_space<vmem>>, vector<1x16x128xi32>
    %452 = vector.shape_cast %451 : vector<1x16x128xi32> to vector<16x128xi32>
    %c3_i32_379 = arith.constant 3 : i32
    %453 = vector.broadcast %c3_i32_379 : i32 to vector<16x128xi32>
    %454 = arith.cmpi eq, %452, %453 : vector<16x128xi32>
    %cst_380 = arith.constant 1.000000e+00 : f32
    %cst_381 = arith.constant 0.000000e+00 : f32
    %455 = vector.broadcast %cst_380 : f32 to vector<16x128xf32>
    %456 = vector.broadcast %cst_381 : f32 to vector<16x128xf32>
    %457 = arith.select %454, %455, %456 : vector<16x128xi1>, vector<16x128xf32>
    %458 = arith.addf %450, %457 : vector<16x128xf32>
    %459 = arith.cmpf ogt, %458, %383 : vector<16x128xf32>
    %460 = arith.select %459, %458, %383 : vector<16x128xi1>, vector<16x128xf32>
    %c3_i32_382 = arith.constant 3 : i32
    %461 = vector.broadcast %c3_i32_382 : i32 to vector<16x128xi32>
    %462 = arith.select %459, %461, %385 : vector<16x128xi1>, vector<16x128xi32>
    %cst_383 = arith.constant 0.000000e+00 : f32
    %463 = vector.broadcast %cst_383 : f32 to vector<16x128xf32>
    %c0_384 = arith.constant 0 : index
    %c0_385 = arith.constant 0 : index
    %c0_386 = arith.constant 0 : index
    %464 = vector.load %arg3[%c0_384, %c0_385, %c0_386] : memref<9x16x128xi32, #tpu.memory_space<vmem>>, vector<1x16x128xi32>
    %465 = vector.shape_cast %464 : vector<1x16x128xi32> to vector<16x128xi32>
    %c4_i32 = arith.constant 4 : i32
    %466 = vector.broadcast %c4_i32 : i32 to vector<16x128xi32>
    %467 = arith.cmpi eq, %465, %466 : vector<16x128xi32>
    %cst_387 = arith.constant 1.000000e+00 : f32
    %cst_388 = arith.constant 0.000000e+00 : f32
    %468 = vector.broadcast %cst_387 : f32 to vector<16x128xf32>
    %469 = vector.broadcast %cst_388 : f32 to vector<16x128xf32>
    %470 = arith.select %467, %468, %469 : vector<16x128xi1>, vector<16x128xf32>
    %471 = arith.addf %463, %470 : vector<16x128xf32>
    %c1_389 = arith.constant 1 : index
    %c0_390 = arith.constant 0 : index
    %c0_391 = arith.constant 0 : index
    %472 = vector.load %arg3[%c1_389, %c0_390, %c0_391] : memref<9x16x128xi32, #tpu.memory_space<vmem>>, vector<1x16x128xi32>
    %473 = vector.shape_cast %472 : vector<1x16x128xi32> to vector<16x128xi32>
    %c4_i32_392 = arith.constant 4 : i32
    %474 = vector.broadcast %c4_i32_392 : i32 to vector<16x128xi32>
    %475 = arith.cmpi eq, %473, %474 : vector<16x128xi32>
    %cst_393 = arith.constant 1.000000e+00 : f32
    %cst_394 = arith.constant 0.000000e+00 : f32
    %476 = vector.broadcast %cst_393 : f32 to vector<16x128xf32>
    %477 = vector.broadcast %cst_394 : f32 to vector<16x128xf32>
    %478 = arith.select %475, %476, %477 : vector<16x128xi1>, vector<16x128xf32>
    %479 = arith.addf %471, %478 : vector<16x128xf32>
    %c2_395 = arith.constant 2 : index
    %c0_396 = arith.constant 0 : index
    %c0_397 = arith.constant 0 : index
    %480 = vector.load %arg3[%c2_395, %c0_396, %c0_397] : memref<9x16x128xi32, #tpu.memory_space<vmem>>, vector<1x16x128xi32>
    %481 = vector.shape_cast %480 : vector<1x16x128xi32> to vector<16x128xi32>
    %c4_i32_398 = arith.constant 4 : i32
    %482 = vector.broadcast %c4_i32_398 : i32 to vector<16x128xi32>
    %483 = arith.cmpi eq, %481, %482 : vector<16x128xi32>
    %cst_399 = arith.constant 1.000000e+00 : f32
    %cst_400 = arith.constant 0.000000e+00 : f32
    %484 = vector.broadcast %cst_399 : f32 to vector<16x128xf32>
    %485 = vector.broadcast %cst_400 : f32 to vector<16x128xf32>
    %486 = arith.select %483, %484, %485 : vector<16x128xi1>, vector<16x128xf32>
    %487 = arith.addf %479, %486 : vector<16x128xf32>
    %c3_401 = arith.constant 3 : index
    %c0_402 = arith.constant 0 : index
    %c0_403 = arith.constant 0 : index
    %488 = vector.load %arg3[%c3_401, %c0_402, %c0_403] : memref<9x16x128xi32, #tpu.memory_space<vmem>>, vector<1x16x128xi32>
    %489 = vector.shape_cast %488 : vector<1x16x128xi32> to vector<16x128xi32>
    %c4_i32_404 = arith.constant 4 : i32
    %490 = vector.broadcast %c4_i32_404 : i32 to vector<16x128xi32>
    %491 = arith.cmpi eq, %489, %490 : vector<16x128xi32>
    %cst_405 = arith.constant 1.000000e+00 : f32
    %cst_406 = arith.constant 0.000000e+00 : f32
    %492 = vector.broadcast %cst_405 : f32 to vector<16x128xf32>
    %493 = vector.broadcast %cst_406 : f32 to vector<16x128xf32>
    %494 = arith.select %491, %492, %493 : vector<16x128xi1>, vector<16x128xf32>
    %495 = arith.addf %487, %494 : vector<16x128xf32>
    %c4_407 = arith.constant 4 : index
    %c0_408 = arith.constant 0 : index
    %c0_409 = arith.constant 0 : index
    %496 = vector.load %arg3[%c4_407, %c0_408, %c0_409] : memref<9x16x128xi32, #tpu.memory_space<vmem>>, vector<1x16x128xi32>
    %497 = vector.shape_cast %496 : vector<1x16x128xi32> to vector<16x128xi32>
    %c4_i32_410 = arith.constant 4 : i32
    %498 = vector.broadcast %c4_i32_410 : i32 to vector<16x128xi32>
    %499 = arith.cmpi eq, %497, %498 : vector<16x128xi32>
    %cst_411 = arith.constant 1.000000e+00 : f32
    %cst_412 = arith.constant 0.000000e+00 : f32
    %500 = vector.broadcast %cst_411 : f32 to vector<16x128xf32>
    %501 = vector.broadcast %cst_412 : f32 to vector<16x128xf32>
    %502 = arith.select %499, %500, %501 : vector<16x128xi1>, vector<16x128xf32>
    %503 = arith.addf %495, %502 : vector<16x128xf32>
    %c5_413 = arith.constant 5 : index
    %c0_414 = arith.constant 0 : index
    %c0_415 = arith.constant 0 : index
    %504 = vector.load %arg3[%c5_413, %c0_414, %c0_415] : memref<9x16x128xi32, #tpu.memory_space<vmem>>, vector<1x16x128xi32>
    %505 = vector.shape_cast %504 : vector<1x16x128xi32> to vector<16x128xi32>
    %c4_i32_416 = arith.constant 4 : i32
    %506 = vector.broadcast %c4_i32_416 : i32 to vector<16x128xi32>
    %507 = arith.cmpi eq, %505, %506 : vector<16x128xi32>
    %cst_417 = arith.constant 1.000000e+00 : f32
    %cst_418 = arith.constant 0.000000e+00 : f32
    %508 = vector.broadcast %cst_417 : f32 to vector<16x128xf32>
    %509 = vector.broadcast %cst_418 : f32 to vector<16x128xf32>
    %510 = arith.select %507, %508, %509 : vector<16x128xi1>, vector<16x128xf32>
    %511 = arith.addf %503, %510 : vector<16x128xf32>
    %c6_419 = arith.constant 6 : index
    %c0_420 = arith.constant 0 : index
    %c0_421 = arith.constant 0 : index
    %512 = vector.load %arg3[%c6_419, %c0_420, %c0_421] : memref<9x16x128xi32, #tpu.memory_space<vmem>>, vector<1x16x128xi32>
    %513 = vector.shape_cast %512 : vector<1x16x128xi32> to vector<16x128xi32>
    %c4_i32_422 = arith.constant 4 : i32
    %514 = vector.broadcast %c4_i32_422 : i32 to vector<16x128xi32>
    %515 = arith.cmpi eq, %513, %514 : vector<16x128xi32>
    %cst_423 = arith.constant 1.000000e+00 : f32
    %cst_424 = arith.constant 0.000000e+00 : f32
    %516 = vector.broadcast %cst_423 : f32 to vector<16x128xf32>
    %517 = vector.broadcast %cst_424 : f32 to vector<16x128xf32>
    %518 = arith.select %515, %516, %517 : vector<16x128xi1>, vector<16x128xf32>
    %519 = arith.addf %511, %518 : vector<16x128xf32>
    %c7_425 = arith.constant 7 : index
    %c0_426 = arith.constant 0 : index
    %c0_427 = arith.constant 0 : index
    %520 = vector.load %arg3[%c7_425, %c0_426, %c0_427] : memref<9x16x128xi32, #tpu.memory_space<vmem>>, vector<1x16x128xi32>
    %521 = vector.shape_cast %520 : vector<1x16x128xi32> to vector<16x128xi32>
    %c4_i32_428 = arith.constant 4 : i32
    %522 = vector.broadcast %c4_i32_428 : i32 to vector<16x128xi32>
    %523 = arith.cmpi eq, %521, %522 : vector<16x128xi32>
    %cst_429 = arith.constant 1.000000e+00 : f32
    %cst_430 = arith.constant 0.000000e+00 : f32
    %524 = vector.broadcast %cst_429 : f32 to vector<16x128xf32>
    %525 = vector.broadcast %cst_430 : f32 to vector<16x128xf32>
    %526 = arith.select %523, %524, %525 : vector<16x128xi1>, vector<16x128xf32>
    %527 = arith.addf %519, %526 : vector<16x128xf32>
    %c8_431 = arith.constant 8 : index
    %c0_432 = arith.constant 0 : index
    %c0_433 = arith.constant 0 : index
    %528 = vector.load %arg3[%c8_431, %c0_432, %c0_433] : memref<9x16x128xi32, #tpu.memory_space<vmem>>, vector<1x16x128xi32>
    %529 = vector.shape_cast %528 : vector<1x16x128xi32> to vector<16x128xi32>
    %c4_i32_434 = arith.constant 4 : i32
    %530 = vector.broadcast %c4_i32_434 : i32 to vector<16x128xi32>
    %531 = arith.cmpi eq, %529, %530 : vector<16x128xi32>
    %cst_435 = arith.constant 1.000000e+00 : f32
    %cst_436 = arith.constant 0.000000e+00 : f32
    %532 = vector.broadcast %cst_435 : f32 to vector<16x128xf32>
    %533 = vector.broadcast %cst_436 : f32 to vector<16x128xf32>
    %534 = arith.select %531, %532, %533 : vector<16x128xi1>, vector<16x128xf32>
    %535 = arith.addf %527, %534 : vector<16x128xf32>
    %536 = arith.cmpf ogt, %535, %460 : vector<16x128xf32>
    %537 = arith.select %536, %535, %460 : vector<16x128xi1>, vector<16x128xf32>
    %c4_i32_437 = arith.constant 4 : i32
    %538 = vector.broadcast %c4_i32_437 : i32 to vector<16x128xi32>
    %539 = arith.select %536, %538, %462 : vector<16x128xi1>, vector<16x128xi32>
    %cst_438 = arith.constant 0.000000e+00 : f32
    %540 = vector.broadcast %cst_438 : f32 to vector<16x128xf32>
    %c0_439 = arith.constant 0 : index
    %c0_440 = arith.constant 0 : index
    %c0_441 = arith.constant 0 : index
    %541 = vector.load %arg3[%c0_439, %c0_440, %c0_441] : memref<9x16x128xi32, #tpu.memory_space<vmem>>, vector<1x16x128xi32>
    %542 = vector.shape_cast %541 : vector<1x16x128xi32> to vector<16x128xi32>
    %c5_i32 = arith.constant 5 : i32
    %543 = vector.broadcast %c5_i32 : i32 to vector<16x128xi32>
    %544 = arith.cmpi eq, %542, %543 : vector<16x128xi32>
    %cst_442 = arith.constant 1.000000e+00 : f32
    %cst_443 = arith.constant 0.000000e+00 : f32
    %545 = vector.broadcast %cst_442 : f32 to vector<16x128xf32>
    %546 = vector.broadcast %cst_443 : f32 to vector<16x128xf32>
    %547 = arith.select %544, %545, %546 : vector<16x128xi1>, vector<16x128xf32>
    %548 = arith.addf %540, %547 : vector<16x128xf32>
    %c1_444 = arith.constant 1 : index
    %c0_445 = arith.constant 0 : index
    %c0_446 = arith.constant 0 : index
    %549 = vector.load %arg3[%c1_444, %c0_445, %c0_446] : memref<9x16x128xi32, #tpu.memory_space<vmem>>, vector<1x16x128xi32>
    %550 = vector.shape_cast %549 : vector<1x16x128xi32> to vector<16x128xi32>
    %c5_i32_447 = arith.constant 5 : i32
    %551 = vector.broadcast %c5_i32_447 : i32 to vector<16x128xi32>
    %552 = arith.cmpi eq, %550, %551 : vector<16x128xi32>
    %cst_448 = arith.constant 1.000000e+00 : f32
    %cst_449 = arith.constant 0.000000e+00 : f32
    %553 = vector.broadcast %cst_448 : f32 to vector<16x128xf32>
    %554 = vector.broadcast %cst_449 : f32 to vector<16x128xf32>
    %555 = arith.select %552, %553, %554 : vector<16x128xi1>, vector<16x128xf32>
    %556 = arith.addf %548, %555 : vector<16x128xf32>
    %c2_450 = arith.constant 2 : index
    %c0_451 = arith.constant 0 : index
    %c0_452 = arith.constant 0 : index
    %557 = vector.load %arg3[%c2_450, %c0_451, %c0_452] : memref<9x16x128xi32, #tpu.memory_space<vmem>>, vector<1x16x128xi32>
    %558 = vector.shape_cast %557 : vector<1x16x128xi32> to vector<16x128xi32>
    %c5_i32_453 = arith.constant 5 : i32
    %559 = vector.broadcast %c5_i32_453 : i32 to vector<16x128xi32>
    %560 = arith.cmpi eq, %558, %559 : vector<16x128xi32>
    %cst_454 = arith.constant 1.000000e+00 : f32
    %cst_455 = arith.constant 0.000000e+00 : f32
    %561 = vector.broadcast %cst_454 : f32 to vector<16x128xf32>
    %562 = vector.broadcast %cst_455 : f32 to vector<16x128xf32>
    %563 = arith.select %560, %561, %562 : vector<16x128xi1>, vector<16x128xf32>
    %564 = arith.addf %556, %563 : vector<16x128xf32>
    %c3_456 = arith.constant 3 : index
    %c0_457 = arith.constant 0 : index
    %c0_458 = arith.constant 0 : index
    %565 = vector.load %arg3[%c3_456, %c0_457, %c0_458] : memref<9x16x128xi32, #tpu.memory_space<vmem>>, vector<1x16x128xi32>
    %566 = vector.shape_cast %565 : vector<1x16x128xi32> to vector<16x128xi32>
    %c5_i32_459 = arith.constant 5 : i32
    %567 = vector.broadcast %c5_i32_459 : i32 to vector<16x128xi32>
    %568 = arith.cmpi eq, %566, %567 : vector<16x128xi32>
    %cst_460 = arith.constant 1.000000e+00 : f32
    %cst_461 = arith.constant 0.000000e+00 : f32
    %569 = vector.broadcast %cst_460 : f32 to vector<16x128xf32>
    %570 = vector.broadcast %cst_461 : f32 to vector<16x128xf32>
    %571 = arith.select %568, %569, %570 : vector<16x128xi1>, vector<16x128xf32>
    %572 = arith.addf %564, %571 : vector<16x128xf32>
    %c4_462 = arith.constant 4 : index
    %c0_463 = arith.constant 0 : index
    %c0_464 = arith.constant 0 : index
    %573 = vector.load %arg3[%c4_462, %c0_463, %c0_464] : memref<9x16x128xi32, #tpu.memory_space<vmem>>, vector<1x16x128xi32>
    %574 = vector.shape_cast %573 : vector<1x16x128xi32> to vector<16x128xi32>
    %c5_i32_465 = arith.constant 5 : i32
    %575 = vector.broadcast %c5_i32_465 : i32 to vector<16x128xi32>
    %576 = arith.cmpi eq, %574, %575 : vector<16x128xi32>
    %cst_466 = arith.constant 1.000000e+00 : f32
    %cst_467 = arith.constant 0.000000e+00 : f32
    %577 = vector.broadcast %cst_466 : f32 to vector<16x128xf32>
    %578 = vector.broadcast %cst_467 : f32 to vector<16x128xf32>
    %579 = arith.select %576, %577, %578 : vector<16x128xi1>, vector<16x128xf32>
    %580 = arith.addf %572, %579 : vector<16x128xf32>
    %c5_468 = arith.constant 5 : index
    %c0_469 = arith.constant 0 : index
    %c0_470 = arith.constant 0 : index
    %581 = vector.load %arg3[%c5_468, %c0_469, %c0_470] : memref<9x16x128xi32, #tpu.memory_space<vmem>>, vector<1x16x128xi32>
    %582 = vector.shape_cast %581 : vector<1x16x128xi32> to vector<16x128xi32>
    %c5_i32_471 = arith.constant 5 : i32
    %583 = vector.broadcast %c5_i32_471 : i32 to vector<16x128xi32>
    %584 = arith.cmpi eq, %582, %583 : vector<16x128xi32>
    %cst_472 = arith.constant 1.000000e+00 : f32
    %cst_473 = arith.constant 0.000000e+00 : f32
    %585 = vector.broadcast %cst_472 : f32 to vector<16x128xf32>
    %586 = vector.broadcast %cst_473 : f32 to vector<16x128xf32>
    %587 = arith.select %584, %585, %586 : vector<16x128xi1>, vector<16x128xf32>
    %588 = arith.addf %580, %587 : vector<16x128xf32>
    %c6_474 = arith.constant 6 : index
    %c0_475 = arith.constant 0 : index
    %c0_476 = arith.constant 0 : index
    %589 = vector.load %arg3[%c6_474, %c0_475, %c0_476] : memref<9x16x128xi32, #tpu.memory_space<vmem>>, vector<1x16x128xi32>
    %590 = vector.shape_cast %589 : vector<1x16x128xi32> to vector<16x128xi32>
    %c5_i32_477 = arith.constant 5 : i32
    %591 = vector.broadcast %c5_i32_477 : i32 to vector<16x128xi32>
    %592 = arith.cmpi eq, %590, %591 : vector<16x128xi32>
    %cst_478 = arith.constant 1.000000e+00 : f32
    %cst_479 = arith.constant 0.000000e+00 : f32
    %593 = vector.broadcast %cst_478 : f32 to vector<16x128xf32>
    %594 = vector.broadcast %cst_479 : f32 to vector<16x128xf32>
    %595 = arith.select %592, %593, %594 : vector<16x128xi1>, vector<16x128xf32>
    %596 = arith.addf %588, %595 : vector<16x128xf32>
    %c7_480 = arith.constant 7 : index
    %c0_481 = arith.constant 0 : index
    %c0_482 = arith.constant 0 : index
    %597 = vector.load %arg3[%c7_480, %c0_481, %c0_482] : memref<9x16x128xi32, #tpu.memory_space<vmem>>, vector<1x16x128xi32>
    %598 = vector.shape_cast %597 : vector<1x16x128xi32> to vector<16x128xi32>
    %c5_i32_483 = arith.constant 5 : i32
    %599 = vector.broadcast %c5_i32_483 : i32 to vector<16x128xi32>
    %600 = arith.cmpi eq, %598, %599 : vector<16x128xi32>
    %cst_484 = arith.constant 1.000000e+00 : f32
    %cst_485 = arith.constant 0.000000e+00 : f32
    %601 = vector.broadcast %cst_484 : f32 to vector<16x128xf32>
    %602 = vector.broadcast %cst_485 : f32 to vector<16x128xf32>
    %603 = arith.select %600, %601, %602 : vector<16x128xi1>, vector<16x128xf32>
    %604 = arith.addf %596, %603 : vector<16x128xf32>
    %c8_486 = arith.constant 8 : index
    %c0_487 = arith.constant 0 : index
    %c0_488 = arith.constant 0 : index
    %605 = vector.load %arg3[%c8_486, %c0_487, %c0_488] : memref<9x16x128xi32, #tpu.memory_space<vmem>>, vector<1x16x128xi32>
    %606 = vector.shape_cast %605 : vector<1x16x128xi32> to vector<16x128xi32>
    %c5_i32_489 = arith.constant 5 : i32
    %607 = vector.broadcast %c5_i32_489 : i32 to vector<16x128xi32>
    %608 = arith.cmpi eq, %606, %607 : vector<16x128xi32>
    %cst_490 = arith.constant 1.000000e+00 : f32
    %cst_491 = arith.constant 0.000000e+00 : f32
    %609 = vector.broadcast %cst_490 : f32 to vector<16x128xf32>
    %610 = vector.broadcast %cst_491 : f32 to vector<16x128xf32>
    %611 = arith.select %608, %609, %610 : vector<16x128xi1>, vector<16x128xf32>
    %612 = arith.addf %604, %611 : vector<16x128xf32>
    %613 = arith.cmpf ogt, %612, %537 : vector<16x128xf32>
    %614 = arith.select %613, %612, %537 : vector<16x128xi1>, vector<16x128xf32>
    %c5_i32_492 = arith.constant 5 : i32
    %615 = vector.broadcast %c5_i32_492 : i32 to vector<16x128xi32>
    %616 = arith.select %613, %615, %539 : vector<16x128xi1>, vector<16x128xi32>
    %cst_493 = arith.constant 0.000000e+00 : f32
    %617 = vector.broadcast %cst_493 : f32 to vector<16x128xf32>
    %c0_494 = arith.constant 0 : index
    %c0_495 = arith.constant 0 : index
    %c0_496 = arith.constant 0 : index
    %618 = vector.load %arg3[%c0_494, %c0_495, %c0_496] : memref<9x16x128xi32, #tpu.memory_space<vmem>>, vector<1x16x128xi32>
    %619 = vector.shape_cast %618 : vector<1x16x128xi32> to vector<16x128xi32>
    %c6_i32 = arith.constant 6 : i32
    %620 = vector.broadcast %c6_i32 : i32 to vector<16x128xi32>
    %621 = arith.cmpi eq, %619, %620 : vector<16x128xi32>
    %cst_497 = arith.constant 1.000000e+00 : f32
    %cst_498 = arith.constant 0.000000e+00 : f32
    %622 = vector.broadcast %cst_497 : f32 to vector<16x128xf32>
    %623 = vector.broadcast %cst_498 : f32 to vector<16x128xf32>
    %624 = arith.select %621, %622, %623 : vector<16x128xi1>, vector<16x128xf32>
    %625 = arith.addf %617, %624 : vector<16x128xf32>
    %c1_499 = arith.constant 1 : index
    %c0_500 = arith.constant 0 : index
    %c0_501 = arith.constant 0 : index
    %626 = vector.load %arg3[%c1_499, %c0_500, %c0_501] : memref<9x16x128xi32, #tpu.memory_space<vmem>>, vector<1x16x128xi32>
    %627 = vector.shape_cast %626 : vector<1x16x128xi32> to vector<16x128xi32>
    %c6_i32_502 = arith.constant 6 : i32
    %628 = vector.broadcast %c6_i32_502 : i32 to vector<16x128xi32>
    %629 = arith.cmpi eq, %627, %628 : vector<16x128xi32>
    %cst_503 = arith.constant 1.000000e+00 : f32
    %cst_504 = arith.constant 0.000000e+00 : f32
    %630 = vector.broadcast %cst_503 : f32 to vector<16x128xf32>
    %631 = vector.broadcast %cst_504 : f32 to vector<16x128xf32>
    %632 = arith.select %629, %630, %631 : vector<16x128xi1>, vector<16x128xf32>
    %633 = arith.addf %625, %632 : vector<16x128xf32>
    %c2_505 = arith.constant 2 : index
    %c0_506 = arith.constant 0 : index
    %c0_507 = arith.constant 0 : index
    %634 = vector.load %arg3[%c2_505, %c0_506, %c0_507] : memref<9x16x128xi32, #tpu.memory_space<vmem>>, vector<1x16x128xi32>
    %635 = vector.shape_cast %634 : vector<1x16x128xi32> to vector<16x128xi32>
    %c6_i32_508 = arith.constant 6 : i32
    %636 = vector.broadcast %c6_i32_508 : i32 to vector<16x128xi32>
    %637 = arith.cmpi eq, %635, %636 : vector<16x128xi32>
    %cst_509 = arith.constant 1.000000e+00 : f32
    %cst_510 = arith.constant 0.000000e+00 : f32
    %638 = vector.broadcast %cst_509 : f32 to vector<16x128xf32>
    %639 = vector.broadcast %cst_510 : f32 to vector<16x128xf32>
    %640 = arith.select %637, %638, %639 : vector<16x128xi1>, vector<16x128xf32>
    %641 = arith.addf %633, %640 : vector<16x128xf32>
    %c3_511 = arith.constant 3 : index
    %c0_512 = arith.constant 0 : index
    %c0_513 = arith.constant 0 : index
    %642 = vector.load %arg3[%c3_511, %c0_512, %c0_513] : memref<9x16x128xi32, #tpu.memory_space<vmem>>, vector<1x16x128xi32>
    %643 = vector.shape_cast %642 : vector<1x16x128xi32> to vector<16x128xi32>
    %c6_i32_514 = arith.constant 6 : i32
    %644 = vector.broadcast %c6_i32_514 : i32 to vector<16x128xi32>
    %645 = arith.cmpi eq, %643, %644 : vector<16x128xi32>
    %cst_515 = arith.constant 1.000000e+00 : f32
    %cst_516 = arith.constant 0.000000e+00 : f32
    %646 = vector.broadcast %cst_515 : f32 to vector<16x128xf32>
    %647 = vector.broadcast %cst_516 : f32 to vector<16x128xf32>
    %648 = arith.select %645, %646, %647 : vector<16x128xi1>, vector<16x128xf32>
    %649 = arith.addf %641, %648 : vector<16x128xf32>
    %c4_517 = arith.constant 4 : index
    %c0_518 = arith.constant 0 : index
    %c0_519 = arith.constant 0 : index
    %650 = vector.load %arg3[%c4_517, %c0_518, %c0_519] : memref<9x16x128xi32, #tpu.memory_space<vmem>>, vector<1x16x128xi32>
    %651 = vector.shape_cast %650 : vector<1x16x128xi32> to vector<16x128xi32>
    %c6_i32_520 = arith.constant 6 : i32
    %652 = vector.broadcast %c6_i32_520 : i32 to vector<16x128xi32>
    %653 = arith.cmpi eq, %651, %652 : vector<16x128xi32>
    %cst_521 = arith.constant 1.000000e+00 : f32
    %cst_522 = arith.constant 0.000000e+00 : f32
    %654 = vector.broadcast %cst_521 : f32 to vector<16x128xf32>
    %655 = vector.broadcast %cst_522 : f32 to vector<16x128xf32>
    %656 = arith.select %653, %654, %655 : vector<16x128xi1>, vector<16x128xf32>
    %657 = arith.addf %649, %656 : vector<16x128xf32>
    %c5_523 = arith.constant 5 : index
    %c0_524 = arith.constant 0 : index
    %c0_525 = arith.constant 0 : index
    %658 = vector.load %arg3[%c5_523, %c0_524, %c0_525] : memref<9x16x128xi32, #tpu.memory_space<vmem>>, vector<1x16x128xi32>
    %659 = vector.shape_cast %658 : vector<1x16x128xi32> to vector<16x128xi32>
    %c6_i32_526 = arith.constant 6 : i32
    %660 = vector.broadcast %c6_i32_526 : i32 to vector<16x128xi32>
    %661 = arith.cmpi eq, %659, %660 : vector<16x128xi32>
    %cst_527 = arith.constant 1.000000e+00 : f32
    %cst_528 = arith.constant 0.000000e+00 : f32
    %662 = vector.broadcast %cst_527 : f32 to vector<16x128xf32>
    %663 = vector.broadcast %cst_528 : f32 to vector<16x128xf32>
    %664 = arith.select %661, %662, %663 : vector<16x128xi1>, vector<16x128xf32>
    %665 = arith.addf %657, %664 : vector<16x128xf32>
    %c6_529 = arith.constant 6 : index
    %c0_530 = arith.constant 0 : index
    %c0_531 = arith.constant 0 : index
    %666 = vector.load %arg3[%c6_529, %c0_530, %c0_531] : memref<9x16x128xi32, #tpu.memory_space<vmem>>, vector<1x16x128xi32>
    %667 = vector.shape_cast %666 : vector<1x16x128xi32> to vector<16x128xi32>
    %c6_i32_532 = arith.constant 6 : i32
    %668 = vector.broadcast %c6_i32_532 : i32 to vector<16x128xi32>
    %669 = arith.cmpi eq, %667, %668 : vector<16x128xi32>
    %cst_533 = arith.constant 1.000000e+00 : f32
    %cst_534 = arith.constant 0.000000e+00 : f32
    %670 = vector.broadcast %cst_533 : f32 to vector<16x128xf32>
    %671 = vector.broadcast %cst_534 : f32 to vector<16x128xf32>
    %672 = arith.select %669, %670, %671 : vector<16x128xi1>, vector<16x128xf32>
    %673 = arith.addf %665, %672 : vector<16x128xf32>
    %c7_535 = arith.constant 7 : index
    %c0_536 = arith.constant 0 : index
    %c0_537 = arith.constant 0 : index
    %674 = vector.load %arg3[%c7_535, %c0_536, %c0_537] : memref<9x16x128xi32, #tpu.memory_space<vmem>>, vector<1x16x128xi32>
    %675 = vector.shape_cast %674 : vector<1x16x128xi32> to vector<16x128xi32>
    %c6_i32_538 = arith.constant 6 : i32
    %676 = vector.broadcast %c6_i32_538 : i32 to vector<16x128xi32>
    %677 = arith.cmpi eq, %675, %676 : vector<16x128xi32>
    %cst_539 = arith.constant 1.000000e+00 : f32
    %cst_540 = arith.constant 0.000000e+00 : f32
    %678 = vector.broadcast %cst_539 : f32 to vector<16x128xf32>
    %679 = vector.broadcast %cst_540 : f32 to vector<16x128xf32>
    %680 = arith.select %677, %678, %679 : vector<16x128xi1>, vector<16x128xf32>
    %681 = arith.addf %673, %680 : vector<16x128xf32>
    %c8_541 = arith.constant 8 : index
    %c0_542 = arith.constant 0 : index
    %c0_543 = arith.constant 0 : index
    %682 = vector.load %arg3[%c8_541, %c0_542, %c0_543] : memref<9x16x128xi32, #tpu.memory_space<vmem>>, vector<1x16x128xi32>
    %683 = vector.shape_cast %682 : vector<1x16x128xi32> to vector<16x128xi32>
    %c6_i32_544 = arith.constant 6 : i32
    %684 = vector.broadcast %c6_i32_544 : i32 to vector<16x128xi32>
    %685 = arith.cmpi eq, %683, %684 : vector<16x128xi32>
    %cst_545 = arith.constant 1.000000e+00 : f32
    %cst_546 = arith.constant 0.000000e+00 : f32
    %686 = vector.broadcast %cst_545 : f32 to vector<16x128xf32>
    %687 = vector.broadcast %cst_546 : f32 to vector<16x128xf32>
    %688 = arith.select %685, %686, %687 : vector<16x128xi1>, vector<16x128xf32>
    %689 = arith.addf %681, %688 : vector<16x128xf32>
    %690 = arith.cmpf ogt, %689, %614 : vector<16x128xf32>
    %691 = arith.select %690, %689, %614 : vector<16x128xi1>, vector<16x128xf32>
    %c6_i32_547 = arith.constant 6 : i32
    %692 = vector.broadcast %c6_i32_547 : i32 to vector<16x128xi32>
    %693 = arith.select %690, %692, %616 : vector<16x128xi1>, vector<16x128xi32>
    %cst_548 = arith.constant 0.000000e+00 : f32
    %694 = vector.broadcast %cst_548 : f32 to vector<16x128xf32>
    %c0_549 = arith.constant 0 : index
    %c0_550 = arith.constant 0 : index
    %c0_551 = arith.constant 0 : index
    %695 = vector.load %arg3[%c0_549, %c0_550, %c0_551] : memref<9x16x128xi32, #tpu.memory_space<vmem>>, vector<1x16x128xi32>
    %696 = vector.shape_cast %695 : vector<1x16x128xi32> to vector<16x128xi32>
    %c7_i32 = arith.constant 7 : i32
    %697 = vector.broadcast %c7_i32 : i32 to vector<16x128xi32>
    %698 = arith.cmpi eq, %696, %697 : vector<16x128xi32>
    %cst_552 = arith.constant 1.000000e+00 : f32
    %cst_553 = arith.constant 0.000000e+00 : f32
    %699 = vector.broadcast %cst_552 : f32 to vector<16x128xf32>
    %700 = vector.broadcast %cst_553 : f32 to vector<16x128xf32>
    %701 = arith.select %698, %699, %700 : vector<16x128xi1>, vector<16x128xf32>
    %702 = arith.addf %694, %701 : vector<16x128xf32>
    %c1_554 = arith.constant 1 : index
    %c0_555 = arith.constant 0 : index
    %c0_556 = arith.constant 0 : index
    %703 = vector.load %arg3[%c1_554, %c0_555, %c0_556] : memref<9x16x128xi32, #tpu.memory_space<vmem>>, vector<1x16x128xi32>
    %704 = vector.shape_cast %703 : vector<1x16x128xi32> to vector<16x128xi32>
    %c7_i32_557 = arith.constant 7 : i32
    %705 = vector.broadcast %c7_i32_557 : i32 to vector<16x128xi32>
    %706 = arith.cmpi eq, %704, %705 : vector<16x128xi32>
    %cst_558 = arith.constant 1.000000e+00 : f32
    %cst_559 = arith.constant 0.000000e+00 : f32
    %707 = vector.broadcast %cst_558 : f32 to vector<16x128xf32>
    %708 = vector.broadcast %cst_559 : f32 to vector<16x128xf32>
    %709 = arith.select %706, %707, %708 : vector<16x128xi1>, vector<16x128xf32>
    %710 = arith.addf %702, %709 : vector<16x128xf32>
    %c2_560 = arith.constant 2 : index
    %c0_561 = arith.constant 0 : index
    %c0_562 = arith.constant 0 : index
    %711 = vector.load %arg3[%c2_560, %c0_561, %c0_562] : memref<9x16x128xi32, #tpu.memory_space<vmem>>, vector<1x16x128xi32>
    %712 = vector.shape_cast %711 : vector<1x16x128xi32> to vector<16x128xi32>
    %c7_i32_563 = arith.constant 7 : i32
    %713 = vector.broadcast %c7_i32_563 : i32 to vector<16x128xi32>
    %714 = arith.cmpi eq, %712, %713 : vector<16x128xi32>
    %cst_564 = arith.constant 1.000000e+00 : f32
    %cst_565 = arith.constant 0.000000e+00 : f32
    %715 = vector.broadcast %cst_564 : f32 to vector<16x128xf32>
    %716 = vector.broadcast %cst_565 : f32 to vector<16x128xf32>
    %717 = arith.select %714, %715, %716 : vector<16x128xi1>, vector<16x128xf32>
    %718 = arith.addf %710, %717 : vector<16x128xf32>
    %c3_566 = arith.constant 3 : index
    %c0_567 = arith.constant 0 : index
    %c0_568 = arith.constant 0 : index
    %719 = vector.load %arg3[%c3_566, %c0_567, %c0_568] : memref<9x16x128xi32, #tpu.memory_space<vmem>>, vector<1x16x128xi32>
    %720 = vector.shape_cast %719 : vector<1x16x128xi32> to vector<16x128xi32>
    %c7_i32_569 = arith.constant 7 : i32
    %721 = vector.broadcast %c7_i32_569 : i32 to vector<16x128xi32>
    %722 = arith.cmpi eq, %720, %721 : vector<16x128xi32>
    %cst_570 = arith.constant 1.000000e+00 : f32
    %cst_571 = arith.constant 0.000000e+00 : f32
    %723 = vector.broadcast %cst_570 : f32 to vector<16x128xf32>
    %724 = vector.broadcast %cst_571 : f32 to vector<16x128xf32>
    %725 = arith.select %722, %723, %724 : vector<16x128xi1>, vector<16x128xf32>
    %726 = arith.addf %718, %725 : vector<16x128xf32>
    %c4_572 = arith.constant 4 : index
    %c0_573 = arith.constant 0 : index
    %c0_574 = arith.constant 0 : index
    %727 = vector.load %arg3[%c4_572, %c0_573, %c0_574] : memref<9x16x128xi32, #tpu.memory_space<vmem>>, vector<1x16x128xi32>
    %728 = vector.shape_cast %727 : vector<1x16x128xi32> to vector<16x128xi32>
    %c7_i32_575 = arith.constant 7 : i32
    %729 = vector.broadcast %c7_i32_575 : i32 to vector<16x128xi32>
    %730 = arith.cmpi eq, %728, %729 : vector<16x128xi32>
    %cst_576 = arith.constant 1.000000e+00 : f32
    %cst_577 = arith.constant 0.000000e+00 : f32
    %731 = vector.broadcast %cst_576 : f32 to vector<16x128xf32>
    %732 = vector.broadcast %cst_577 : f32 to vector<16x128xf32>
    %733 = arith.select %730, %731, %732 : vector<16x128xi1>, vector<16x128xf32>
    %734 = arith.addf %726, %733 : vector<16x128xf32>
    %c5_578 = arith.constant 5 : index
    %c0_579 = arith.constant 0 : index
    %c0_580 = arith.constant 0 : index
    %735 = vector.load %arg3[%c5_578, %c0_579, %c0_580] : memref<9x16x128xi32, #tpu.memory_space<vmem>>, vector<1x16x128xi32>
    %736 = vector.shape_cast %735 : vector<1x16x128xi32> to vector<16x128xi32>
    %c7_i32_581 = arith.constant 7 : i32
    %737 = vector.broadcast %c7_i32_581 : i32 to vector<16x128xi32>
    %738 = arith.cmpi eq, %736, %737 : vector<16x128xi32>
    %cst_582 = arith.constant 1.000000e+00 : f32
    %cst_583 = arith.constant 0.000000e+00 : f32
    %739 = vector.broadcast %cst_582 : f32 to vector<16x128xf32>
    %740 = vector.broadcast %cst_583 : f32 to vector<16x128xf32>
    %741 = arith.select %738, %739, %740 : vector<16x128xi1>, vector<16x128xf32>
    %742 = arith.addf %734, %741 : vector<16x128xf32>
    %c6_584 = arith.constant 6 : index
    %c0_585 = arith.constant 0 : index
    %c0_586 = arith.constant 0 : index
    %743 = vector.load %arg3[%c6_584, %c0_585, %c0_586] : memref<9x16x128xi32, #tpu.memory_space<vmem>>, vector<1x16x128xi32>
    %744 = vector.shape_cast %743 : vector<1x16x128xi32> to vector<16x128xi32>
    %c7_i32_587 = arith.constant 7 : i32
    %745 = vector.broadcast %c7_i32_587 : i32 to vector<16x128xi32>
    %746 = arith.cmpi eq, %744, %745 : vector<16x128xi32>
    %cst_588 = arith.constant 1.000000e+00 : f32
    %cst_589 = arith.constant 0.000000e+00 : f32
    %747 = vector.broadcast %cst_588 : f32 to vector<16x128xf32>
    %748 = vector.broadcast %cst_589 : f32 to vector<16x128xf32>
    %749 = arith.select %746, %747, %748 : vector<16x128xi1>, vector<16x128xf32>
    %750 = arith.addf %742, %749 : vector<16x128xf32>
    %c7_590 = arith.constant 7 : index
    %c0_591 = arith.constant 0 : index
    %c0_592 = arith.constant 0 : index
    %751 = vector.load %arg3[%c7_590, %c0_591, %c0_592] : memref<9x16x128xi32, #tpu.memory_space<vmem>>, vector<1x16x128xi32>
    %752 = vector.shape_cast %751 : vector<1x16x128xi32> to vector<16x128xi32>
    %c7_i32_593 = arith.constant 7 : i32
    %753 = vector.broadcast %c7_i32_593 : i32 to vector<16x128xi32>
    %754 = arith.cmpi eq, %752, %753 : vector<16x128xi32>
    %cst_594 = arith.constant 1.000000e+00 : f32
    %cst_595 = arith.constant 0.000000e+00 : f32
    %755 = vector.broadcast %cst_594 : f32 to vector<16x128xf32>
    %756 = vector.broadcast %cst_595 : f32 to vector<16x128xf32>
    %757 = arith.select %754, %755, %756 : vector<16x128xi1>, vector<16x128xf32>
    %758 = arith.addf %750, %757 : vector<16x128xf32>
    %c8_596 = arith.constant 8 : index
    %c0_597 = arith.constant 0 : index
    %c0_598 = arith.constant 0 : index
    %759 = vector.load %arg3[%c8_596, %c0_597, %c0_598] : memref<9x16x128xi32, #tpu.memory_space<vmem>>, vector<1x16x128xi32>
    %760 = vector.shape_cast %759 : vector<1x16x128xi32> to vector<16x128xi32>
    %c7_i32_599 = arith.constant 7 : i32
    %761 = vector.broadcast %c7_i32_599 : i32 to vector<16x128xi32>
    %762 = arith.cmpi eq, %760, %761 : vector<16x128xi32>
    %cst_600 = arith.constant 1.000000e+00 : f32
    %cst_601 = arith.constant 0.000000e+00 : f32
    %763 = vector.broadcast %cst_600 : f32 to vector<16x128xf32>
    %764 = vector.broadcast %cst_601 : f32 to vector<16x128xf32>
    %765 = arith.select %762, %763, %764 : vector<16x128xi1>, vector<16x128xf32>
    %766 = arith.addf %758, %765 : vector<16x128xf32>
    %767 = arith.cmpf ogt, %766, %691 : vector<16x128xf32>
    %768 = arith.select %767, %766, %691 : vector<16x128xi1>, vector<16x128xf32>
    %c7_i32_602 = arith.constant 7 : i32
    %769 = vector.broadcast %c7_i32_602 : i32 to vector<16x128xi32>
    %770 = arith.select %767, %769, %693 : vector<16x128xi1>, vector<16x128xi32>
    %cst_603 = arith.constant 0.000000e+00 : f32
    %771 = vector.broadcast %cst_603 : f32 to vector<16x128xf32>
    %cst_604 = arith.constant 0.000000e+00 : f32
    %772 = vector.broadcast %cst_604 : f32 to vector<16x128xf32>
    %cst_605 = arith.constant 0.000000e+00 : f32
    %773 = vector.broadcast %cst_605 : f32 to vector<16x128xf32>
    %c0_606 = arith.constant 0 : index
    %c0_607 = arith.constant 0 : index
    %c0_608 = arith.constant 0 : index
    %774 = vector.load %arg3[%c0_606, %c0_607, %c0_608] : memref<9x16x128xi32, #tpu.memory_space<vmem>>, vector<1x16x128xi32>
    %775 = vector.shape_cast %774 : vector<1x16x128xi32> to vector<16x128xi32>
    %776 = arith.cmpi eq, %775, %770 : vector<16x128xi32>
    %c0_609 = arith.constant 0 : index
    %c0_610 = arith.constant 0 : index
    %c0_611 = arith.constant 0 : index
    %c0_612 = arith.constant 0 : index
    %c0_613 = arith.constant 0 : index
    %777 = vector.load %arg1[%c0_609, %c0_610, %c0_611, %c0_612, %c0_613] : memref<3x3x3x16x128xbf16, #tpu.memory_space<vmem>>, vector<1x1x1x16x128xbf16>
    %778 = vector.shape_cast %777 : vector<1x1x1x16x128xbf16> to vector<16x128xbf16>
    %779 = arith.extf %778 : vector<16x128xbf16> to vector<16x128xf32>
    %cst_614 = arith.constant 0.000000e+00 : f32
    %780 = vector.broadcast %cst_614 : f32 to vector<16x128xf32>
    %781 = arith.select %776, %779, %780 : vector<16x128xi1>, vector<16x128xf32>
    %782 = arith.addf %771, %781 : vector<16x128xf32>
    %c0_615 = arith.constant 0 : index
    %c0_616 = arith.constant 0 : index
    %c1_617 = arith.constant 1 : index
    %c0_618 = arith.constant 0 : index
    %c0_619 = arith.constant 0 : index
    %783 = vector.load %arg1[%c0_615, %c0_616, %c1_617, %c0_618, %c0_619] : memref<3x3x3x16x128xbf16, #tpu.memory_space<vmem>>, vector<1x1x1x16x128xbf16>
    %784 = vector.shape_cast %783 : vector<1x1x1x16x128xbf16> to vector<16x128xbf16>
    %785 = arith.extf %784 : vector<16x128xbf16> to vector<16x128xf32>
    %cst_620 = arith.constant 0.000000e+00 : f32
    %786 = vector.broadcast %cst_620 : f32 to vector<16x128xf32>
    %787 = arith.select %776, %785, %786 : vector<16x128xi1>, vector<16x128xf32>
    %788 = arith.addf %772, %787 : vector<16x128xf32>
    %c0_621 = arith.constant 0 : index
    %c0_622 = arith.constant 0 : index
    %c2_623 = arith.constant 2 : index
    %c0_624 = arith.constant 0 : index
    %c0_625 = arith.constant 0 : index
    %789 = vector.load %arg1[%c0_621, %c0_622, %c2_623, %c0_624, %c0_625] : memref<3x3x3x16x128xbf16, #tpu.memory_space<vmem>>, vector<1x1x1x16x128xbf16>
    %790 = vector.shape_cast %789 : vector<1x1x1x16x128xbf16> to vector<16x128xbf16>
    %791 = arith.extf %790 : vector<16x128xbf16> to vector<16x128xf32>
    %cst_626 = arith.constant 0.000000e+00 : f32
    %792 = vector.broadcast %cst_626 : f32 to vector<16x128xf32>
    %793 = arith.select %776, %791, %792 : vector<16x128xi1>, vector<16x128xf32>
    %794 = arith.addf %773, %793 : vector<16x128xf32>
    %c1_627 = arith.constant 1 : index
    %c0_628 = arith.constant 0 : index
    %c0_629 = arith.constant 0 : index
    %795 = vector.load %arg3[%c1_627, %c0_628, %c0_629] : memref<9x16x128xi32, #tpu.memory_space<vmem>>, vector<1x16x128xi32>
    %796 = vector.shape_cast %795 : vector<1x16x128xi32> to vector<16x128xi32>
    %797 = arith.cmpi eq, %796, %770 : vector<16x128xi32>
    %c0_630 = arith.constant 0 : index
    %c1_631 = arith.constant 1 : index
    %c0_632 = arith.constant 0 : index
    %c0_633 = arith.constant 0 : index
    %c0_634 = arith.constant 0 : index
    %798 = vector.load %arg1[%c0_630, %c1_631, %c0_632, %c0_633, %c0_634] : memref<3x3x3x16x128xbf16, #tpu.memory_space<vmem>>, vector<1x1x1x16x128xbf16>
    %799 = vector.shape_cast %798 : vector<1x1x1x16x128xbf16> to vector<16x128xbf16>
    %800 = arith.extf %799 : vector<16x128xbf16> to vector<16x128xf32>
    %cst_635 = arith.constant 0.000000e+00 : f32
    %801 = vector.broadcast %cst_635 : f32 to vector<16x128xf32>
    %802 = arith.select %797, %800, %801 : vector<16x128xi1>, vector<16x128xf32>
    %803 = arith.addf %782, %802 : vector<16x128xf32>
    %c0_636 = arith.constant 0 : index
    %c1_637 = arith.constant 1 : index
    %c1_638 = arith.constant 1 : index
    %c0_639 = arith.constant 0 : index
    %c0_640 = arith.constant 0 : index
    %804 = vector.load %arg1[%c0_636, %c1_637, %c1_638, %c0_639, %c0_640] : memref<3x3x3x16x128xbf16, #tpu.memory_space<vmem>>, vector<1x1x1x16x128xbf16>
    %805 = vector.shape_cast %804 : vector<1x1x1x16x128xbf16> to vector<16x128xbf16>
    %806 = arith.extf %805 : vector<16x128xbf16> to vector<16x128xf32>
    %cst_641 = arith.constant 0.000000e+00 : f32
    %807 = vector.broadcast %cst_641 : f32 to vector<16x128xf32>
    %808 = arith.select %797, %806, %807 : vector<16x128xi1>, vector<16x128xf32>
    %809 = arith.addf %788, %808 : vector<16x128xf32>
    %c0_642 = arith.constant 0 : index
    %c1_643 = arith.constant 1 : index
    %c2_644 = arith.constant 2 : index
    %c0_645 = arith.constant 0 : index
    %c0_646 = arith.constant 0 : index
    %810 = vector.load %arg1[%c0_642, %c1_643, %c2_644, %c0_645, %c0_646] : memref<3x3x3x16x128xbf16, #tpu.memory_space<vmem>>, vector<1x1x1x16x128xbf16>
    %811 = vector.shape_cast %810 : vector<1x1x1x16x128xbf16> to vector<16x128xbf16>
    %812 = arith.extf %811 : vector<16x128xbf16> to vector<16x128xf32>
    %cst_647 = arith.constant 0.000000e+00 : f32
    %813 = vector.broadcast %cst_647 : f32 to vector<16x128xf32>
    %814 = arith.select %797, %812, %813 : vector<16x128xi1>, vector<16x128xf32>
    %815 = arith.addf %794, %814 : vector<16x128xf32>
    %c2_648 = arith.constant 2 : index
    %c0_649 = arith.constant 0 : index
    %c0_650 = arith.constant 0 : index
    %816 = vector.load %arg3[%c2_648, %c0_649, %c0_650] : memref<9x16x128xi32, #tpu.memory_space<vmem>>, vector<1x16x128xi32>
    %817 = vector.shape_cast %816 : vector<1x16x128xi32> to vector<16x128xi32>
    %818 = arith.cmpi eq, %817, %770 : vector<16x128xi32>
    %c0_651 = arith.constant 0 : index
    %c2_652 = arith.constant 2 : index
    %c0_653 = arith.constant 0 : index
    %c0_654 = arith.constant 0 : index
    %c0_655 = arith.constant 0 : index
    %819 = vector.load %arg1[%c0_651, %c2_652, %c0_653, %c0_654, %c0_655] : memref<3x3x3x16x128xbf16, #tpu.memory_space<vmem>>, vector<1x1x1x16x128xbf16>
    %820 = vector.shape_cast %819 : vector<1x1x1x16x128xbf16> to vector<16x128xbf16>
    %821 = arith.extf %820 : vector<16x128xbf16> to vector<16x128xf32>
    %cst_656 = arith.constant 0.000000e+00 : f32
    %822 = vector.broadcast %cst_656 : f32 to vector<16x128xf32>
    %823 = arith.select %818, %821, %822 : vector<16x128xi1>, vector<16x128xf32>
    %824 = arith.addf %803, %823 : vector<16x128xf32>
    %c0_657 = arith.constant 0 : index
    %c2_658 = arith.constant 2 : index
    %c1_659 = arith.constant 1 : index
    %c0_660 = arith.constant 0 : index
    %c0_661 = arith.constant 0 : index
    %825 = vector.load %arg1[%c0_657, %c2_658, %c1_659, %c0_660, %c0_661] : memref<3x3x3x16x128xbf16, #tpu.memory_space<vmem>>, vector<1x1x1x16x128xbf16>
    %826 = vector.shape_cast %825 : vector<1x1x1x16x128xbf16> to vector<16x128xbf16>
    %827 = arith.extf %826 : vector<16x128xbf16> to vector<16x128xf32>
    %cst_662 = arith.constant 0.000000e+00 : f32
    %828 = vector.broadcast %cst_662 : f32 to vector<16x128xf32>
    %829 = arith.select %818, %827, %828 : vector<16x128xi1>, vector<16x128xf32>
    %830 = arith.addf %809, %829 : vector<16x128xf32>
    %c0_663 = arith.constant 0 : index
    %c2_664 = arith.constant 2 : index
    %c2_665 = arith.constant 2 : index
    %c0_666 = arith.constant 0 : index
    %c0_667 = arith.constant 0 : index
    %831 = vector.load %arg1[%c0_663, %c2_664, %c2_665, %c0_666, %c0_667] : memref<3x3x3x16x128xbf16, #tpu.memory_space<vmem>>, vector<1x1x1x16x128xbf16>
    %832 = vector.shape_cast %831 : vector<1x1x1x16x128xbf16> to vector<16x128xbf16>
    %833 = arith.extf %832 : vector<16x128xbf16> to vector<16x128xf32>
    %cst_668 = arith.constant 0.000000e+00 : f32
    %834 = vector.broadcast %cst_668 : f32 to vector<16x128xf32>
    %835 = arith.select %818, %833, %834 : vector<16x128xi1>, vector<16x128xf32>
    %836 = arith.addf %815, %835 : vector<16x128xf32>
    %c3_669 = arith.constant 3 : index
    %c0_670 = arith.constant 0 : index
    %c0_671 = arith.constant 0 : index
    %837 = vector.load %arg3[%c3_669, %c0_670, %c0_671] : memref<9x16x128xi32, #tpu.memory_space<vmem>>, vector<1x16x128xi32>
    %838 = vector.shape_cast %837 : vector<1x16x128xi32> to vector<16x128xi32>
    %839 = arith.cmpi eq, %838, %770 : vector<16x128xi32>
    %c1_672 = arith.constant 1 : index
    %c0_673 = arith.constant 0 : index
    %c0_674 = arith.constant 0 : index
    %c0_675 = arith.constant 0 : index
    %c0_676 = arith.constant 0 : index
    %840 = vector.load %arg1[%c1_672, %c0_673, %c0_674, %c0_675, %c0_676] : memref<3x3x3x16x128xbf16, #tpu.memory_space<vmem>>, vector<1x1x1x16x128xbf16>
    %841 = vector.shape_cast %840 : vector<1x1x1x16x128xbf16> to vector<16x128xbf16>
    %842 = arith.extf %841 : vector<16x128xbf16> to vector<16x128xf32>
    %cst_677 = arith.constant 0.000000e+00 : f32
    %843 = vector.broadcast %cst_677 : f32 to vector<16x128xf32>
    %844 = arith.select %839, %842, %843 : vector<16x128xi1>, vector<16x128xf32>
    %845 = arith.addf %824, %844 : vector<16x128xf32>
    %c1_678 = arith.constant 1 : index
    %c0_679 = arith.constant 0 : index
    %c1_680 = arith.constant 1 : index
    %c0_681 = arith.constant 0 : index
    %c0_682 = arith.constant 0 : index
    %846 = vector.load %arg1[%c1_678, %c0_679, %c1_680, %c0_681, %c0_682] : memref<3x3x3x16x128xbf16, #tpu.memory_space<vmem>>, vector<1x1x1x16x128xbf16>
    %847 = vector.shape_cast %846 : vector<1x1x1x16x128xbf16> to vector<16x128xbf16>
    %848 = arith.extf %847 : vector<16x128xbf16> to vector<16x128xf32>
    %cst_683 = arith.constant 0.000000e+00 : f32
    %849 = vector.broadcast %cst_683 : f32 to vector<16x128xf32>
    %850 = arith.select %839, %848, %849 : vector<16x128xi1>, vector<16x128xf32>
    %851 = arith.addf %830, %850 : vector<16x128xf32>
    %c1_684 = arith.constant 1 : index
    %c0_685 = arith.constant 0 : index
    %c2_686 = arith.constant 2 : index
    %c0_687 = arith.constant 0 : index
    %c0_688 = arith.constant 0 : index
    %852 = vector.load %arg1[%c1_684, %c0_685, %c2_686, %c0_687, %c0_688] : memref<3x3x3x16x128xbf16, #tpu.memory_space<vmem>>, vector<1x1x1x16x128xbf16>
    %853 = vector.shape_cast %852 : vector<1x1x1x16x128xbf16> to vector<16x128xbf16>
    %854 = arith.extf %853 : vector<16x128xbf16> to vector<16x128xf32>
    %cst_689 = arith.constant 0.000000e+00 : f32
    %855 = vector.broadcast %cst_689 : f32 to vector<16x128xf32>
    %856 = arith.select %839, %854, %855 : vector<16x128xi1>, vector<16x128xf32>
    %857 = arith.addf %836, %856 : vector<16x128xf32>
    %c4_690 = arith.constant 4 : index
    %c0_691 = arith.constant 0 : index
    %c0_692 = arith.constant 0 : index
    %858 = vector.load %arg3[%c4_690, %c0_691, %c0_692] : memref<9x16x128xi32, #tpu.memory_space<vmem>>, vector<1x16x128xi32>
    %859 = vector.shape_cast %858 : vector<1x16x128xi32> to vector<16x128xi32>
    %860 = arith.cmpi eq, %859, %770 : vector<16x128xi32>
    %c1_693 = arith.constant 1 : index
    %c1_694 = arith.constant 1 : index
    %c0_695 = arith.constant 0 : index
    %c0_696 = arith.constant 0 : index
    %c0_697 = arith.constant 0 : index
    %861 = vector.load %arg1[%c1_693, %c1_694, %c0_695, %c0_696, %c0_697] : memref<3x3x3x16x128xbf16, #tpu.memory_space<vmem>>, vector<1x1x1x16x128xbf16>
    %862 = vector.shape_cast %861 : vector<1x1x1x16x128xbf16> to vector<16x128xbf16>
    %863 = arith.extf %862 : vector<16x128xbf16> to vector<16x128xf32>
    %cst_698 = arith.constant 0.000000e+00 : f32
    %864 = vector.broadcast %cst_698 : f32 to vector<16x128xf32>
    %865 = arith.select %860, %863, %864 : vector<16x128xi1>, vector<16x128xf32>
    %866 = arith.addf %845, %865 : vector<16x128xf32>
    %c1_699 = arith.constant 1 : index
    %c1_700 = arith.constant 1 : index
    %c1_701 = arith.constant 1 : index
    %c0_702 = arith.constant 0 : index
    %c0_703 = arith.constant 0 : index
    %867 = vector.load %arg1[%c1_699, %c1_700, %c1_701, %c0_702, %c0_703] : memref<3x3x3x16x128xbf16, #tpu.memory_space<vmem>>, vector<1x1x1x16x128xbf16>
    %868 = vector.shape_cast %867 : vector<1x1x1x16x128xbf16> to vector<16x128xbf16>
    %869 = arith.extf %868 : vector<16x128xbf16> to vector<16x128xf32>
    %cst_704 = arith.constant 0.000000e+00 : f32
    %870 = vector.broadcast %cst_704 : f32 to vector<16x128xf32>
    %871 = arith.select %860, %869, %870 : vector<16x128xi1>, vector<16x128xf32>
    %872 = arith.addf %851, %871 : vector<16x128xf32>
    %c1_705 = arith.constant 1 : index
    %c1_706 = arith.constant 1 : index
    %c2_707 = arith.constant 2 : index
    %c0_708 = arith.constant 0 : index
    %c0_709 = arith.constant 0 : index
    %873 = vector.load %arg1[%c1_705, %c1_706, %c2_707, %c0_708, %c0_709] : memref<3x3x3x16x128xbf16, #tpu.memory_space<vmem>>, vector<1x1x1x16x128xbf16>
    %874 = vector.shape_cast %873 : vector<1x1x1x16x128xbf16> to vector<16x128xbf16>
    %875 = arith.extf %874 : vector<16x128xbf16> to vector<16x128xf32>
    %cst_710 = arith.constant 0.000000e+00 : f32
    %876 = vector.broadcast %cst_710 : f32 to vector<16x128xf32>
    %877 = arith.select %860, %875, %876 : vector<16x128xi1>, vector<16x128xf32>
    %878 = arith.addf %857, %877 : vector<16x128xf32>
    %c5_711 = arith.constant 5 : index
    %c0_712 = arith.constant 0 : index
    %c0_713 = arith.constant 0 : index
    %879 = vector.load %arg3[%c5_711, %c0_712, %c0_713] : memref<9x16x128xi32, #tpu.memory_space<vmem>>, vector<1x16x128xi32>
    %880 = vector.shape_cast %879 : vector<1x16x128xi32> to vector<16x128xi32>
    %881 = arith.cmpi eq, %880, %770 : vector<16x128xi32>
    %c1_714 = arith.constant 1 : index
    %c2_715 = arith.constant 2 : index
    %c0_716 = arith.constant 0 : index
    %c0_717 = arith.constant 0 : index
    %c0_718 = arith.constant 0 : index
    %882 = vector.load %arg1[%c1_714, %c2_715, %c0_716, %c0_717, %c0_718] : memref<3x3x3x16x128xbf16, #tpu.memory_space<vmem>>, vector<1x1x1x16x128xbf16>
    %883 = vector.shape_cast %882 : vector<1x1x1x16x128xbf16> to vector<16x128xbf16>
    %884 = arith.extf %883 : vector<16x128xbf16> to vector<16x128xf32>
    %cst_719 = arith.constant 0.000000e+00 : f32
    %885 = vector.broadcast %cst_719 : f32 to vector<16x128xf32>
    %886 = arith.select %881, %884, %885 : vector<16x128xi1>, vector<16x128xf32>
    %887 = arith.addf %866, %886 : vector<16x128xf32>
    %c1_720 = arith.constant 1 : index
    %c2_721 = arith.constant 2 : index
    %c1_722 = arith.constant 1 : index
    %c0_723 = arith.constant 0 : index
    %c0_724 = arith.constant 0 : index
    %888 = vector.load %arg1[%c1_720, %c2_721, %c1_722, %c0_723, %c0_724] : memref<3x3x3x16x128xbf16, #tpu.memory_space<vmem>>, vector<1x1x1x16x128xbf16>
    %889 = vector.shape_cast %888 : vector<1x1x1x16x128xbf16> to vector<16x128xbf16>
    %890 = arith.extf %889 : vector<16x128xbf16> to vector<16x128xf32>
    %cst_725 = arith.constant 0.000000e+00 : f32
    %891 = vector.broadcast %cst_725 : f32 to vector<16x128xf32>
    %892 = arith.select %881, %890, %891 : vector<16x128xi1>, vector<16x128xf32>
    %893 = arith.addf %872, %892 : vector<16x128xf32>
    %c1_726 = arith.constant 1 : index
    %c2_727 = arith.constant 2 : index
    %c2_728 = arith.constant 2 : index
    %c0_729 = arith.constant 0 : index
    %c0_730 = arith.constant 0 : index
    %894 = vector.load %arg1[%c1_726, %c2_727, %c2_728, %c0_729, %c0_730] : memref<3x3x3x16x128xbf16, #tpu.memory_space<vmem>>, vector<1x1x1x16x128xbf16>
    %895 = vector.shape_cast %894 : vector<1x1x1x16x128xbf16> to vector<16x128xbf16>
    %896 = arith.extf %895 : vector<16x128xbf16> to vector<16x128xf32>
    %cst_731 = arith.constant 0.000000e+00 : f32
    %897 = vector.broadcast %cst_731 : f32 to vector<16x128xf32>
    %898 = arith.select %881, %896, %897 : vector<16x128xi1>, vector<16x128xf32>
    %899 = arith.addf %878, %898 : vector<16x128xf32>
    %c6_732 = arith.constant 6 : index
    %c0_733 = arith.constant 0 : index
    %c0_734 = arith.constant 0 : index
    %900 = vector.load %arg3[%c6_732, %c0_733, %c0_734] : memref<9x16x128xi32, #tpu.memory_space<vmem>>, vector<1x16x128xi32>
    %901 = vector.shape_cast %900 : vector<1x16x128xi32> to vector<16x128xi32>
    %902 = arith.cmpi eq, %901, %770 : vector<16x128xi32>
    %c2_735 = arith.constant 2 : index
    %c0_736 = arith.constant 0 : index
    %c0_737 = arith.constant 0 : index
    %c0_738 = arith.constant 0 : index
    %c0_739 = arith.constant 0 : index
    %903 = vector.load %arg1[%c2_735, %c0_736, %c0_737, %c0_738, %c0_739] : memref<3x3x3x16x128xbf16, #tpu.memory_space<vmem>>, vector<1x1x1x16x128xbf16>
    %904 = vector.shape_cast %903 : vector<1x1x1x16x128xbf16> to vector<16x128xbf16>
    %905 = arith.extf %904 : vector<16x128xbf16> to vector<16x128xf32>
    %cst_740 = arith.constant 0.000000e+00 : f32
    %906 = vector.broadcast %cst_740 : f32 to vector<16x128xf32>
    %907 = arith.select %902, %905, %906 : vector<16x128xi1>, vector<16x128xf32>
    %908 = arith.addf %887, %907 : vector<16x128xf32>
    %c2_741 = arith.constant 2 : index
    %c0_742 = arith.constant 0 : index
    %c1_743 = arith.constant 1 : index
    %c0_744 = arith.constant 0 : index
    %c0_745 = arith.constant 0 : index
    %909 = vector.load %arg1[%c2_741, %c0_742, %c1_743, %c0_744, %c0_745] : memref<3x3x3x16x128xbf16, #tpu.memory_space<vmem>>, vector<1x1x1x16x128xbf16>
    %910 = vector.shape_cast %909 : vector<1x1x1x16x128xbf16> to vector<16x128xbf16>
    %911 = arith.extf %910 : vector<16x128xbf16> to vector<16x128xf32>
    %cst_746 = arith.constant 0.000000e+00 : f32
    %912 = vector.broadcast %cst_746 : f32 to vector<16x128xf32>
    %913 = arith.select %902, %911, %912 : vector<16x128xi1>, vector<16x128xf32>
    %914 = arith.addf %893, %913 : vector<16x128xf32>
    %c2_747 = arith.constant 2 : index
    %c0_748 = arith.constant 0 : index
    %c2_749 = arith.constant 2 : index
    %c0_750 = arith.constant 0 : index
    %c0_751 = arith.constant 0 : index
    %915 = vector.load %arg1[%c2_747, %c0_748, %c2_749, %c0_750, %c0_751] : memref<3x3x3x16x128xbf16, #tpu.memory_space<vmem>>, vector<1x1x1x16x128xbf16>
    %916 = vector.shape_cast %915 : vector<1x1x1x16x128xbf16> to vector<16x128xbf16>
    %917 = arith.extf %916 : vector<16x128xbf16> to vector<16x128xf32>
    %cst_752 = arith.constant 0.000000e+00 : f32
    %918 = vector.broadcast %cst_752 : f32 to vector<16x128xf32>
    %919 = arith.select %902, %917, %918 : vector<16x128xi1>, vector<16x128xf32>
    %920 = arith.addf %899, %919 : vector<16x128xf32>
    %c7_753 = arith.constant 7 : index
    %c0_754 = arith.constant 0 : index
    %c0_755 = arith.constant 0 : index
    %921 = vector.load %arg3[%c7_753, %c0_754, %c0_755] : memref<9x16x128xi32, #tpu.memory_space<vmem>>, vector<1x16x128xi32>
    %922 = vector.shape_cast %921 : vector<1x16x128xi32> to vector<16x128xi32>
    %923 = arith.cmpi eq, %922, %770 : vector<16x128xi32>
    %c2_756 = arith.constant 2 : index
    %c1_757 = arith.constant 1 : index
    %c0_758 = arith.constant 0 : index
    %c0_759 = arith.constant 0 : index
    %c0_760 = arith.constant 0 : index
    %924 = vector.load %arg1[%c2_756, %c1_757, %c0_758, %c0_759, %c0_760] : memref<3x3x3x16x128xbf16, #tpu.memory_space<vmem>>, vector<1x1x1x16x128xbf16>
    %925 = vector.shape_cast %924 : vector<1x1x1x16x128xbf16> to vector<16x128xbf16>
    %926 = arith.extf %925 : vector<16x128xbf16> to vector<16x128xf32>
    %cst_761 = arith.constant 0.000000e+00 : f32
    %927 = vector.broadcast %cst_761 : f32 to vector<16x128xf32>
    %928 = arith.select %923, %926, %927 : vector<16x128xi1>, vector<16x128xf32>
    %929 = arith.addf %908, %928 : vector<16x128xf32>
    %c2_762 = arith.constant 2 : index
    %c1_763 = arith.constant 1 : index
    %c1_764 = arith.constant 1 : index
    %c0_765 = arith.constant 0 : index
    %c0_766 = arith.constant 0 : index
    %930 = vector.load %arg1[%c2_762, %c1_763, %c1_764, %c0_765, %c0_766] : memref<3x3x3x16x128xbf16, #tpu.memory_space<vmem>>, vector<1x1x1x16x128xbf16>
    %931 = vector.shape_cast %930 : vector<1x1x1x16x128xbf16> to vector<16x128xbf16>
    %932 = arith.extf %931 : vector<16x128xbf16> to vector<16x128xf32>
    %cst_767 = arith.constant 0.000000e+00 : f32
    %933 = vector.broadcast %cst_767 : f32 to vector<16x128xf32>
    %934 = arith.select %923, %932, %933 : vector<16x128xi1>, vector<16x128xf32>
    %935 = arith.addf %914, %934 : vector<16x128xf32>
    %c2_768 = arith.constant 2 : index
    %c1_769 = arith.constant 1 : index
    %c2_770 = arith.constant 2 : index
    %c0_771 = arith.constant 0 : index
    %c0_772 = arith.constant 0 : index
    %936 = vector.load %arg1[%c2_768, %c1_769, %c2_770, %c0_771, %c0_772] : memref<3x3x3x16x128xbf16, #tpu.memory_space<vmem>>, vector<1x1x1x16x128xbf16>
    %937 = vector.shape_cast %936 : vector<1x1x1x16x128xbf16> to vector<16x128xbf16>
    %938 = arith.extf %937 : vector<16x128xbf16> to vector<16x128xf32>
    %cst_773 = arith.constant 0.000000e+00 : f32
    %939 = vector.broadcast %cst_773 : f32 to vector<16x128xf32>
    %940 = arith.select %923, %938, %939 : vector<16x128xi1>, vector<16x128xf32>
    %941 = arith.addf %920, %940 : vector<16x128xf32>
    %c8_774 = arith.constant 8 : index
    %c0_775 = arith.constant 0 : index
    %c0_776 = arith.constant 0 : index
    %942 = vector.load %arg3[%c8_774, %c0_775, %c0_776] : memref<9x16x128xi32, #tpu.memory_space<vmem>>, vector<1x16x128xi32>
    %943 = vector.shape_cast %942 : vector<1x16x128xi32> to vector<16x128xi32>
    %944 = arith.cmpi eq, %943, %770 : vector<16x128xi32>
    %c2_777 = arith.constant 2 : index
    %c2_778 = arith.constant 2 : index
    %c0_779 = arith.constant 0 : index
    %c0_780 = arith.constant 0 : index
    %c0_781 = arith.constant 0 : index
    %945 = vector.load %arg1[%c2_777, %c2_778, %c0_779, %c0_780, %c0_781] : memref<3x3x3x16x128xbf16, #tpu.memory_space<vmem>>, vector<1x1x1x16x128xbf16>
    %946 = vector.shape_cast %945 : vector<1x1x1x16x128xbf16> to vector<16x128xbf16>
    %947 = arith.extf %946 : vector<16x128xbf16> to vector<16x128xf32>
    %cst_782 = arith.constant 0.000000e+00 : f32
    %948 = vector.broadcast %cst_782 : f32 to vector<16x128xf32>
    %949 = arith.select %944, %947, %948 : vector<16x128xi1>, vector<16x128xf32>
    %950 = arith.addf %929, %949 : vector<16x128xf32>
    %c2_783 = arith.constant 2 : index
    %c2_784 = arith.constant 2 : index
    %c1_785 = arith.constant 1 : index
    %c0_786 = arith.constant 0 : index
    %c0_787 = arith.constant 0 : index
    %951 = vector.load %arg1[%c2_783, %c2_784, %c1_785, %c0_786, %c0_787] : memref<3x3x3x16x128xbf16, #tpu.memory_space<vmem>>, vector<1x1x1x16x128xbf16>
    %952 = vector.shape_cast %951 : vector<1x1x1x16x128xbf16> to vector<16x128xbf16>
    %953 = arith.extf %952 : vector<16x128xbf16> to vector<16x128xf32>
    %cst_788 = arith.constant 0.000000e+00 : f32
    %954 = vector.broadcast %cst_788 : f32 to vector<16x128xf32>
    %955 = arith.select %944, %953, %954 : vector<16x128xi1>, vector<16x128xf32>
    %956 = arith.addf %935, %955 : vector<16x128xf32>
    %c2_789 = arith.constant 2 : index
    %c2_790 = arith.constant 2 : index
    %c2_791 = arith.constant 2 : index
    %c0_792 = arith.constant 0 : index
    %c0_793 = arith.constant 0 : index
    %957 = vector.load %arg1[%c2_789, %c2_790, %c2_791, %c0_792, %c0_793] : memref<3x3x3x16x128xbf16, #tpu.memory_space<vmem>>, vector<1x1x1x16x128xbf16>
    %958 = vector.shape_cast %957 : vector<1x1x1x16x128xbf16> to vector<16x128xbf16>
    %959 = arith.extf %958 : vector<16x128xbf16> to vector<16x128xf32>
    %cst_794 = arith.constant 0.000000e+00 : f32
    %960 = vector.broadcast %cst_794 : f32 to vector<16x128xf32>
    %961 = arith.select %944, %959, %960 : vector<16x128xi1>, vector<16x128xf32>
    %962 = arith.addf %941, %961 : vector<16x128xf32>
    %cst_795 = arith.constant 1.000000e+00 : f32
    %963 = vector.broadcast %cst_795 : f32 to vector<16x128xf32>
    %964 = arith.maximumf %768, %963 : vector<16x128xf32>
    %965 = tpu.reciprocal %964 {approx = true} : vector<16x128xf32> -> vector<16x128xf32>
    %966 = arith.mulf %950, %965 : vector<16x128xf32>
    %c0_796 = arith.constant 0 : index
    %c0_797 = arith.constant 0 : index
    %c0_798 = arith.constant 0 : index
    %967 = vector.load %arg2[%c0_796, %c0_797, %c0_798] : memref<3x16x128xf32, #tpu.memory_space<vmem>>, vector<1x16x128xf32>
    %968 = vector.shape_cast %967 : vector<1x16x128xf32> to vector<16x128xf32>
    %969 = vector.shape_cast %966 : vector<16x128xf32> to vector<1x16x128xf32>
    tpu.vector_store %arg2[%c0_796, %c0_797, %c0_798], %969 {strides = array<i32>} : memref<3x16x128xf32, #tpu.memory_space<vmem>>, vector<1x16x128xf32>,
    %970 = arith.mulf %956, %965 : vector<16x128xf32>
    %c1_799 = arith.constant 1 : index
    %c0_800 = arith.constant 0 : index
    %c0_801 = arith.constant 0 : index
    %971 = vector.load %arg2[%c1_799, %c0_800, %c0_801] : memref<3x16x128xf32, #tpu.memory_space<vmem>>, vector<1x16x128xf32>
    %972 = vector.shape_cast %971 : vector<1x16x128xf32> to vector<16x128xf32>
    %973 = vector.shape_cast %970 : vector<16x128xf32> to vector<1x16x128xf32>
    tpu.vector_store %arg2[%c1_799, %c0_800, %c0_801], %973 {strides = array<i32>} : memref<3x16x128xf32, #tpu.memory_space<vmem>>, vector<1x16x128xf32>,
    %974 = arith.mulf %962, %965 : vector<16x128xf32>
    %c2_802 = arith.constant 2 : index
    %c0_803 = arith.constant 0 : index
    %c0_804 = arith.constant 0 : index
    %975 = vector.load %arg2[%c2_802, %c0_803, %c0_804] : memref<3x16x128xf32, #tpu.memory_space<vmem>>, vector<1x16x128xf32>
    %976 = vector.shape_cast %975 : vector<1x16x128xf32> to vector<16x128xf32>
    %977 = vector.shape_cast %974 : vector<16x128xf32> to vector<1x16x128xf32>
    tpu.vector_store %arg2[%c2_802, %c0_803, %c0_804], %977 {strides = array<i32>} : memref<3x16x128xf32, #tpu.memory_space<vmem>>, vector<1x16x128xf32>,
    return
  }
  func.func @transform_0(%arg0: i32) -> (i32, i32, i32, i32, i32) {
    %c0_i32 = arith.constant 0 : i32
    %c0_i32_0 = arith.constant 0 : i32
    %c0_i32_1 = arith.constant 0 : i32
    %c0_i32_2 = arith.constant 0 : i32
    %c0_i32_3 = arith.constant 0 : i32
    return %c0_i32, %c0_i32_0, %c0_i32_1, %arg0, %c0_i32_2 : i32, i32, i32, i32, i32
  }
  func.func @transform_1(%arg0: i32) -> (i32, i32, i32) {
    %c0_i32 = arith.constant 0 : i32
    %c0_i32_0 = arith.constant 0 : i32
    %c0_i32_1 = arith.constant 0 : i32
    return %c0_i32, %arg0, %c0_i32_0 : i32, i32, i32
  }
}

</mosaic_0001>

<bundles_post_ra>
// kernel: pixel_effect.1
= control target key start
LH: loop header
LB: loop body
LE: loop exit
PB: predicated region body
PF: predicated region fallthrough
CT: control target
= control target key end

     0   :  { %s2322_s0 = inlined_call_operand.vmem [shape: bf16[4,4,3,16,128], index: 0, kind: input, shape index: {}]   ;;  %s2323_s1 = inlined_call_operand.vmem [shape: f32[3,16,128], index: 1, kind: output, shape index: {}]  }
   0x1   :  { %v24_v0 = vld [vmem:[%s2322_s0] sm:$0xff]   ;;  %v28_v1 = vld [vmem:[%s2322_s0 + $0x8] sm:$0xff]   ;;  %v36_v2 = vld [vmem:[%s2322_s0 + $0x18] sm:$0xff]  }
   0x2   :  { %25 = vst [vmem:[#allocation3] sm:$0xff] %v24_v0   ;;  %29 = vst [vmem:[#allocation3 + $0x8] sm:$0xff] %v28_v1   ;;  %v40_v3 = vld [vmem:[%s2322_s0 + $0x20] sm:$0xff]   ;;  %v32_v4 = vld [vmem:[%s2322_s0 + $0x10] sm:$0xff]  }
   0x3   :  { %37 = vst [vmem:[#allocation3 + $0x18] sm:$0xff] %v36_v2   ;;  %v44_v5 = vld [vmem:[%s2322_s0 + $0x28] sm:$0xff]   ;;  %41 = vst [vmem:[#allocation3 + $0x20] sm:$0xff] %v40_v3   ;;  %v48_v6 = vld [vmem:[%s2322_s0 + $0x30] sm:$0xff]  }
   0x4   :  { %33 = vst [vmem:[#allocation3 + $0x10] sm:$0xff] %v32_v4   ;;  %45 = vst [vmem:[#allocation3 + $0x28] sm:$0xff] %v44_v5   ;;  %v52_v7 = vld [vmem:[%s2322_s0 + $0x38] sm:$0xff]   ;;  %v56_v8 = vld [vmem:[%s2322_s0 + $0x40] sm:$0xff]  }
   0x5   :  { %49 = vst [vmem:[#allocation3 + $0x30] sm:$0xff] %v48_v6   ;;  %53 = vst [vmem:[#allocation3 + $0x38] sm:$0xff] %v52_v7   ;;  %v60_v9 = vld [vmem:[%s2322_s0 + $0x60] sm:$0xff]   ;;  %v64_v10 = vld [vmem:[%s2322_s0 + $0x68] sm:$0xff]  }
   0x6   :  { %57 = vst [vmem:[#allocation3 + $0x40] sm:$0xff] %v56_v8   ;;  %v68_v11 = vld [vmem:[%s2322_s0 + $0x70] sm:$0xff]   ;;  %61 = vst [vmem:[#allocation3 + $0x48] sm:$0xff] %v60_v9   ;;  %v72_v12 = vld [vmem:[%s2322_s0 + $0x78] sm:$0xff]  }
   0x7   :  { %65 = vst [vmem:[#allocation3 + $0x50] sm:$0xff] %v64_v10   ;;  %69 = vst [vmem:[#allocation3 + $0x58] sm:$0xff] %v68_v11   ;;  %v76_v13 = vld [vmem:[%s2322_s0 + $0x80] sm:$0xff]   ;;  %v80_v14 = vld [vmem:[%s2322_s0 + $0x88] sm:$0xff]  }
   0x8   :  { %73 = vst [vmem:[#allocation3 + $0x60] sm:$0xff] %v72_v12   ;;  %77 = vst [vmem:[#allocation3 + $0x68] sm:$0xff] %v76_v13   ;;  %v84_v15 = vld [vmem:[%s2322_s0 + $0x90] sm:$0xff]   ;;  %v88_v16 = vld [vmem:[%s2322_s0 + $0x98] sm:$0xff]  }
   0x9   :  { %81 = vst [vmem:[#allocation3 + $0x70] sm:$0xff] %v80_v14   ;;  %v92_v17 = vld [vmem:[%s2322_s0 + $0xa0] sm:$0xff]   ;;  %85 = vst [vmem:[#allocation3 + $0x78] sm:$0xff] %v84_v15   ;;  %v100_v19 = vld [vmem:[%s2322_s0 + $0xc8] sm:$0xff]  }
   0xa   :  { %89 = vst [vmem:[#allocation3 + $0x80] sm:$0xff] %v88_v16   ;;  %93 = vst [vmem:[#allocation3 + $0x88] sm:$0xff] %v92_v17   ;;  %v96_v18 = vld [vmem:[%s2322_s0 + $0xc0] sm:$0xff]   ;;  %v104_v20 = vld [vmem:[%s2322_s0 + $0xd0] sm:$0xff]  }
   0xb   :  { %97 = vst [vmem:[#allocation3 + $0x90] sm:$0xff] %v96_v18   ;;  %101 = vst [vmem:[#allocation3 + $0x98] sm:$0xff] %v100_v19   ;;  %v108_v21 = vld [vmem:[%s2322_s0 + $0xd8] sm:$0xff]   ;;  %v112_v22 = vld [vmem:[%s2322_s0 + $0xe0] sm:$0xff]  }
   0xc   :  { %105 = vst [vmem:[#allocation3 + $0xa0] sm:$0xff] %v104_v20   ;;  %v116_v23 = vld [vmem:[%s2322_s0 + $0xe8] sm:$0xff]   ;;  %v1606_v24 = vld [vmem:[#allocation3] sm:$0xff]   ;;  %v1608_v26 = vld [vmem:[#allocation3 + $0x18] sm:$0xff]  }
   0xd   :  { %v1260_v25 = vld [vmem:[#allocation3 + $0x8] sm:$0xff]   ;;  %109 = vst [vmem:[#allocation3 + $0xa8] sm:$0xff] %v108_v21   ;;  %113 = vst [vmem:[#allocation3 + $0xb0] sm:$0xff] %v112_v22   ;;  %v1257_v27 = vunpack.c.l.bf16 %v1606_v24  ;;  %v1258_v28 = vunpack.c.h.bf16 %v1606_v24  ;;  %v1272_v31 = vld [vmem:[#allocation3 + $0x20] sm:$0xff]   ;;  %v1269_v34 = vunpack.c.l.bf16 %v1608_v26  ;;  %v1270_v35 = vunpack.c.h.bf16 %v1608_v26 }
   0xe   :  { %117 = vst [vmem:[#allocation3 + $0xb8] sm:$0xff] %v116_v23   ;;  %v1261_v29 = vunpack.c.l.bf16 %v1260_v25  ;;  %v1262_v30 = vunpack.c.h.bf16 %v1260_v25  ;;  %v1264_v32 = vld [vmem:[#allocation3 + $0x10] sm:$0xff]   ;;  %v1276_v33 = vld [vmem:[#allocation3 + $0x28] sm:$0xff]   ;;  %v1273_v36 = vunpack.c.l.bf16 %v1272_v31  ;;  %v1274_v37 = vunpack.c.h.bf16 %v1272_v31  ;;  %v1284_v43 = vld [vmem:[#allocation3 + $0x38] sm:$0xff]  }
   0xf   :  { %v1614_v38 = vld [vmem:[#allocation3 + $0x30] sm:$0xff]   ;;  %v1265_v41 = vunpack.c.l.bf16 %v1264_v32  ;;  %v1266_v42 = vunpack.c.h.bf16 %v1264_v32  ;;  %v1277_v46 = vunpack.c.l.bf16 %v1276_v33  ;;  %v1278_v47 = vunpack.c.h.bf16 %v1276_v33  ;;  %v1288_v48 = vld [vmem:[#allocation3 + $0x40] sm:$0xff]   ;;  %v1622_v57 = vld [vmem:[#allocation3 + $0x48] sm:$0xff]  }
  0x10   :  { %v272_v39 = vadd.f32 %v1261_v29, %v1257_v27  ;;  %v273_v40 = vadd.f32 %v1262_v30, %v1258_v28  ;;  %v297_v44 = vadd.f32 %v1273_v36, %v1269_v34  ;;  %v298_v45 = vadd.f32 %v1274_v37, %v1270_v35  ;;  %v1296_v2 = vld [vmem:[#allocation3 + $0x50] sm:$0xff]   ;;  %v124_v8 = vld [vmem:[%s2322_s0 + $0xf8] sm:$0xff]   ;;  %v128_v9 = vld [vmem:[%s2322_s0 + $0x100] sm:$0xff]  }
  0x11   :  { %v1281_v51 = vunpack.c.l.bf16 %v1614_v38  ;;  %v1282_v52 = vunpack.c.h.bf16 %v1614_v38  ;;  %v1285_v55 = vunpack.c.l.bf16 %v1284_v43  ;;  %v1286_v56 = vunpack.c.h.bf16 %v1284_v43  ;;  %v120_v3 = vld [vmem:[%s2322_s0 + $0xf0] sm:$0xff]   ;;  %v1300_v13 = vld [vmem:[#allocation3 + $0x58] sm:$0xff]   ;;  %125 = vst [vmem:[#allocation3 + $0xc8] sm:$0xff] %v124_v8   ;;  %129 = vst [vmem:[#allocation3 + $0xd0] sm:$0xff] %v128_v9  }
  0x12   :  { %v279_v49 = vadd.f32 %v1265_v41, %v272_v39  ;;  %v280_v50 = vadd.f32 %v1266_v42, %v273_v40  ;;  %v304_v53 = vadd.f32 %v1277_v46, %v297_v44  ;;  %v305_v54 = vadd.f32 %v1278_v47, %v298_v45  ;;  %121 = vst [vmem:[#allocation3 + $0xc0] sm:$0xff] %v120_v3   ;;  %v1639_v18 = vld [vmem:[#allocation3 + $0x60] sm:$0xff]   ;;  %v1308_v23 = vld [vmem:[#allocation3 + $0x68] sm:$0xff]   ;;  %v1312_v31 = vld [vmem:[#allocation3 + $0x70] sm:$0xff]  }
  0x13   :  { %v1289_v60 = vunpack.c.l.bf16 %v1288_v48  ;;  %v1290_v61 = vunpack.c.h.bf16 %v1288_v48  ;;  %v323_v0 = vadd.f32 %v1285_v55, %v1281_v51  ;;  %v324_v1 = vadd.f32 %v1286_v56, %v1282_v52  ;;  %v1649_v42 = vld [vmem:[#allocation3 + $0x78] sm:$0xff]   ;;  %v1320_v43 = vld [vmem:[#allocation3 + $0x80] sm:$0xff]  }
  0x14   :  { %v281_v58 = vmul.f32 0.010416667, %v279_v49  ;;  %v282_v59 = vmul.f32 0.010416667, %v280_v50  ;;  %v306_v62 = vmul.f32 0.010416667, %v304_v53  ;;  %v1293_v6 = vunpack.c.l.bf16 %v1622_v57 }
  0x15   :  { %v307_v63 = vmul.f32 0.010416667, %v305_v54  ;;  %v1294_v7 = vunpack.c.h.bf16 %v1622_v57  ;;  %v330_v11 = vadd.f32 %v1289_v60, %v323_v0  ;;  %v331_v12 = vadd.f32 %v1290_v61, %v324_v1  ;;  %v1324_v53 = vld [vmem:[#allocation3 + $0x88] sm:$0xff]  }
  0x16   :  { %v1471_v4 = vtrunc.f32 %v281_v58  ;;  %v1473_v5 = vtrunc.f32 %v282_v59  ;;  %v1475_v10 = vtrunc.f32 %v306_v62  ;;  %v1297_v16 = vunpack.c.l.bf16 %v1296_v2 }
  0x17   :  { %v1477_v15 = vtrunc.f32 %v307_v63  ;;  %v1298_v17 = vunpack.c.h.bf16 %v1296_v2  ;;  %v332_v21 = vmul.f32 0.010416667, %v330_v11  ;;  %v333_v22 = vmul.f32 0.010416667, %v331_v12  ;;  %v1661_v63 = vld [vmem:[#allocation3 + $0x90] sm:$0xff]  }
  0x18   :  { %v1637_v14 = vcvt.f32.s32 %v1471_v4  ;;  %v1641_v19 = vcvt.f32.s32 %v1473_v5  ;;  %v1643_v20 = vcvt.f32.s32 %v1475_v10  ;;  %v349_v25 = vadd.f32 %v1297_v16, %v1293_v6  ;;  %v1332_v4 = vld [vmem:[#allocation3 + $0x98] sm:$0xff]   ;;  %v1336_v10 = vld [vmem:[#allocation3 + $0xa0] sm:$0xff]  }
  0x19   :  { %v350_v28 = vadd.f32 %v1298_v17, %v1294_v7  ;;  %v1301_v29 = vunpack.c.l.bf16 %v1300_v13  ;;  %v1302_v30 = vunpack.c.h.bf16 %v1300_v13  ;;  %v1479_v32 = vtrunc.f32 %v332_v21 }
  0x1a   :  { %v1481_v33 = vtrunc.f32 %v333_v22  ;;  %v1305_v35 = vunpack.c.l.bf16 %v1639_v18  ;;  %v1306_v36 = vunpack.c.h.bf16 %v1639_v18  ;;  %v1309_v40 = vunpack.c.l.bf16 %v1308_v23 }
  0x1b   :  { %v356_v37 = vadd.f32 %v1301_v29, %v349_v25  ;;  %v357_v39 = vadd.f32 %v1302_v30, %v350_v28  ;;  %v1310_v41 = vunpack.c.h.bf16 %v1308_v23  ;;  %v1651_v44 = vcvt.f32.s32 %v1477_v15  ;;  %v1669_v23 = vld [vmem:[#allocation3 + $0xa8] sm:$0xff]  }
  0x1c   :  { %v1653_v45 = vcvt.f32.s32 %v1479_v32  ;;  %v1313_v46 = vunpack.c.l.bf16 %v1312_v31  ;;  %v1314_v47 = vunpack.c.h.bf16 %v1312_v31  ;;  %v375_v50 = vadd.f32 %v1309_v40, %v1305_v35  ;;  %v1344_v31 = vld [vmem:[#allocation3 + $0xb0] sm:$0xff]  }
  0x1d   :  { %v358_v48 = vmul.f32 0.010416667, %v356_v37  ;;  %v359_v49 = vmul.f32 0.010416667, %v357_v39  ;;  %v376_v52 = vadd.f32 %v1310_v41, %v1306_v36  ;;  %v1317_v54 = vunpack.c.l.bf16 %v1649_v42  ;;  %v1348_v39 = vld [vmem:[#allocation3 + $0xb8] sm:$0xff]  }
  0x1e   :  { %v1318_v55 = vunpack.c.h.bf16 %v1649_v42  ;;  %v1321_v56 = vunpack.c.l.bf16 %v1320_v43  ;;  %v1322_v58 = vunpack.c.h.bf16 %v1320_v43  ;;  %v1659_v59 = vcvt.f32.s32 %v1481_v33 }
  0x1f   :  { %v1483_v60 = vtrunc.f32 %v358_v48  ;;  %v382_v61 = vadd.f32 %v1313_v46, %v375_v50  ;;  %v383_v62 = vadd.f32 %v1314_v47, %v376_v52  ;;  %v1325_v2 = vunpack.c.l.bf16 %v1324_v53  ;;  %v1679_v52 = vld [vmem:[#allocation3 + $0xc0] sm:$0xff]  }
  0x20   :  { %v401_v0 = vadd.f32 %v1321_v56, %v1317_v54  ;;  %v402_v1 = vadd.f32 %v1322_v58, %v1318_v55  ;;  %v1326_v3 = vunpack.c.h.bf16 %v1324_v53  ;;  %v1485_v7 = vtrunc.f32 %v359_v49  ;;  %v1356_v53 = vld [vmem:[#allocation3 + $0xc8] sm:$0xff]  }
  0x21   :  { %v1665_v5 = vcvt.f32.s32 %v1483_v60  ;;  %v384_v8 = vmul.f32 0.010416667, %v382_v61  ;;  %v385_v9 = vmul.f32 0.010416667, %v383_v62  ;;  %v1329_v13 = vunpack.c.l.bf16 %v1661_v63 }
  0x22   :  { %v408_v11 = vadd.f32 %v1325_v2, %v401_v0  ;;  %v409_v12 = vadd.f32 %v1326_v3, %v402_v1  ;;  %v1330_v15 = vunpack.c.h.bf16 %v1661_v63  ;;  %v1333_v21 = vunpack.c.l.bf16 %v1332_v4  ;;  %v1360_v2 = vld [vmem:[#allocation3 + $0xd0] sm:$0xff]  }
  0x23   :  { %v1487_v16 = vtrunc.f32 %v384_v8  ;;  %v1489_v17 = vtrunc.f32 %v385_v9  ;;  %v1334_v22 = vunpack.c.h.bf16 %v1332_v4  ;;  %v1337_v29 = vunpack.c.l.bf16 %v1336_v10 }
  0x24   :  { %v410_v25 = vmul.f32 0.010416667, %v408_v11  ;;  %v411_v28 = vmul.f32 0.010416667, %v409_v12  ;;  %v1338_v30 = vunpack.c.h.bf16 %v1336_v10  ;;  %v1671_v32 = vcvt.f32.s32 %v1485_v7 }
  0x25   :  { %v1673_v33 = vcvt.f32.s32 %v1487_v16  ;;  %v427_v36 = vadd.f32 %v1333_v21, %v1329_v13  ;;  %v428_v37 = vadd.f32 %v1334_v22, %v1330_v15  ;;  %v1341_v43 = vunpack.c.l.bf16 %v1669_v23 }
  0x26   :  { %v1491_v40 = vtrunc.f32 %v410_v25  ;;  %v1493_v41 = vtrunc.f32 %v411_v28  ;;  %v1342_v46 = vunpack.c.h.bf16 %v1669_v23  ;;  %v1345_v49 = vunpack.c.l.bf16 %v1344_v31 }
  0x27   :  { %v434_v47 = vadd.f32 %v1337_v29, %v427_v36  ;;  %v435_v48 = vadd.f32 %v1338_v30, %v428_v37  ;;  %v1346_v50 = vunpack.c.h.bf16 %v1344_v31  ;;  %v1681_v55 = vcvt.f32.s32 %v1489_v17 }
  0x28   :  { %v1683_v56 = vcvt.f32.s32 %v1491_v40  ;;  %v1349_v58 = vunpack.c.l.bf16 %v1348_v39  ;;  %v1350_v60 = vunpack.c.h.bf16 %v1348_v39  ;;  %v453_v0 = vadd.f32 %v1345_v49, %v1341_v43 }
  0x29   :  { %v436_v61 = vmul.f32 0.010416667, %v434_v47  ;;  %v437_v62 = vmul.f32 0.010416667, %v435_v48  ;;  %v454_v1 = vadd.f32 %v1346_v50, %v1342_v46  ;;  %v1353_v3 = vunpack.c.l.bf16 %v1679_v52 }
  0x2a   :  { %v1354_v4 = vunpack.c.h.bf16 %v1679_v52  ;;  %v1357_v7 = vunpack.c.l.bf16 %v1356_v53  ;;  %v1358_v8 = vunpack.c.h.bf16 %v1356_v53  ;;  %v1689_v9 = vcvt.f32.s32 %v1493_v41 }
  0x2b   :  { %v1495_v10 = vtrunc.f32 %v436_v61  ;;  %v460_v11 = vadd.f32 %v1349_v58, %v453_v0  ;;  %v461_v12 = vadd.f32 %v1350_v60, %v454_v1  ;;  %v1361_v17 = vunpack.c.l.bf16 %v1360_v2 }
  0x2c   :  { %v479_v15 = vadd.f32 %v1357_v7, %v1353_v3  ;;  %v480_v16 = vadd.f32 %v1358_v8, %v1354_v4  ;;  %v1362_v21 = vunpack.c.h.bf16 %v1360_v2  ;;  %v1497_v25 = vtrunc.f32 %v437_v62 }
  0x2d   :  { %v1693_v22 = vcvt.f32.s32 %v1495_v10  ;;  %v462_v28 = vmul.f32 0.010416667, %v460_v11  ;;  %v463_v29 = vmul.f32 0.010416667, %v461_v12  ;;  %vm497_vm0 = vcmp.eq.s32.totalorder %v1637_v14, 0 }
  0x2e   :  { %v486_v30 = vadd.f32 %v1361_v17, %v479_v15  ;;  %v487_v31 = vadd.f32 %v1362_v21, %v480_v16  ;;  %vm505_vm1 = vcmp.eq.s32.totalorder %v1643_v20, 0  ;;  %v1522_v39 = vmov 0.0  }
  0x2f   :  { %v1499_v36 = vtrunc.f32 %v462_v28  ;;  %v1501_v37 = vtrunc.f32 %v463_v29  ;;  %v499_v40 = vsel %vm497_vm0, 1.0, %v1522_v39  ;;  %v507_v41 = vsel %vm505_vm1, 1.0, %v1522_v39 }
  0x30   :  { %v488_v46 = vmul.f32 0.010416667, %v486_v30  ;;  %v489_v47 = vmul.f32 0.010416667, %v487_v31  ;;  %v509_v48 = vadd.f32 %v507_v41, %v499_v40  ;;  %vm513_vm2 = vcmp.eq.s32.totalorder %v1653_v45, 0 }
  0x31   :  { %v1700_v49 = vcvt.f32.s32 %v1497_v25  ;;  %v1702_v50 = vcvt.f32.s32 %v1499_v36  ;;  %v515_v53 = vsel %vm513_vm2, 1.0, %v1522_v39  ;;  %vm521_vm3 = vcmp.eq.s32.totalorder %v1665_v5, 0 }
  0x32   :  { %v1503_v58 = vtrunc.f32 %v488_v46  ;;  %v1505_v60 = vtrunc.f32 %v489_v47  ;;  %v517_v61 = vadd.f32 %v515_v53, %v509_v48  ;;  %v523_v62 = vsel %vm521_vm3, 1.0, %v1522_v39 }
  0x33   :  { %vm529_vm4 = vcmp.eq.s32.totalorder %v1673_v33, 0  ;;  %vm537_vm5 = vcmp.eq.s32.totalorder %v1683_v56, 0  ;;  %vm545_vm6 = vcmp.eq.s32.totalorder %v1693_v22, 0  ;;  %vm553_vm7 = vcmp.eq.s32.totalorder %v1702_v50, 0 }
  0x34   :  { %v1711_v0 = vcvt.f32.s32 %v1501_v37  ;;  %v1713_v1 = vcvt.f32.s32 %v1503_v58  ;;  %v525_v2 = vadd.f32 %v523_v62, %v517_v61  ;;  %v531_v4 = vsel %vm529_vm4, 1.0, %v1522_v39 }
  0x35   :  { %v1716_v7 = vcvt.f32.s32 %v1505_v60  ;;  %v539_v8 = vsel %vm537_vm5, 1.0, %v1522_v39  ;;  %v547_v10 = vsel %vm545_vm6, 1.0, %v1522_v39  ;;  %vm571_vm8 = vcmp.eq.s32.totalorder %v1637_v14, 1 }
  0x36   :  { %v533_v11 = vadd.f32 %v531_v4, %v525_v2  ;;  %v555_v12 = vsel %vm553_vm7, 1.0, %v1522_v39  ;;  %v573_v15 = vsel %vm571_vm8, 1.0, %v1522_v39  ;;  %vm577_vm9 = vcmp.eq.s32.totalorder %v1643_v20, 1 }
  0x37   :  { %vm561_vm10 = vcmp.eq.s32.totalorder %v1713_v1, 0  ;;  %v579_v16 = vsel %vm577_vm9, 1.0, %v1522_v39  ;;  %vm583_vm11 = vcmp.eq.s32.totalorder %v1653_v45, 1  ;;  %vm589_vm12 = vcmp.eq.s32.totalorder %v1665_v5, 1 }
  0x38   :  { %v541_v17 = vadd.f32 %v539_v8, %v533_v11  ;;  %v581_v21 = vadd.f32 %v579_v16, %v573_v15  ;;  %v585_v25 = vsel %vm583_vm11, 1.0, %v1522_v39  ;;  %v591_v28 = vsel %vm589_vm12, 1.0, %v1522_v39 }
  0x39   :  { %vm595_vm13 = vcmp.eq.s32.totalorder %v1673_v33, 1  ;;  %vm601_vm14 = vcmp.eq.s32.totalorder %v1683_v56, 1  ;;  %vm607_vm15 = vcmp.eq.s32.totalorder %v1693_v22, 1  ;;  %vm613_vm0 = vcmp.eq.s32.totalorder %v1702_v50, 1 }
  0x3a   :  { %v549_v29 = vadd.f32 %v547_v10, %v541_v17  ;;  %v563_v30 = vsel %vm561_vm10, 1.0, %v1522_v39  ;;  %v587_v31 = vadd.f32 %v585_v25, %v581_v21  ;;  %v597_v36 = vsel %vm595_vm13, 1.0, %v1522_v39 }
  0x3b   :  { %v603_v37 = vsel %vm601_vm14, 1.0, %v1522_v39  ;;  %v609_v40 = vsel %vm607_vm15, 1.0, %v1522_v39  ;;  %v615_v41 = vsel %vm613_vm0, 1.0, %v1522_v39  ;;  %vm631_vm1 = vcmp.eq.s32.totalorder %v1637_v14, 2 }
  0x3c   :  { %v557_v46 = vadd.f32 %v555_v12, %v549_v29  ;;  %v593_v47 = vadd.f32 %v591_v28, %v587_v31  ;;  %vm619_vm2 = vcmp.eq.s32.totalorder %v1713_v1, 1  ;;  %v633_v48 = vsel %vm631_vm1, 1.0, %v1522_v39 }
  0x3d   :  { %vm637_vm3 = vcmp.eq.s32.totalorder %v1643_v20, 2  ;;  %vm643_vm4 = vcmp.eq.s32.totalorder %v1653_v45, 2  ;;  %vm649_vm5 = vcmp.eq.s32.totalorder %v1665_v5, 2  ;;  %vm655_vm6 = vcmp.eq.s32.totalorder %v1673_v33, 2 }
  0x3e   :  { %v565_v53 = vadd.f32 %v563_v30, %v557_v46  ;;  %v599_v58 = vadd.f32 %v597_v36, %v593_v47  ;;  %v639_v60 = vsel %vm637_vm3, 1.0, %v1522_v39  ;;  %v645_v61 = vsel %vm643_vm4, 1.0, %v1522_v39 }
  0x3f   :  { %v621_v62 = vsel %vm619_vm2, 1.0, %v1522_v39  ;;  %v641_v2 = vadd.f32 %v639_v60, %v633_v48  ;;  %v651_v4 = vsel %vm649_vm5, 1.0, %v1522_v39  ;;  %vm661_vm7 = vcmp.eq.s32.totalorder %v1683_v56, 2 }
  0x40   :  { %vm567_vm8 = vcmp.gt.f32.partialorder %v565_v53, -1.0  ;;  %v605_v8 = vadd.f32 %v603_v37, %v599_v58  ;;  %v657_v10 = vsel %vm655_vm6, 1.0, %v1522_v39  ;;  %vm667_vm9 = vcmp.eq.s32.totalorder %v1693_v22, 2 }
  0x41   :  { %v569_v11 = vsel %vm567_vm8, %v565_v53, -1.0  ;;  %v647_v12 = vadd.f32 %v645_v61, %v641_v2  ;;  %v663_v15 = vsel %vm661_vm7, 1.0, %v1522_v39  ;;  %vm673_vm10 = vcmp.eq.s32.totalorder %v1702_v50, 2 }
  0x42   :  { %v611_v16 = vadd.f32 %v609_v40, %v605_v8  ;;  %v669_v17 = vsel %vm667_vm9, 1.0, %v1522_v39  ;;  %v675_v21 = vsel %vm673_vm10, 1.0, %v1522_v39  ;;  %vm691_vm11 = vcmp.eq.s32.totalorder %v1637_v14, 3 }
  0x43   :  { %v653_v25 = vadd.f32 %v651_v4, %v647_v12  ;;  %vm679_vm12 = vcmp.eq.s32.totalorder %v1713_v1, 2  ;;  %v693_v28 = vsel %vm691_vm11, 1.0, %v1522_v39  ;;  %vm697_vm13 = vcmp.eq.s32.totalorder %v1643_v20, 3 }
  0x44   :  { %v617_v29 = vadd.f32 %v615_v41, %v611_v16  ;;  %v699_v30 = vsel %vm697_vm13, 1.0, %v1522_v39  ;;  %vm703_vm14 = vcmp.eq.s32.totalorder %v1653_v45, 3  ;;  %vm709_vm15 = vcmp.eq.s32.totalorder %v1665_v5, 3 }
  0x45   :  { %v659_v31 = vadd.f32 %v657_v10, %v653_v25  ;;  %v701_v36 = vadd.f32 %v699_v30, %v693_v28  ;;  %v705_v37 = vsel %vm703_vm14, 1.0, %v1522_v39  ;;  %v711_v40 = vsel %vm709_vm15, 1.0, %v1522_v39 }
  0x46   :  { %v623_v46 = vadd.f32 %v621_v62, %v617_v29  ;;  %vm715_vm0 = vcmp.eq.s32.totalorder %v1673_v33, 3  ;;  %vm721_vm1 = vcmp.eq.s32.totalorder %v1683_v56, 3  ;;  %vm727_vm2 = vcmp.eq.s32.totalorder %v1693_v22, 3 }
  0x47   :  { %v665_v41 = vadd.f32 %v663_v15, %v659_v31  ;;  %v681_v47 = vsel %vm679_vm12, 1.0, %v1522_v39  ;;  %v707_v48 = vadd.f32 %v705_v37, %v701_v36  ;;  %v717_v53 = vsel %vm715_vm0, 1.0, %v1522_v39 }
  0x48   :  { %vm625_vm3 = vcmp.gt.f32.partialorder %v623_v46, %v569_v11  ;;  %v723_v58 = vsel %vm721_vm1, 1.0, %v1522_v39  ;;  %v729_v60 = vsel %vm727_vm2, 1.0, %v1522_v39  ;;  %vm733_vm4 = vcmp.eq.s32.totalorder %v1702_v50, 3 }
  0x49   :  { %v627_v61 = vsel %vm625_vm3, %v623_v46, %v569_v11  ;;  %v671_v62 = vadd.f32 %v669_v17, %v665_v41  ;;  %v713_v2 = vadd.f32 %v711_v40, %v707_v48  ;;  %vm739_vm5 = vcmp.eq.s32.totalorder %v1713_v1, 3 }
  0x4a   :  { %v1523_v4 = vmov 0   ;;  %v735_v10 = vsel %vm733_vm4, 1.0, %v1522_v39  ;;  %vm751_vm6 = vcmp.eq.s32.totalorder %v1637_v14, 4  ;;  %vm757_vm7 = vcmp.eq.s32.totalorder %v1643_v20, 4 }
  0x4b   :  { %v629_v8 = vsel %vm625_vm3, 1, %v1523_v4  ;;  %v677_v12 = vadd.f32 %v675_v21, %v671_v62  ;;  %v719_v15 = vadd.f32 %v717_v53, %v713_v2  ;;  %v753_v16 = vsel %vm751_vm6, 1.0, %v1522_v39 }
  0x4c   :  { %v759_v25 = vsel %vm757_vm7, 1.0, %v1522_v39  ;;  %vm763_vm8 = vcmp.eq.s32.totalorder %v1653_v45, 4  ;;  %vm769_vm9 = vcmp.eq.s32.totalorder %v1665_v5, 4  ;;  %vm775_vm10 = vcmp.eq.s32.totalorder %v1673_v33, 4 }
  0x4d   :  { %v761_v11 = vadd.f32 %v759_v25, %v753_v16  ;;  %v683_v17 = vadd.f32 %v681_v47, %v677_v12  ;;  %v725_v28 = vadd.f32 %v723_v58, %v719_v15  ;;  %v765_v29 = vsel %vm763_vm8, 1.0, %v1522_v39 }
  0x4e   :  { %v771_v30 = vsel %vm769_vm9, 1.0, %v1522_v39  ;;  %v741_v21 = vsel %vm739_vm5, 1.0, %v1522_v39  ;;  %vm781_vm11 = vcmp.eq.s32.totalorder %v1683_v56, 4  ;;  %vm787_vm12 = vcmp.eq.s32.totalorder %v1693_v22, 4 }
  0x4f   :  { %v767_v31 = vadd.f32 %v765_v29, %v761_v11  ;;  %vm685_vm13 = vcmp.gt.f32.partialorder %v683_v17, %v627_v61  ;;  %v731_v36 = vadd.f32 %v729_v60, %v725_v28  ;;  %v777_v37 = vsel %vm775_vm10, 1.0, %v1522_v39 }
  0x50   :  { %v783_v40 = vsel %vm781_vm11, 1.0, %v1522_v39  ;;  %v687_v46 = vsel %vm685_vm13, %v683_v17, %v627_v61  ;;  %v789_v47 = vsel %vm787_vm12, 1.0, %v1522_v39  ;;  %vm793_vm14 = vcmp.eq.s32.totalorder %v1702_v50, 4 }
  0x51   :  { %v773_v41 = vadd.f32 %v771_v30, %v767_v31  ;;  %v689_v48 = vsel %vm685_vm13, 2, %v629_v8  ;;  %v737_v53 = vadd.f32 %v735_v10, %v731_v36  ;;  %v795_v58 = vsel %vm793_vm14, 1.0, %v1522_v39 }
  0x52   :  { %vm811_vm15 = vcmp.eq.s32.totalorder %v1637_v14, 5  ;;  %vm799_vm0 = vcmp.eq.s32.totalorder %v1713_v1, 4  ;;  %vm817_vm1 = vcmp.eq.s32.totalorder %v1643_v20, 5  ;;  %vm823_vm2 = vcmp.eq.s32.totalorder %v1653_v45, 5 }
  0x53   :  { %v779_v62 = vadd.f32 %v777_v37, %v773_v41  ;;  %v813_v60 = vsel %vm811_vm15, 1.0, %v1522_v39  ;;  %v743_v2 = vadd.f32 %v741_v21, %v737_v53  ;;  %v819_v61 = vsel %vm817_vm1, 1.0, %v1522_v39 }
  0x54   :  { %vm829_vm3 = vcmp.eq.s32.totalorder %v1665_v5, 5  ;;  %v821_v10 = vadd.f32 %v819_v61, %v813_v60  ;;  %v825_v12 = vsel %vm823_vm2, 1.0, %v1522_v39  ;;  %vm835_vm5 = vcmp.eq.s32.totalorder %v1673_v33, 5 }
  0x55   :  { %v785_v8 = vadd.f32 %v783_v40, %v779_v62  ;;  %v831_v15 = vsel %vm829_vm3, 1.0, %v1522_v39  ;;  %vm745_vm4 = vcmp.gt.f32.partialorder %v743_v2, %v687_v46  ;;  %vm841_vm6 = vcmp.eq.s32.totalorder %v1683_v56, 5 }
  0x56   :  { %vm847_vm7 = vcmp.eq.s32.totalorder %v1693_v22, 5  ;;  %v747_v16 = vsel %vm745_vm4, %v743_v2, %v687_v46  ;;  %v801_v11 = vsel %vm799_vm0, 1.0, %v1522_v39  ;;  %v827_v17 = vadd.f32 %v825_v12, %v821_v10 }
  0x57   :  { %v791_v25 = vadd.f32 %v789_v47, %v785_v8  ;;  %v749_v28 = vsel %vm745_vm4, 3, %v689_v48  ;;  %v837_v29 = vsel %vm835_vm5, 1.0, %v1522_v39  ;;  %v843_v30 = vsel %vm841_vm6, 1.0, %v1522_v39 }
  0x58   :  { %vm853_vm8 = vcmp.eq.s32.totalorder %v1702_v50, 5  ;;  %v833_v31 = vadd.f32 %v831_v15, %v827_v17  ;;  %v849_v36 = vsel %vm847_vm7, 1.0, %v1522_v39  ;;  %vm859_vm9 = vcmp.eq.s32.totalorder %v1713_v1, 5 }
  0x59   :  { %v797_v21 = vadd.f32 %v795_v58, %v791_v25  ;;  %v855_v37 = vsel %vm853_vm8, 1.0, %v1522_v39  ;;  %vm871_vm10 = vcmp.eq.s32.totalorder %v1637_v14, 6  ;;  %vm877_vm11 = vcmp.eq.s32.totalorder %v1643_v20, 6 }
  0x5a   :  { %vm883_vm12 = vcmp.eq.s32.totalorder %v1653_v45, 6  ;;  %v839_v46 = vadd.f32 %v837_v29, %v833_v31  ;;  %v873_v41 = vsel %vm871_vm10, 1.0, %v1522_v39  ;;  %v879_v47 = vsel %vm877_vm11, 1.0, %v1522_v39 }
  0x5b   :  { %v803_v40 = vadd.f32 %v801_v11, %v797_v21  ;;  %v881_v48 = vadd.f32 %v879_v47, %v873_v41  ;;  %v885_v53 = vsel %vm883_vm12, 1.0, %v1522_v39  ;;  %vm889_vm13 = vcmp.eq.s32.totalorder %v1665_v5, 6 }
  0x5c   :  { %vm895_vm14 = vcmp.eq.s32.totalorder %v1673_v33, 6  ;;  %v845_v58 = vadd.f32 %v843_v30, %v839_v46  ;;  %v861_v62 = vsel %vm859_vm9, 1.0, %v1522_v39  ;;  %v891_v60 = vsel %vm889_vm13, 1.0, %v1522_v39 }
  0x5d   :  { %vm805_vm15 = vcmp.gt.f32.partialorder %v803_v40, %v747_v16  ;;  %v887_v61 = vadd.f32 %v885_v53, %v881_v48  ;;  %v897_v8 = vsel %vm895_vm14, 1.0, %v1522_v39  ;;  %vm901_vm0 = vcmp.eq.s32.totalorder %v1683_v56, 6 }
  0x5e   :  { %v807_v2 = vsel %vm805_vm15, %v803_v40, %v747_v16  ;;  %v809_v10 = vsel %vm805_vm15, 4, %v749_v28  ;;  %v851_v12 = vadd.f32 %v849_v36, %v845_v58  ;;  %vm907_vm1 = vcmp.eq.s32.totalorder %v1693_v22, 6 }
  0x5f   :  { %vm913_vm2 = vcmp.eq.s32.totalorder %v1702_v50, 6  ;;  %v893_v15 = vadd.f32 %v891_v60, %v887_v61  ;;  %v903_v25 = vsel %vm901_vm0, 1.0, %v1522_v39  ;;  %v909_v11 = vsel %vm907_vm1, 1.0, %v1522_v39 }
  0x60   :  { %v915_v17 = vsel %vm913_vm2, 1.0, %v1522_v39  ;;  %v857_v29 = vadd.f32 %v855_v37, %v851_v12  ;;  %vm919_vm3 = vcmp.eq.s32.totalorder %v1713_v1, 6  ;;  %vm931_vm4 = vcmp.eq.s32.totalorder %v1637_v14, 7 }
  0x61   :  { %vm937_vm5 = vcmp.eq.s32.totalorder %v1643_v20, 7  ;;  %v899_v16 = vadd.f32 %v897_v8, %v893_v15  ;;  %v933_v28 = vsel %vm931_vm4, 1.0, %v1522_v39  ;;  %vm943_vm6 = vcmp.eq.s32.totalorder %v1653_v45, 7 }
  0x62   :  { %v939_v30 = vsel %vm937_vm5, 1.0, %v1522_v39  ;;  %v863_v21 = vadd.f32 %v861_v62, %v857_v29  ;;  %v945_v36 = vsel %vm943_vm6, 1.0, %v1522_v39  ;;  %vm949_vm7 = vcmp.eq.s32.totalorder %v1665_v5, 7 }
  0x63   :  { %v941_v31 = vadd.f32 %v939_v30, %v933_v28  ;;  %v905_v37 = vadd.f32 %v903_v25, %v899_v16  ;;  %v951_v40 = vsel %vm949_vm7, 1.0, %v1522_v39  ;;  %vm955_vm8 = vcmp.eq.s32.totalorder %v1673_v33, 7 }
  0x64   :  { %vm961_vm9 = vcmp.eq.s32.totalorder %v1683_v56, 7  ;;  %vm865_vm10 = vcmp.gt.f32.partialorder %v863_v21, %v807_v2  ;;  %v921_v46 = vsel %vm919_vm3, 1.0, %v1522_v39  ;;  %v957_v47 = vsel %vm955_vm8, 1.0, %v1522_v39 }
  0x65   :  { %v947_v41 = vadd.f32 %v945_v36, %v941_v31  ;;  %v867_v48 = vsel %vm865_vm10, %v863_v21, %v807_v2  ;;  %v911_v53 = vadd.f32 %v909_v11, %v905_v37  ;;  %v963_v58 = vsel %vm961_vm9, 1.0, %v1522_v39 }
  0x66   :  { %vm967_vm11 = vcmp.eq.s32.totalorder %v1693_v22, 7  ;;  %v869_v62 = vsel %vm865_vm10, 5, %v809_v10  ;;  %vm973_vm12 = vcmp.eq.s32.totalorder %v1702_v50, 7  ;;  %vm979_vm13 = vcmp.eq.s32.totalorder %v1713_v1, 7 }
  0x67   :  { %v953_v60 = vadd.f32 %v951_v40, %v947_v41  ;;  %v969_v61 = vsel %vm967_vm11, 1.0, %v1522_v39  ;;  %v917_v8 = vadd.f32 %v915_v17, %v911_v53  ;;  %v975_v12 = vsel %vm973_vm12, 1.0, %v1522_v39 }
  0x68   :  { %vm498_vm14 = vcmp.eq.s32.totalorder %v1641_v19, 0  ;;  %vm506_vm15 = vcmp.eq.s32.totalorder %v1651_v44, 0  ;;  %vm514_vm0 = vcmp.eq.s32.totalorder %v1659_v59, 0  ;;  %vm522_vm1 = vcmp.eq.s32.totalorder %v1671_v32, 0 }
  0x69   :  { %v959_v15 = vadd.f32 %v957_v47, %v953_v60  ;;  %v500_v2 = vsel %vm498_vm14, 1.0, %v1522_v39  ;;  %v923_v10 = vadd.f32 %v921_v46, %v917_v8  ;;  %v508_v25 = vsel %vm506_vm15, 1.0, %v1522_v39 }
  0x6a   :  { %v516_v11 = vsel %vm514_vm0, 1.0, %v1522_v39  ;;  %v981_v29 = vsel %vm979_vm13, 1.0, %v1522_v39  ;;  %v510_v16 = vadd.f32 %v508_v25, %v500_v2  ;;  %vm530_vm2 = vcmp.eq.s32.totalorder %v1681_v55, 0 }
  0x6b   :  { %v965_v17 = vadd.f32 %v963_v58, %v959_v15  ;;  %vm925_vm3 = vcmp.gt.f32.partialorder %v923_v10, %v867_v48  ;;  %v524_v28 = vsel %vm522_vm1, 1.0, %v1522_v39  ;;  %vm538_vm4 = vcmp.eq.s32.totalorder %v1689_v9, 0 }
  0x6c   :  { %vm546_vm5 = vcmp.eq.s32.totalorder %v1700_v49, 0  ;;  %v927_v30 = vsel %vm925_vm3, %v923_v10, %v867_v48  ;;  %v518_v31 = vadd.f32 %v516_v11, %v510_v16  ;;  %v532_v36 = vsel %vm530_vm2, 1.0, %v1522_v39 }
  0x6d   :  { %v971_v21 = vadd.f32 %v969_v61, %v965_v17  ;;  %v929_v37 = vsel %vm925_vm3, 6, %v869_v62  ;;  %v540_v40 = vsel %vm538_vm4, 1.0, %v1522_v39  ;;  %v548_v46 = vsel %vm546_vm5, 1.0, %v1522_v39 }
  0x6e   :  { %vm554_vm6 = vcmp.eq.s32.totalorder %v1711_v0, 0  ;;  %v526_v47 = vadd.f32 %v524_v28, %v518_v31  ;;  %vm562_vm7 = vcmp.eq.s32.totalorder %v1716_v7, 0  ;;  %vm572_vm8 = vcmp.eq.s32.totalorder %v1641_v19, 1 }
  0x6f   :  { %v977_v41 = vadd.f32 %v975_v12, %v971_v21  ;;  %v556_v53 = vsel %vm554_vm6, 1.0, %v1522_v39  ;;  %vm578_vm9 = vcmp.eq.s32.totalorder %v1651_v44, 1  ;;  %vm584_vm10 = vcmp.eq.s32.totalorder %v1659_v59, 1 }
  0x70   :  { %vm590_vm11 = vcmp.eq.s32.totalorder %v1671_v32, 1  ;;  %v534_v58 = vadd.f32 %v532_v36, %v526_v47  ;;  %v574_v62 = vsel %vm572_vm8, 1.0, %v1522_v39  ;;  %v580_v60 = vsel %vm578_vm9, 1.0, %v1522_v39 }
  0x71   :  { %v983_v48 = vadd.f32 %v981_v29, %v977_v41  ;;  %v564_v61 = vsel %vm562_vm7, 1.0, %v1522_v39  ;;  %v582_v8 = vadd.f32 %v580_v60, %v574_v62  ;;  %v586_v12 = vsel %vm584_vm10, 1.0, %v1522_v39 }
  0x72   :  { %vm596_vm12 = vcmp.eq.s32.totalorder %v1681_v55, 1  ;;  %v542_v15 = vadd.f32 %v540_v40, %v534_v58  ;;  %v592_v2 = vsel %vm590_vm11, 1.0, %v1522_v39  ;;  %vm602_vm14 = vcmp.eq.s32.totalorder %v1689_v9, 1 }
  0x73   :  { %vm985_vm13 = vcmp.gt.f32.partialorder %v983_v48, %v927_v30  ;;  %v588_v11 = vadd.f32 %v586_v12, %v582_v8  ;;  %v598_v17 = vsel %vm596_vm12, 1.0, %v1522_v39  ;;  %vm608_vm8 = vcmp.eq.s32.totalorder %v1700_v49, 1 }
  0x74   :  { %v987_v10 = vsel %vm985_vm13, %v983_v48, %v927_v30  ;;  %v1886_v25 = vsel %vm985_vm13, 7, %v929_v37  ;;  %v604_v30 = vsel %vm602_vm14, 1.0, %v1522_v39  ;;  %vm614_vm9 = vcmp.eq.s32.totalorder %v1711_v0, 1 }
  0x75   :  { %vm991_vm15 = vcmp.eq.s32.totalorder %v1637_v14, %v1886_v25  ;;  %vm1017_vm0 = vcmp.eq.s32.totalorder %v1643_v20, %v1886_v25  ;;  %vm1043_vm1 = vcmp.eq.s32.totalorder %v1653_v45, %v1886_v25  ;;  %vm1069_vm2 = vcmp.eq.s32.totalorder %v1665_v5, %v1886_v25 }
  0x76   :  { %v997_v29 = vsel %vm991_vm15, %v1257_v27, 0.0  ;;  %v1023_v16 = vsel %vm1017_vm0, %v1269_v34, 0.0  ;;  %v1049_v28 = vsel %vm1043_vm1, %v1281_v51, 0.0  ;;  %vm1095_vm3 = vcmp.eq.s32.totalorder %v1673_v33, %v1886_v25 }
  0x77   :  { %v1025_v21 = vadd.f32 %v1023_v16, %v997_v29  ;;  %vm1121_vm4 = vcmp.eq.s32.totalorder %v1683_v56, %v1886_v25  ;;  %vm1147_vm5 = vcmp.eq.s32.totalorder %v1693_v22, %v1886_v25  ;;  %v1075_v24 = vsel %vm1069_vm2, %v1293_v6, 0.0 }
  0x78   :  { %v1101_v26 = vsel %vm1095_vm3, %v1305_v35, 0.0  ;;  %v1127_v27 = vsel %vm1121_vm4, %v1317_v54, 0.0  ;;  %vm2325_vm6 = vcmp.eq.s32.totalorder %v1702_v50, %v1886_v25  ;;  %v1153_v38 = vsel %vm1147_vm5, %v1329_v13, 0.0 }
  0x79   :  { %v1051_v34 = vadd.f32 %v1049_v28, %v1025_v21  ;;  %vm2324_vm7 = vcmp.eq.s32.totalorder %v1713_v1, %v1886_v25  ;;  %v1225_v51 = vmax.f32 %v987_v10, 1.0  ;;  %v1179_v57 = vsel %vm2325_vm6, %v1341_v43, 0.0 }
  0x7a   :  { %v550_v6 = vadd.f32 %v548_v46, %v542_v15  ;;  %v594_v18 = vadd.f32 %v592_v2, %v588_v11  ;;  %v1205_v42 = vsel %vm2324_vm7, %v1353_v3, 0.0  ;;  %v610_v13 = vsel %vm608_vm8, 1.0, %v1522_v39 }
  0x7b   :  { %v1077_v35 = vadd.f32 %v1075_v24, %v1051_v34  ;;  %1509 = vrcp.f32 %v1225_v51  ;;  %v616_v23 = vsel %vm614_vm9, 1.0, %v1522_v39  ;;  %vm620_vm10 = vcmp.eq.s32.totalorder %v1716_v7, 1 }
  0x7c   :  { %v558_v54 = vadd.f32 %v556_v53, %v550_v6  ;;  %v600_v63 = vadd.f32 %v598_v17, %v594_v18  ;;  %vm632_vm11 = vcmp.eq.s32.totalorder %v1641_v19, 2  ;;  %vm638_vm12 = vcmp.eq.s32.totalorder %v1651_v44, 2 }
  0x7d   :  { %v1103_v43 = vadd.f32 %v1101_v26, %v1077_v35  ;;  %v634_v3 = vsel %vm632_vm11, 1.0, %v1522_v39  ;;  %v640_v36 = vsel %vm638_vm12, 1.0, %v1522_v39  ;;  %vm644_vm13 = vcmp.eq.s32.totalorder %v1659_v59, 2 }
  0x7e   :  { %v566_v52 = vadd.f32 %v564_v61, %v558_v54  ;;  %v606_v31 = vadd.f32 %v604_v30, %v600_v63  ;;  %v642_v40 = vadd.f32 %v640_v36, %v634_v3  ;;  %vm650_vm14 = vcmp.eq.s32.totalorder %v1671_v32, 2 }
  0x7f   :  { %v1129_v37 = vadd.f32 %v1127_v27, %v1103_v43  ;;  %v646_v41 = vsel %vm644_vm13, 1.0, %v1522_v39  ;;  %v652_v47 = vsel %vm650_vm14, 1.0, %v1522_v39  ;;  %v622_v48 = vsel %vm620_vm10, 1.0, %v1522_v39 }
  0x80   :  { %vm568_vm8 = vcmp.gt.f32.partialorder %v566_v52, -1.0  ;;  %v612_v46 = vadd.f32 %v610_v13, %v606_v31  ;;  %v648_v58 = vadd.f32 %v646_v41, %v642_v40  ;;  %vm656_vm9 = vcmp.eq.s32.totalorder %v1681_v55, 2 }
  0x81   :  { %v1155_v53 = vadd.f32 %v1153_v38, %v1129_v37  ;;  %v658_v60 = vsel %vm656_vm9, 1.0, %v1522_v39  ;;  %vm662_vm11 = vcmp.eq.s32.totalorder %v1689_v9, 2  ;;  %vm668_vm12 = vcmp.eq.s32.totalorder %v1700_v49, 2 }
  0x82   :  { %v618_v62 = vadd.f32 %v616_v23, %v612_v46  ;;  %v570_v8 = vsel %vm568_vm8, %v566_v52, -1.0  ;;  %v654_v12 = vadd.f32 %v652_v47, %v648_v58  ;;  %v664_v15 = vsel %vm662_vm11, 1.0, %v1522_v39 }
  0x83   :  { %v1181_v61 = vadd.f32 %v1179_v57, %v1155_v53  ;;  %v670_v10 = vsel %vm668_vm12, 1.0, %v1522_v39  ;;  %vm674_vm10 = vcmp.eq.s32.totalorder %v1711_v0, 2  ;;  %vm692_vm13 = vcmp.eq.s32.totalorder %v1641_v19, 3 }
  0x84   :  { %v624_v2 = vadd.f32 %v622_v48, %v618_v62  ;;  %v660_v17 = vadd.f32 %v658_v60, %v654_v12  ;;  %v676_v29 = vsel %vm674_vm10, 1.0, %v1522_v39  ;;  %vm680_vm14 = vcmp.eq.s32.totalorder %v1716_v7, 2 }
  0x85   :  { %v1207_v11 = vadd.f32 %v1205_v42, %v1181_v61  ;;  %v694_v16 = vsel %vm692_vm13, 1.0, %v1522_v39  ;;  %vm698_vm8 = vcmp.eq.s32.totalorder %v1651_v44, 3  ;;  %vm704_vm11 = vcmp.eq.s32.totalorder %v1659_v59, 3 }
  0x86   :  { %vm626_vm9 = vcmp.gt.f32.partialorder %v624_v2, %v570_v8  ;;  %v666_v21 = vadd.f32 %v664_v15, %v660_v17  ;;  %v700_v24 = vsel %vm698_vm8, 1.0, %v1522_v39  ;;  %v706_v34 = vsel %vm704_vm11, 1.0, %v1522_v39 }
  0x87   :  { %v628_v28 = vsel %vm626_vm9, %v624_v2, %v570_v8  ;;  %v630_v30 = vsel %vm626_vm9, 1, %v1523_v4  ;;  %v702_v27 = vadd.f32 %v700_v24, %v694_v16  ;;  %vm710_vm12 = vcmp.eq.s32.totalorder %v1671_v32, 3 }
  0x88   :  { %v1984_v26 = vpop.eup %1509  ;;  %vm716_vm10 = vcmp.eq.s32.totalorder %v1681_v55, 3  ;;  %v672_v51 = vadd.f32 %v670_v10, %v666_v21  ;;  %v712_v57 = vsel %vm710_vm12, 1.0, %v1522_v39  ;;  %v682_v4 = vsel %vm680_vm14, 1.0, %v1522_v39 }
  0x89   :  { %v1229_v38 = vmul.f32 %v1984_v26, %v1207_v11  ;;  %v708_v6 = vadd.f32 %v706_v34, %v702_v27  ;;  %vm722_vm13 = vcmp.eq.s32.totalorder %v1689_v9, 3  ;;  %vm728_vm9 = vcmp.eq.s32.totalorder %v1700_v49, 3 }
  0x8a   :  { %v678_v18 = vadd.f32 %v676_v29, %v672_v51  ;;  %v718_v35 = vsel %vm716_vm10, 1.0, %v1522_v39  ;;  %v724_v42 = vsel %vm722_vm13, 1.0, %v1522_v39  ;;  %vm734_vm8 = vcmp.eq.s32.totalorder %v1711_v0, 3 }
  0x8b   :  { %1231 = vst [vmem:[%s2323_s1] sm:$0xff] %v1229_v38  ;;  %v714_v54 = vadd.f32 %v712_v57, %v708_v6  ;;  %v730_v63 = vsel %vm728_vm9, 1.0, %v1522_v39  ;;  %vm752_vm14 = vcmp.eq.s32.totalorder %v1641_v19, 4  ;;  %vm758_vm11 = vcmp.eq.s32.totalorder %v1651_v44, 4 }
  0x8c   :  { %v684_v13 = vadd.f32 %v682_v4, %v678_v18  ;;  %vm740_vm12 = vcmp.eq.s32.totalorder %v1716_v7, 3  ;;  %v754_v23 = vsel %vm752_vm14, 1.0, %v1522_v39  ;;  %v760_v43 = vsel %vm758_vm11, 1.0, %v1522_v39 }
  0x8d   :  { %v720_v52 = vadd.f32 %v718_v35, %v714_v54  ;;  %v762_v31 = vadd.f32 %v760_v43, %v754_v23  ;;  %vm764_vm10 = vcmp.eq.s32.totalorder %v1659_v59, 4  ;;  %vm770_vm13 = vcmp.eq.s32.totalorder %v1671_v32, 4 }
  0x8e   :  { %vm686_vm7 = vcmp.gt.f32.partialorder %v684_v13, %v628_v28  ;;  %v766_v3 = vsel %vm764_vm10, 1.0, %v1522_v39  ;;  %v772_v36 = vsel %vm770_vm13, 1.0, %v1522_v39  ;;  %vm776_vm9 = vcmp.eq.s32.totalorder %v1681_v55, 4 }
  0x8f   :  { %v688_v37 = vsel %vm686_vm7, %v684_v13, %v628_v28  ;;  %v690_v40 = vsel %vm686_vm7, 2, %v630_v30  ;;  %v726_v46 = vadd.f32 %v724_v42, %v720_v52  ;;  %v768_v41 = vadd.f32 %v766_v3, %v762_v31 }
  0x90   :  { %v736_v47 = vsel %vm734_vm8, 1.0, %v1522_v39  ;;  %v778_v53 = vsel %vm776_vm9, 1.0, %v1522_v39  ;;  %vm782_vm14 = vcmp.eq.s32.totalorder %v1689_v9, 4  ;;  %vm788_vm11 = vcmp.eq.s32.totalorder %v1700_v49, 4 }
  0x91   :  { %v732_v48 = vadd.f32 %v730_v63, %v726_v46  ;;  %v742_v58 = vsel %vm740_vm12, 1.0, %v1522_v39  ;;  %v774_v62 = vadd.f32 %v772_v36, %v768_v41  ;;  %vm794_vm7 = vcmp.eq.s32.totalorder %v1711_v0, 4 }
  0x92   :  { %v784_v60 = vsel %vm782_vm14, 1.0, %v1522_v39  ;;  %v790_v61 = vsel %vm788_vm11, 1.0, %v1522_v39  ;;  %vm812_vm8 = vcmp.eq.s32.totalorder %v1641_v19, 5  ;;  %vm818_vm10 = vcmp.eq.s32.totalorder %v1651_v44, 5 }
  0x93   :  { %v738_v8 = vadd.f32 %v736_v47, %v732_v48  ;;  %v780_v12 = vadd.f32 %v778_v53, %v774_v62  ;;  %vm800_vm13 = vcmp.eq.s32.totalorder %v1716_v7, 4  ;;  %v814_v15 = vsel %vm812_vm8, 1.0, %v1522_v39 }
  0x94   :  { %v820_v2 = vsel %vm818_vm10, 1.0, %v1522_v39  ;;  %vm824_vm12 = vcmp.eq.s32.totalorder %v1659_v59, 5  ;;  %vm830_vm9 = vcmp.eq.s32.totalorder %v1671_v32, 5  ;;  %vm836_vm14 = vcmp.eq.s32.totalorder %v1681_v55, 5 }
  0x95   :  { %v744_v10 = vadd.f32 %v742_v58, %v738_v8  ;;  %v786_v11 = vadd.f32 %v784_v60, %v780_v12  ;;  %v822_v17 = vadd.f32 %v820_v2, %v814_v15  ;;  %v826_v29 = vsel %vm824_vm12, 1.0, %v1522_v39 }
  0x96   :  { %v796_v16 = vsel %vm794_vm7, 1.0, %v1522_v39  ;;  %v832_v28 = vsel %vm830_vm9, 1.0, %v1522_v39  ;;  %vm842_vm11 = vcmp.eq.s32.totalorder %v1689_v9, 5  ;;  %vm848_vm8 = vcmp.eq.s32.totalorder %v1700_v49, 5 }
  0x97   :  { %vm746_vm10 = vcmp.gt.f32.partialorder %v744_v10, %v688_v37  ;;  %v792_v30 = vadd.f32 %v790_v61, %v786_v11  ;;  %v802_v21 = vsel %vm800_vm13, 1.0, %v1522_v39  ;;  %v828_v24 = vadd.f32 %v826_v29, %v822_v17 }
  0x98   :  { %v748_v27 = vsel %vm746_vm10, %v744_v10, %v688_v37  ;;  %v750_v34 = vsel %vm746_vm10, 3, %v690_v40  ;;  %v838_v38 = vsel %vm836_vm14, 1.0, %v1522_v39  ;;  %vm854_vm12 = vcmp.eq.s32.totalorder %v1711_v0, 5 }
  0x99   :  { %v798_v51 = vadd.f32 %v796_v16, %v792_v30  ;;  %v834_v57 = vadd.f32 %v832_v28, %v828_v24  ;;  %v844_v4 = vsel %vm842_vm11, 1.0, %v1522_v39  ;;  %v850_v6 = vsel %vm848_vm8, 1.0, %v1522_v39 }
  0x9a   :  { %v856_v18 = vsel %vm854_vm12, 1.0, %v1522_v39  ;;  %vm872_vm7 = vcmp.eq.s32.totalorder %v1641_v19, 6  ;;  %vm878_vm9 = vcmp.eq.s32.totalorder %v1651_v44, 6  ;;  %vm884_vm13 = vcmp.eq.s32.totalorder %v1659_v59, 6 }
  0x9b   :  { %v804_v35 = vadd.f32 %v802_v21, %v798_v51  ;;  %v840_v42 = vadd.f32 %v838_v38, %v834_v57  ;;  %v874_v54 = vsel %vm872_vm7, 1.0, %v1522_v39  ;;  %v880_v63 = vsel %vm878_vm9, 1.0, %v1522_v39  ;;  %v2086_v57 = vld [vmem:[#allocation3 + $0x20] sm:$0xff]  }
  0x9c   :  { %v882_v13 = vadd.f32 %v880_v63, %v874_v54  ;;  %v886_v23 = vsel %vm884_vm13, 1.0, %v1522_v39  ;;  %vm890_vm14 = vcmp.eq.s32.totalorder %v1671_v32, 6  ;;  %vm896_vm11 = vcmp.eq.s32.totalorder %v1681_v55, 6  ;;  %v1514_v63 = vld [vmem:[#allocation3 + $0x18] sm:$0xff]  }
  0x9d   :  { %vm806_vm8 = vcmp.gt.f32.partialorder %v804_v35, %v748_v27  ;;  %v846_v43 = vadd.f32 %v844_v4, %v840_v42  ;;  %vm860_vm10 = vcmp.eq.s32.totalorder %v1716_v7, 5  ;;  %v892_v52 = vsel %vm890_vm14, 1.0, %v1522_v39 }
  0x9e   :  { %v808_v31 = vsel %vm806_vm8, %v804_v35, %v748_v27  ;;  %v810_v3 = vsel %vm806_vm8, 4, %v750_v34  ;;  %v888_v36 = vadd.f32 %v886_v23, %v882_v13  ;;  %vm902_vm12 = vcmp.eq.s32.totalorder %v1689_v9, 6  ;;  %v2083_v34 = vld [vmem:[#allocation3 + $0x8] sm:$0xff]   ;;  %v1513_v35 = vld [vmem:[#allocation3] sm:$0xff]   ;;  %v2090_v23 = vld [vmem:[#allocation3 + $0x30] sm:$0xff]  }
  0x9f   :  { %v852_v37 = vadd.f32 %v850_v6, %v846_v43  ;;  %v898_v40 = vsel %vm896_vm11, 1.0, %v1522_v39  ;;  %vm908_vm7 = vcmp.eq.s32.totalorder %v1700_v49, 6  ;;  %vm914_vm9 = vcmp.eq.s32.totalorder %v1711_v0, 6 }
  0xa0   :  { %v862_v46 = vsel %vm860_vm10, 1.0, %v1522_v39  ;;  %v894_v41 = vadd.f32 %v892_v52, %v888_v36  ;;  %v904_v47 = vsel %vm902_vm12, 1.0, %v1522_v39  ;;  %v910_v53 = vsel %vm908_vm7, 1.0, %v1522_v39  ;;  %v2098_v36 = vld [vmem:[#allocation3 + $0x48] sm:$0xff]  }
  0xa1   :  { %v858_v48 = vadd.f32 %v856_v18, %v852_v37  ;;  %v916_v58 = vsel %vm914_vm9, 1.0, %v1522_v39  ;;  %vm932_vm13 = vcmp.eq.s32.totalorder %v1641_v19, 7  ;;  %vm938_vm14 = vcmp.eq.s32.totalorder %v1651_v44, 7  ;;  %v2101_v37 = vld [vmem:[#allocation3 + $0x60] sm:$0xff]  }
  0xa2   :  { %v900_v62 = vadd.f32 %v898_v40, %v894_v41  ;;  %v934_v60 = vsel %vm932_vm13, 1.0, %v1522_v39  ;;  %v940_v61 = vsel %vm938_vm14, 1.0, %v1522_v39  ;;  %vm944_vm11 = vcmp.eq.s32.totalorder %v1659_v59, 7 }
  0xa3   :  { %v864_v8 = vadd.f32 %v862_v46, %v858_v48  ;;  %v942_v12 = vadd.f32 %v940_v61, %v934_v60  ;;  %v946_v15 = vsel %vm944_vm11, 1.0, %v1522_v39  ;;  %vm950_vm8 = vcmp.eq.s32.totalorder %v1671_v32, 7 }
  0xa4   :  { %v906_v2 = vadd.f32 %v904_v47, %v900_v62  ;;  %vm920_vm10 = vcmp.eq.s32.totalorder %v1716_v7, 6  ;;  %v952_v10 = vsel %vm950_vm8, 1.0, %v1522_v39  ;;  %vm956_vm12 = vcmp.eq.s32.totalorder %v1681_v55, 7  ;;  %v2110_v62 = vld [vmem:[#allocation3 + $0x78] sm:$0xff]  }
  0xa5   :  { %vm866_vm7 = vcmp.gt.f32.partialorder %v864_v8, %v808_v31  ;;  %v948_v11 = vadd.f32 %v946_v15, %v942_v12  ;;  %v958_v17 = vsel %vm956_vm12, 1.0, %v1522_v39  ;;  %vm962_vm9 = vcmp.eq.s32.totalorder %v1689_v9, 7  ;;  %v2118_v15 = vld [vmem:[#allocation3 + $0x80] sm:$0xff]  }
  0xa6   :  { %v868_v29 = vsel %vm866_vm7, %v864_v8, %v808_v31  ;;  %v870_v16 = vsel %vm866_vm7, 5, %v810_v3  ;;  %v912_v28 = vadd.f32 %v910_v53, %v906_v2  ;;  %vm968_vm13 = vcmp.eq.s32.totalorder %v1700_v49, 7  ;;  %v2094_v31 = vld [vmem:[#allocation3 + $0x38] sm:$0xff]   ;;  %v2096_v3 = vld [vmem:[#allocation3 + $0x50] sm:$0xff]  }
  0xa7   :  { %v922_v30 = vsel %vm920_vm10, 1.0, %v1522_v39  ;;  %v954_v21 = vadd.f32 %v952_v10, %v948_v11  ;;  %vm974_vm14 = vcmp.eq.s32.totalorder %v1711_v0, 7  ;;  %vm980_vm11 = vcmp.eq.s32.totalorder %v1716_v7, 7  ;;  %v2120_v2 = vld [vmem:[#allocation3 + $0x98] sm:$0xff]   ;;  %v2122_v10 = vld [vmem:[#allocation3 + $0xb0] sm:$0xff]  }
  0xa8   :  { %v918_v24 = vadd.f32 %v916_v58, %v912_v28  ;;  %v964_v27 = vsel %vm962_vm9, 1.0, %v1522_v39  ;;  %v970_v51 = vsel %vm968_vm13, 1.0, %v1522_v39  ;;  %v976_v6 = vsel %vm974_vm14, 1.0, %v1522_v39  ;;  %v2108_v58 = vld [vmem:[#allocation3 + $0x68] sm:$0xff]  }
  0xa9   :  { %v960_v38 = vadd.f32 %v958_v17, %v954_v21  ;;  %v982_v18 = vsel %vm980_vm11, 1.0, %v1522_v39  ;;  %v1366_v42 = vunpack.c.h.bf16 %v1513_v35  ;;  %v1378_v13 = vunpack.c.h.bf16 %v1514_v63  ;;  %v2124_v17 = vld [vmem:[#allocation3 + $0x90] sm:$0xff]   ;;  %v2127_v21 = vld [vmem:[#allocation3 + $0xc8] sm:$0xff]  }
  0xaa   :  { %v924_v4 = vadd.f32 %v922_v30, %v918_v24  ;;  %v1390_v43 = vunpack.c.h.bf16 %v2090_v23  ;;  %v1369_v52 = vunpack.c.l.bf16 %v2083_v34  ;;  %v1402_v39 = vunpack.c.h.bf16 %v2098_v36  ;;  %v2129_v24 = vld [vmem:[#allocation3 + $0xc0] sm:$0xff]   ;;  %v1384_v36 = vld [vmem:[#allocation3 + $0x28] sm:$0xff]  }
  0xab   :  { %v966_v54 = vadd.f32 %v964_v27, %v960_v38  ;;  %v1414_v40 = vunpack.c.h.bf16 %v2101_v37  ;;  %v1381_v46 = vunpack.c.l.bf16 %v2086_v57  ;;  %v1426_v60 = vunpack.c.h.bf16 %v2110_v62  ;;  %v1396_v62 = vld [vmem:[#allocation3 + $0x40] sm:$0xff]  }
  0xac   :  { %vm926_vm8 = vcmp.gt.f32.partialorder %v924_v4, %v868_v29  ;;  %v1005_v48 = vsel %vm991_vm15, %v1369_v52, 0.0  ;;  %v1393_v8 = vunpack.c.l.bf16 %v2094_v31  ;;  %v1405_v12 = vunpack.c.l.bf16 %v2096_v3 }
  0xad   :  { %v928_v41 = vsel %vm926_vm8, %v924_v4, %v868_v29  ;;  %v930_v47 = vsel %vm926_vm8, 6, %v870_v16  ;;  %v972_v53 = vadd.f32 %v970_v51, %v966_v54  ;;  %v1031_v61 = vsel %vm1017_vm0, %v1381_v46, 0.0  ;;  %v1520_v16 = vld [vmem:[#allocation3 + $0xa8] sm:$0xff]  }
  0xae   :  { %v1438_v29 = vunpack.c.h.bf16 %v2124_v17  ;;  %v1450_v28 = vunpack.c.h.bf16 %v1520_v16  ;;  %v1033_v30 = vadd.f32 %v1031_v61, %v1005_v48  ;;  %v1462_v27 = vunpack.c.h.bf16 %v2129_v24 }
  0xaf   :  { %v978_v11 = vadd.f32 %v976_v6, %v972_v53  ;;  %v1057_v38 = vsel %vm1043_vm1, %v1393_v8, 0.0  ;;  %v1083_v51 = vsel %vm1069_vm2, %v1405_v12, 0.0  ;;  %v1417_v4 = vunpack.c.l.bf16 %v2108_v58 }
  0xb0   :  { %v1429_v35 = vunpack.c.l.bf16 %v2118_v15  ;;  %v1441_v54 = vunpack.c.l.bf16 %v2120_v2  ;;  %v1453_v63 = vunpack.c.l.bf16 %v2122_v10  ;;  %v1059_v52 = vadd.f32 %v1057_v38, %v1033_v30 }
  0xb1   :  { %v984_v6 = vadd.f32 %v982_v18, %v978_v11  ;;  %v1109_v46 = vsel %vm1095_vm3, %v1417_v4, 0.0  ;;  %v1465_v53 = vunpack.c.l.bf16 %v2127_v21  ;;  %v1370_v48 = vunpack.c.h.bf16 %v2083_v34 }
  0xb2   :  { %v1135_v18 = vsel %vm1121_vm4, %v1429_v35, 0.0  ;;  %v1161_v61 = vsel %vm1147_vm5, %v1441_v54, 0.0  ;;  %v1187_v8 = vsel %vm2325_vm6, %v1453_v63, 0.0  ;;  %vm2326_vm12 = vcmp.eq.s32.totalorder %v1713_v1, %v1886_v25  ;;  %v1372_v54 = vld [vmem:[#allocation3 + $0x10] sm:$0xff]  }
  0xb3   :  { %vm986_vm10 = vcmp.gt.f32.partialorder %v984_v6, %v928_v41  ;;  %v1213_v34 = vsel %vm2326_vm12, %v1465_v53, 0.0  ;;  %v1382_v17 = vunpack.c.h.bf16 %v2086_v57  ;;  %v1394_v16 = vunpack.c.h.bf16 %v2094_v31 }
  0xb4   :  { %v988_v12 = vsel %vm986_vm10, %v984_v6, %v928_v41  ;;  %v2156_v11 = vsel %vm986_vm10, 7, %v930_v47  ;;  %v1085_v47 = vadd.f32 %v1083_v51, %v1059_v52  ;;  %v1418_v31 = vunpack.c.h.bf16 %v2108_v58 }
  0xb5   :  { %vm992_vm7 = vcmp.eq.s32.totalorder %v1641_v19, %v2156_v11  ;;  %vm1018_vm9 = vcmp.eq.s32.totalorder %v1651_v44, %v2156_v11  ;;  %vm1044_vm13 = vcmp.eq.s32.totalorder %v1659_v59, %v2156_v11  ;;  %vm1070_vm14 = vcmp.eq.s32.totalorder %v1671_v32, %v2156_v11 }
  0xb6   :  { %v998_v41 = vsel %vm992_vm7, %v1366_v42, 0.0  ;;  %v1024_v57 = vsel %vm1018_vm9, %v1378_v13, 0.0  ;;  %vm1096_vm11 = vcmp.eq.s32.totalorder %v1681_v55, %v2156_v11  ;;  %vm1122_vm8 = vcmp.eq.s32.totalorder %v1689_v9, %v2156_v11 }
  0xb7   :  { %v1026_v30 = vadd.f32 %v1024_v57, %v998_v41  ;;  %vm1148_vm10 = vcmp.eq.s32.totalorder %v1700_v49, %v2156_v11  ;;  %v1050_v42 = vsel %vm1044_vm13, %v1390_v43, 0.0  ;;  %vm1174_vm12 = vcmp.eq.s32.totalorder %v1711_v0, %v2156_v11  ;;  %v1408_v57 = vld [vmem:[#allocation3 + $0x58] sm:$0xff]  }
  0xb8   :  { %v1406_v13 = vunpack.c.h.bf16 %v2096_v3  ;;  %vm1200_vm6 = vcmp.eq.s32.totalorder %v1716_v7, %v2156_v11  ;;  %v1226_v51 = vmax.f32 %v988_v12, 1.0  ;;  %v1430_v4 = vunpack.c.h.bf16 %v2118_v15 }
  0xb9   :  { %v1052_v38 = vadd.f32 %v1050_v42, %v1026_v30  ;;  %v1076_v23 = vsel %vm1070_vm14, %v1402_v39, 0.0  ;;  %v1111_v43 = vadd.f32 %v1109_v46, %v1085_v47  ;;  %v1006_v3 = vsel %vm992_vm7, %v1370_v48, 0.0 }
  0xba   :  { %v1032_v58 = vsel %vm1018_vm9, %v1382_v17, 0.0  ;;  %1511 = vrcp.f32 %v1226_v51  ;;  %v1442_v15 = vunpack.c.h.bf16 %v2120_v2  ;;  %v1102_v39 = vsel %vm1096_vm11, %v1414_v40, 0.0 }
  0xbb   :  { %v1078_v6 = vadd.f32 %v1076_v23, %v1052_v38  ;;  %v1034_v35 = vadd.f32 %v1032_v58, %v1006_v3  ;;  %v1128_v63 = vsel %vm1122_vm8, %v1426_v60, 0.0  ;;  %v1137_v52 = vadd.f32 %v1135_v18, %v1111_v43  ;;  %v1420_v38 = vld [vmem:[#allocation3 + $0x70] sm:$0xff]   ;;  %v1432_v58 = vld [vmem:[#allocation3 + $0x88] sm:$0xff]  }
  0xbc   :  { %v1058_v46 = vsel %vm1044_vm13, %v1394_v16, 0.0  ;;  %v1154_v37 = vsel %vm1148_vm10, %v1438_v29, 0.0  ;;  %v1180_v40 = vsel %vm1174_vm12, %v1450_v28, 0.0  ;;  %v1084_v60 = vsel %vm1070_vm14, %v1406_v13, 0.0 }
  0xbd   :  { %v1104_v2 = vadd.f32 %v1102_v39, %v1078_v6  ;;  %v1060_v53 = vadd.f32 %v1058_v46, %v1034_v35  ;;  %v1163_v48 = vadd.f32 %v1161_v61, %v1137_v52  ;;  %v1373_v18 = vunpack.c.l.bf16 %v1372_v54 }
  0xbe   :  { %v1385_v12 = vunpack.c.l.bf16 %v1384_v36  ;;  %v1206_v29 = vsel %vm1200_vm6, %v1462_v27, 0.0  ;;  %v1110_v28 = vsel %vm1096_vm11, %v1418_v31, 0.0  ;;  %v1397_v24 = vunpack.c.l.bf16 %v1396_v62 }
  0xbf   :  { %v1130_v17 = vadd.f32 %v1128_v63, %v1104_v2  ;;  %v1086_v41 = vadd.f32 %v1084_v60, %v1060_v53  ;;  %v1189_v61 = vadd.f32 %v1187_v8, %v1163_v48  ;;  %v1013_v47 = vsel %vm991_vm15, %v1373_v18, 0.0  ;;  %v1456_v48 = vld [vmem:[#allocation3 + $0xb8] sm:$0xff]  }
  0xc0   :  { %v1039_v16 = vsel %vm1017_vm0, %v1385_v12, 0.0  ;;  %v1136_v27 = vsel %vm1122_vm8, %v1430_v4, 0.0  ;;  %v1162_v8 = vsel %vm1148_vm10, %v1442_v15, 0.0  ;;  %v1065_v14 = vsel %vm1043_vm1, %v1397_v24, 0.0  ;;  %v1444_v15 = vld [vmem:[#allocation3 + $0xa0] sm:$0xff]  }
  0xc1   :  { %v1156_v30 = vadd.f32 %v1154_v37, %v1130_v17  ;;  %v1112_v42 = vadd.f32 %v1110_v28, %v1086_v41  ;;  %v1041_v13 = vadd.f32 %v1039_v16, %v1013_v47  ;;  %v1215_v31 = vadd.f32 %v1213_v34, %v1189_v61  ;;  %v1468_v41 = vld [vmem:[#allocation3 + $0xd0] sm:$0xff]  }
  0xc2   :  { %v1409_v20 = vunpack.c.l.bf16 %v1408_v57  ;;  %v1454_v43 = vunpack.c.h.bf16 %v2122_v10  ;;  %v1466_v6 = vunpack.c.h.bf16 %v2127_v21  ;;  %v1421_v35 = vunpack.c.l.bf16 %v1420_v38 }
  0xc3   :  { %v1182_v51 = vadd.f32 %v1180_v40, %v1156_v30  ;;  %v1138_v23 = vadd.f32 %v1136_v27, %v1112_v42  ;;  %v1067_v3 = vadd.f32 %v1065_v14, %v1041_v13  ;;  %v1233_v4 = vmul.f32 %v1984_v26, %v1215_v31 }
  0xc4   :  { %v1091_v34 = vsel %vm1069_vm2, %v1409_v20, 0.0  ;;  %v1188_v63 = vsel %vm1174_vm12, %v1454_v43, 0.0  ;;  %v1117_v10 = vsel %vm1095_vm3, %v1421_v35, 0.0  ;;  %v1433_v21 = vunpack.c.l.bf16 %v1432_v58 }
  0xc5   :  { %v1208_v39 = vadd.f32 %v1206_v29, %v1182_v51  ;;  %v1164_v45 = vadd.f32 %v1162_v8, %v1138_v23  ;;  %v1093_v52 = vadd.f32 %v1091_v34, %v1067_v3  ;;  %1251 = vst [vmem:[%s2323_s1 + $0x10] sm:$0xff] %v1233_v4  ;;  %v1374_v5 = vunpack.c.h.bf16 %v1372_v54 }
  0xc6   :  { %v1386_v46 = vunpack.c.h.bf16 %v1384_v36  ;;  %v1214_v37 = vsel %vm1200_vm6, %v1466_v6, 0.0  ;;  %v1445_v53 = vunpack.c.l.bf16 %v1444_v15  ;;  %v1143_v18 = vsel %vm1121_vm4, %v1433_v21, 0.0 }
  0xc7   :  { %v1190_v2 = vadd.f32 %v1188_v63, %v1164_v45  ;;  %v1119_v40 = vadd.f32 %v1117_v10, %v1093_v52  ;;  %v1512_v60 = vpop.eup %1511  ;;  %v1014_v33 = vsel %vm992_vm7, %v1374_v5, 0.0  ;;  %v1398_v36 = vunpack.c.h.bf16 %v1396_v62 }
  0xc8   :  { %v1040_v54 = vsel %vm1018_vm9, %v1386_v46, 0.0  ;;  %v1230_v12 = vmul.f32 %v1512_v60, %v1208_v39  ;;  %v1169_v61 = vsel %vm1147_vm5, %v1445_v53, 0.0  ;;  %v1457_v56 = vunpack.c.l.bf16 %v1456_v48 }
  0xc9   :  { %v1216_v17 = vadd.f32 %v1214_v37, %v1190_v2  ;;  %v1145_v29 = vadd.f32 %v1143_v18, %v1119_v40  ;;  %v1042_v28 = vadd.f32 %v1040_v54, %v1014_v33  ;;  %v1066_v19 = vsel %vm1044_vm13, %v1398_v36, 0.0 }
  0xca   :  { %v1410_v47 = vunpack.c.h.bf16 %v1408_v57  ;;  %1232 = vst [vmem:[%s2323_s1 + $0x8] sm:$0xff] %v1230_v12  ;;  %vm2327_vm15 = vcmp.eq.s32.totalorder %v1702_v50, %v1886_v25  ;;  %v1469_v30 = vunpack.c.l.bf16 %v1468_v41  ;;  %v1422_v42 = vunpack.c.h.bf16 %v1420_v38 }
  0xcb   :  { %v1234_v44 = vmul.f32 %v1512_v60, %v1216_v17  ;;  %v1171_v62 = vadd.f32 %v1169_v61, %v1145_v29  ;;  %v1068_v16 = vadd.f32 %v1066_v19, %v1042_v28  ;;  %v1195_v24 = vsel %vm2327_vm15, %v1457_v56, 0.0 }
  0xcc   :  { %v1092_v22 = vsel %vm1070_vm14, %v1410_v47, 0.0  ;;  %vm2328_vm0 = vcmp.eq.s32.totalorder %v1713_v1, %v1886_v25  ;;  %v1118_v50 = vsel %vm1096_vm11, %v1422_v42, 0.0  ;;  %v1434_v13 = vunpack.c.h.bf16 %v1432_v58 }
  0xcd   :  { %1252 = vst [vmem:[%s2323_s1 + $0x18] sm:$0xff] %v1234_v44  ;;  %v1197_v59 = vadd.f32 %v1195_v24, %v1171_v62  ;;  %v1094_v57 = vadd.f32 %v1092_v22, %v1068_v16  ;;  %v1221_v27 = vsel %vm2328_vm0, %v1469_v30, 0.0  ;;  %v1446_v38 = vunpack.c.h.bf16 %v1444_v15 }
  0xce   :  { %v1144_v32 = vsel %vm1122_vm8, %v1434_v13, 0.0  ;;  %v1458_v25 = vunpack.c.h.bf16 %v1456_v48  ;;  %v1470_v9 = vunpack.c.h.bf16 %v1468_v41 }
  0xcf   :  { %v1223_v31 = vadd.f32 %v1221_v27, %v1197_v59  ;;  %v1120_v8 = vadd.f32 %v1118_v50, %v1094_v57  ;;  %v1170_v1 = vsel %vm1148_vm10, %v1446_v38, 0.0 }
  0xd0   :  { %v1196_v51 = vsel %vm1174_vm12, %v1458_v25, 0.0 }
  0xd1   :  { %v1238_v14 = vmul.f32 %v1984_v26, %v1223_v31  ;;  %v1146_v20 = vadd.f32 %v1144_v32, %v1120_v8  ;;  %v1222_v26 = vsel %vm1200_vm6, %v1470_v9, 0.0 }
  0xd3   :  { %1253 = vst [vmem:[%s2323_s1 + $0x20] sm:$0xff] %v1238_v14  ;;  %v1172_v55 = vadd.f32 %v1170_v1, %v1146_v20 }
  0xd5   :  { %v1198_v23 = vadd.f32 %v1196_v51, %v1172_v55 }
  0xd7   :  { %v1224_v43 = vadd.f32 %v1222_v26, %v1198_v23 }
  0xd9   :  { %v1239_v3 = vmul.f32 %v1512_v60, %v1224_v43 }
  0xdb   :  { %1254 = vst [vmem:[%s2323_s1 + $0x28] sm:$0xff] %v1239_v3 }

</bundles_post_ra>
